<compile_context>
chip_gen: v7x
topology: tpu7x:2x2x1
jax: 0.10.0
libtpu: 0.0.40
codegen_flags: <defaults>
</compile_context>

<pallas_src>
import jax
import jax.numpy as jnp
from jax.experimental import pallas as pl
from jax.experimental.pallas import tpu as pltpu

_BLOCK_B = 64                      # images per grid step (>=8, multiple of 8)
_VMEM_LIMIT = 40 * 1024 * 1024     # ~2x headroom over the per-step footprint


# ------------------------------- kernel -------------------------------------

def _generator_kernel(z_ref, wl_ref, bl_ref, w1_ref, b1_ref, w2_ref, b2_ref,
                      w3_ref, b3_ref, out_ref, a0_ref, a1_ref, a2_ref):
    tb = z_ref.shape[0]
    n = 28 * tb                                   # (image rows) * (batch tile)

    # Zero the two padding-ring rows (canvas rows 1 and 30) of every canvas.
    # Re-written every step so each step is self-contained even when the
    # "parallel" grid axis is sharded across TensorCores.
    for buf in (a0_ref, a1_ref, a2_ref):
        wd = buf.shape[1]
        buf[0:tb, :] = jnp.zeros((tb, wd), jnp.float32)
        buf[29 * tb:30 * tb, :] = jnp.zeros((tb, wd), jnp.float32)

    # ---- Linear(100 -> 784) + ReLU: one MXU matmul into 28 canvas-row blocks
    # of 32 columns (border columns of wl/bl are zero => exact zero padding).
    h = jnp.dot(z_ref[...], wl_ref[...], preferred_element_type=jnp.float32)
    h = jnp.maximum(h + bl_ref[...], 0.0)                       # (tb, 896)
    for i in range(28):                   # scatter into the row-major canvas
        a0_ref[(i + 1) * tb:(i + 2) * tb, :] = h[:, i * 32:(i + 1) * 32]

    # ---- 3x3 conv == 3 accumulated matmuls with block-banded weights.
    def conv(in_ref, w_ref, b_ref, relu):
        acc = jnp.dot(in_ref[0:n, :], w_ref[0],
                      preferred_element_type=jnp.float32)
        acc = acc + jnp.dot(in_ref[tb:tb + n, :], w_ref[1],
                            preferred_element_type=jnp.float32)
        acc = acc + jnp.dot(in_ref[2 * tb:2 * tb + n, :], w_ref[2],
                            preferred_element_type=jnp.float32)
        acc = acc + b_ref[...]
        return jnp.maximum(acc, 0.0) if relu else acc

    a1_ref[tb:29 * tb, :] = conv(a0_ref, w1_ref, b1_ref, True)    # 1 -> 12
    a2_ref[tb:29 * tb, :] = conv(a1_ref, w2_ref, b2_ref, True)    # 12 -> 8
    out_ref[...] = conv(a2_ref, w3_ref, b3_ref, False)            # 8 -> 1


# ------------------------------ wrappers -------------------------------------

def prepare_params(p):
    """One-time layout prep: torch layouts -> banded / canvas kernel layouts."""
    # Linear weights scattered into 28 canvas-row blocks of 32 cols each
    # (image col x -> block col x+2; block cols {0,1,30,31} stay zero).
    pix = jnp.arange(784)
    col = (pix // 28) * 32 + (pix % 28) + 2
    wl = jnp.zeros((100, 896), jnp.float32).at[:, col].set(
        jnp.asarray(p["lin_w"], jnp.float32).T)
    bl = jnp.zeros((896,), jnp.float32).at[col].set(
        jnp.asarray(p["lin_b"], jnp.float32))[None, :]

    def banded(w):
        # (cout, cin, 3, 3) -> (3, 32*cin, 32*cout): one block-banded matrix
        # per vertical tap di; horizontal taps dj and channel mixing live in
        # the band.  Output columns j in {0,1,30,31} stay all-zero so padding
        # columns of the produced activation are exactly zero.
        w = jnp.asarray(w, jnp.float32)
        cout, cin = w.shape[0], w.shape[1]
        j = jnp.arange(2, 30)
        c = jnp.arange(cin)[:, None, None]
        o = jnp.arange(cout)[None, :, None]
        mats = []
        for di in range(3):
            m = jnp.zeros((32 * cin, 32 * cout), jnp.float32)
            for dj in range(3):
                rows = jnp.broadcast_to(c * 32 + j[None, None, :] + dj - 1,
                                        (cin, cout, 28))
                cols = jnp.broadcast_to(o * 32 + j[None, None, :],
                                        (cin, cout, 28))
                vals = jnp.broadcast_to(w[:, :, di, dj].T[:, :, None],
                                        (cin, cout, 28))
                m = m.at[rows, cols].set(vals)
            mats.append(m)
        return jnp.stack(mats)

    def bias_row(b):
        b = jnp.asarray(b, jnp.float32)
        cout = b.shape[0]
        jj = jnp.arange(32 * cout) % 32
        return jnp.where((jj >= 2) & (jj < 30),
                         jnp.repeat(b, 32), 0.0)[None, :]

    return {"wl": wl, "bl": bl,
            "w1": banded(p["c1_w"]), "b1": bias_row(p["c1_b"]),
            "w2": banded(p["c2_w"]), "b2": bias_row(p["c2_b"]),
            "w3": banded(p["c3_w"]), "b3": bias_row(p["c3_b"])}


@jax.jit
def generator_forward(z, prep):
    """z: (B, 100) f32 -> (B, 1, 28, 28) f32 (NCHW, like PyTorch)."""
    B = z.shape[0]
    tb = _BLOCK_B if B >= _BLOCK_B else ((B + 7) // 8) * 8
    bp = ((B + tb - 1) // tb) * tb
    if bp != B:
        z = jnp.pad(z, ((0, bp - B), (0, 0)))
    g = bp // tb
    nrows = 28 * tb

    out = pl.pallas_call(
        _generator_kernel,
        out_shape=jax.ShapeDtypeStruct((g * nrows, 32), jnp.float32),
        grid=(g,),
        in_specs=[
            pl.BlockSpec((tb, 100), lambda s: (s, 0)),
            pl.BlockSpec((100, 896), lambda s: (0, 0)),
            pl.BlockSpec((1, 896), lambda s: (0, 0)),
            pl.BlockSpec((3, 32, 384), lambda s: (0, 0, 0)),
            pl.BlockSpec((1, 384), lambda s: (0, 0)),
            pl.BlockSpec((3, 384, 256), lambda s: (0, 0, 0)),
            pl.BlockSpec((1, 256), lambda s: (0, 0)),
            pl.BlockSpec((3, 256, 32), lambda s: (0, 0, 0)),
            pl.BlockSpec((1, 32), lambda s: (0, 0)),
        ],
        out_specs=pl.BlockSpec((nrows, 32), lambda s: (s, 0)),
        scratch_shapes=[
            pltpu.VMEM((30 * tb, 32), jnp.float32),    # canvas after Linear
            pltpu.VMEM((30 * tb, 384), jnp.float32),   # canvas after conv1
            pltpu.VMEM((30 * tb, 256), jnp.float32),   # canvas after conv2
        ],
        compiler_params=pltpu.CompilerParams(
            dimension_semantics=("parallel",),
            vmem_limit_bytes=_VMEM_LIMIT),
    )(z, prep["wl"], prep["bl"], prep["w1"], prep["b1"],
      prep["w2"], prep["b2"], prep["w3"], prep["b3"])

    # rows are ordered (step, image_row, batch); un-pack cheaply with XLA.
    img = out.reshape(g, 28, tb, 32).transpose(0, 2, 1, 3).reshape(bp, 28, 32)
    return img[:B, :, 2:30][:, None, :, :]


def init_params(key):
    ks = jax.random.split(key, 8)
    s = 0.05
    return {
        "lin_w": s * jax.random.normal(ks[0], (784, 100), jnp.float32),  # torch (out,in)
        "lin_b": s * jax.random.normal(ks[1], (784,), jnp.float32),
        "c1_w": s * jax.random.normal(ks[2], (12, 1, 3, 3), jnp.float32),
        "c1_b": s * jax.random.normal(ks[3], (12,), jnp.float32),
        "c2_w": s * jax.random.normal(ks[4], (8, 12, 3, 3), jnp.float32),
        "c2_b": s * jax.random.normal(ks[5], (8,), jnp.float32),
        "c3_w": s * jax.random.normal(ks[6], (1, 8, 3, 3), jnp.float32),
        "c3_b": s * jax.random.normal(ks[7], (1,), jnp.float32),
    }


# Pure-JAX reference (lax conv) used only to sanity-check the kernel.
def generator_reference(x, params):
    h = jnp.maximum(x @ params["lin_w"].T + params["lin_b"], 0.0)
    img = h.reshape(-1, 1, 28, 28)

    def conv(y, w, b, relu):
        out = jax.lax.conv_general_dilated(
            y, w, window_strides=(1, 1), padding=((1, 1), (1, 1)),
            dimension_numbers=("NCHW", "OIHW", "NCHW"))
        out = out + b.reshape(1, -1, 1, 1)
        return jnp.maximum(out, 0.0) if relu else out

    img = conv(img, params["c1_w"], params["c1_b"], True)
    img = conv(img, params["c2_w"], params["c2_b"], True)
    img = conv(img, params["c3_w"], params["c3_b"], False)
    return img


if __name__ == "__main__":
    key = jax.random.PRNGKey(0)
    pkey, xkey = jax.random.split(key)
    params = init_params(pkey)
    prep = prepare_params(params)
    x = jax.random.normal(xkey, (2, 100), jnp.float32)

    out = jax.block_until_ready(generator_forward(x, prep))
    assert out.shape == (2, 1, 28, 28), out.shape

    ref = generator_reference(x, params)
    err = float(jnp.max(jnp.abs(out - ref)))
    assert err < 3e-3, err

    print("KERNEL_OK")
</pallas_src>

<mosaic_0001>
module attributes {stable_mosaic.version = 11 : i64} {
  func.func @_generator_kernel(%arg0: i32, %arg1: memref<8x100xf32, #tpu.memory_space<vmem>>, %arg2: memref<100x896xf32, #tpu.memory_space<vmem>>, %arg3: memref<1x896xf32, #tpu.memory_space<vmem>>, %arg4: memref<3x32x384xf32, #tpu.memory_space<vmem>>, %arg5: memref<1x384xf32, #tpu.memory_space<vmem>>, %arg6: memref<3x384x256xf32, #tpu.memory_space<vmem>>, %arg7: memref<1x256xf32, #tpu.memory_space<vmem>>, %arg8: memref<3x256x32xf32, #tpu.memory_space<vmem>>, %arg9: memref<1x32xf32, #tpu.memory_space<vmem>>, %arg10: memref<224x32xf32, #tpu.memory_space<vmem>>, %arg11: memref<240x32xf32, #tpu.memory_space<vmem>>, %arg12: memref<240x384xf32, #tpu.memory_space<vmem>>, %arg13: memref<240x256xf32, #tpu.memory_space<vmem>>) attributes {dimension_semantics = [#tpu.dimension_semantics<parallel>], iteration_bounds = array<i64: 1>, scalar_prefetch = 0 : i64, scratch_operands = 3 : i64, tpu.core_type = #tpu.core_type<tc>, window_params = [{transform_indices = @transform_0, window_bounds = array<i64: 8, 100>}, {pipeline_mode = #tpu.pipeline_mode<synchronous>, transform_indices = @transform_1, window_bounds = array<i64: 100, 896>}, {pipeline_mode = #tpu.pipeline_mode<synchronous>, transform_indices = @transform_2, window_bounds = array<i64: 1, 896>}, {pipeline_mode = #tpu.pipeline_mode<synchronous>, transform_indices = @transform_3, window_bounds = array<i64: 3, 32, 384>}, {pipeline_mode = #tpu.pipeline_mode<synchronous>, transform_indices = @transform_4, window_bounds = array<i64: 1, 384>}, {pipeline_mode = #tpu.pipeline_mode<synchronous>, transform_indices = @transform_5, window_bounds = array<i64: 3, 384, 256>}, {pipeline_mode = #tpu.pipeline_mode<synchronous>, transform_indices = @transform_6, window_bounds = array<i64: 1, 256>}, {pipeline_mode = #tpu.pipeline_mode<synchronous>, transform_indices = @transform_7, window_bounds = array<i64: 3, 256, 32>}, {pipeline_mode = #tpu.pipeline_mode<synchronous>, transform_indices = @transform_8, window_bounds = array<i64: 1, 32>}, {transform_indices = @transform_9, window_bounds = array<i64: 224, 32>}]} {
    %cst = arith.constant 0.000000e+00 : f32
    %0 = vector.broadcast %cst : f32 to vector<8x32xf32>
    %c0 = arith.constant 0 : index
    %c0_0 = arith.constant 0 : index
    %1 = vector.load %arg11[%c0, %c0_0] : memref<240x32xf32, #tpu.memory_space<vmem>>, vector<8x32xf32>
    tpu.vector_store %arg11[%c0, %c0_0], %0 {strides = array<i32>} : memref<240x32xf32, #tpu.memory_space<vmem>>, vector<8x32xf32>,
    %cst_1 = arith.constant 0.000000e+00 : f32
    %2 = vector.broadcast %cst_1 : f32 to vector<8x32xf32>
    %c232 = arith.constant 232 : index
    %c0_2 = arith.constant 0 : index
    %3 = vector.load %arg11[%c232, %c0_2] : memref<240x32xf32, #tpu.memory_space<vmem>>, vector<8x32xf32>
    tpu.vector_store %arg11[%c232, %c0_2], %2 {strides = array<i32>} : memref<240x32xf32, #tpu.memory_space<vmem>>, vector<8x32xf32>,
    %cst_3 = arith.constant 0.000000e+00 : f32
    %4 = vector.broadcast %cst_3 : f32 to vector<8x384xf32>
    %c0_4 = arith.constant 0 : index
    %c0_5 = arith.constant 0 : index
    %5 = vector.load %arg12[%c0_4, %c0_5] : memref<240x384xf32, #tpu.memory_space<vmem>>, vector<8x384xf32>
    tpu.vector_store %arg12[%c0_4, %c0_5], %4 {strides = array<i32>} : memref<240x384xf32, #tpu.memory_space<vmem>>, vector<8x384xf32>,
    %cst_6 = arith.constant 0.000000e+00 : f32
    %6 = vector.broadcast %cst_6 : f32 to vector<8x384xf32>
    %c232_7 = arith.constant 232 : index
    %c0_8 = arith.constant 0 : index
    %7 = vector.load %arg12[%c232_7, %c0_8] : memref<240x384xf32, #tpu.memory_space<vmem>>, vector<8x384xf32>
    tpu.vector_store %arg12[%c232_7, %c0_8], %6 {strides = array<i32>} : memref<240x384xf32, #tpu.memory_space<vmem>>, vector<8x384xf32>,
    %cst_9 = arith.constant 0.000000e+00 : f32
    %8 = vector.broadcast %cst_9 : f32 to vector<8x256xf32>
    %c0_10 = arith.constant 0 : index
    %c0_11 = arith.constant 0 : index
    %9 = vector.load %arg13[%c0_10, %c0_11] : memref<240x256xf32, #tpu.memory_space<vmem>>, vector<8x256xf32>
    tpu.vector_store %arg13[%c0_10, %c0_11], %8 {strides = array<i32>} : memref<240x256xf32, #tpu.memory_space<vmem>>, vector<8x256xf32>,
    %cst_12 = arith.constant 0.000000e+00 : f32
    %10 = vector.broadcast %cst_12 : f32 to vector<8x256xf32>
    %c232_13 = arith.constant 232 : index
    %c0_14 = arith.constant 0 : index
    %11 = vector.load %arg13[%c232_13, %c0_14] : memref<240x256xf32, #tpu.memory_space<vmem>>, vector<8x256xf32>
    tpu.vector_store %arg13[%c232_13, %c0_14], %10 {strides = array<i32>} : memref<240x256xf32, #tpu.memory_space<vmem>>, vector<8x256xf32>,
    %c0_15 = arith.constant 0 : index
    %c0_16 = arith.constant 0 : index
    %12 = vector.load %arg1[%c0_15, %c0_16] : memref<8x100xf32, #tpu.memory_space<vmem>>, vector<8x100xf32>
    %c0_17 = arith.constant 0 : index
    %c0_18 = arith.constant 0 : index
    %13 = vector.load %arg2[%c0_17, %c0_18] : memref<100x896xf32, #tpu.memory_space<vmem>>, vector<100x896xf32>
    %cst_19 = arith.constant dense<0.000000e+00> : vector<8x896xf32>
    %14 = tpu.matmul %12, %13, %cst_19 {dimension_numbers = #tpu.dot_dimension_numbers<[1], [0], [0], [1], [0, 0, 1, 1], [], []>} : vector<8x100xf32>, vector<100x896xf32>, vector<8x896xf32> -> vector<8x896xf32>
    %c0_20 = arith.constant 0 : index
    %c0_21 = arith.constant 0 : index
    %15 = vector.load %arg3[%c0_20, %c0_21] : memref<1x896xf32, #tpu.memory_space<vmem>>, vector<1x896xf32>
    %16 = vector.broadcast %15 : vector<1x896xf32> to vector<8x896xf32>
    %17 = arith.addf %14, %16 : vector<8x896xf32>
    %cst_22 = arith.constant 0.000000e+00 : f32
    %18 = vector.broadcast %cst_22 : f32 to vector<8x896xf32>
    %19 = arith.maximumf %17, %18 : vector<8x896xf32>
    %20 = vector.extract_strided_slice %19 {offsets = [0, 0], sizes = [8, 32], strides = [1, 1]} : vector<8x896xf32> to vector<8x32xf32>
    %c8 = arith.constant 8 : index
    %c0_23 = arith.constant 0 : index
    %21 = vector.load %arg11[%c8, %c0_23] : memref<240x32xf32, #tpu.memory_space<vmem>>, vector<8x32xf32>
    tpu.vector_store %arg11[%c8, %c0_23], %20 {strides = array<i32>} : memref<240x32xf32, #tpu.memory_space<vmem>>, vector<8x32xf32>,
    %22 = vector.extract_strided_slice %19 {offsets = [0, 32], sizes = [8, 32], strides = [1, 1]} : vector<8x896xf32> to vector<8x32xf32>
    %c16 = arith.constant 16 : index
    %c0_24 = arith.constant 0 : index
    %23 = vector.load %arg11[%c16, %c0_24] : memref<240x32xf32, #tpu.memory_space<vmem>>, vector<8x32xf32>
    tpu.vector_store %arg11[%c16, %c0_24], %22 {strides = array<i32>} : memref<240x32xf32, #tpu.memory_space<vmem>>, vector<8x32xf32>,
    %24 = vector.extract_strided_slice %19 {offsets = [0, 64], sizes = [8, 32], strides = [1, 1]} : vector<8x896xf32> to vector<8x32xf32>
    %c24 = arith.constant 24 : index
    %c0_25 = arith.constant 0 : index
    %25 = vector.load %arg11[%c24, %c0_25] : memref<240x32xf32, #tpu.memory_space<vmem>>, vector<8x32xf32>
    tpu.vector_store %arg11[%c24, %c0_25], %24 {strides = array<i32>} : memref<240x32xf32, #tpu.memory_space<vmem>>, vector<8x32xf32>,
    %26 = vector.extract_strided_slice %19 {offsets = [0, 96], sizes = [8, 32], strides = [1, 1]} : vector<8x896xf32> to vector<8x32xf32>
    %c32 = arith.constant 32 : index
    %c0_26 = arith.constant 0 : index
    %27 = vector.load %arg11[%c32, %c0_26] : memref<240x32xf32, #tpu.memory_space<vmem>>, vector<8x32xf32>
    tpu.vector_store %arg11[%c32, %c0_26], %26 {strides = array<i32>} : memref<240x32xf32, #tpu.memory_space<vmem>>, vector<8x32xf32>,
    %28 = vector.extract_strided_slice %19 {offsets = [0, 128], sizes = [8, 32], strides = [1, 1]} : vector<8x896xf32> to vector<8x32xf32>
    %c40 = arith.constant 40 : index
    %c0_27 = arith.constant 0 : index
    %29 = vector.load %arg11[%c40, %c0_27] : memref<240x32xf32, #tpu.memory_space<vmem>>, vector<8x32xf32>
    tpu.vector_store %arg11[%c40, %c0_27], %28 {strides = array<i32>} : memref<240x32xf32, #tpu.memory_space<vmem>>, vector<8x32xf32>,
    %30 = vector.extract_strided_slice %19 {offsets = [0, 160], sizes = [8, 32], strides = [1, 1]} : vector<8x896xf32> to vector<8x32xf32>
    %c48 = arith.constant 48 : index
    %c0_28 = arith.constant 0 : index
    %31 = vector.load %arg11[%c48, %c0_28] : memref<240x32xf32, #tpu.memory_space<vmem>>, vector<8x32xf32>
    tpu.vector_store %arg11[%c48, %c0_28], %30 {strides = array<i32>} : memref<240x32xf32, #tpu.memory_space<vmem>>, vector<8x32xf32>,
    %32 = vector.extract_strided_slice %19 {offsets = [0, 192], sizes = [8, 32], strides = [1, 1]} : vector<8x896xf32> to vector<8x32xf32>
    %c56 = arith.constant 56 : index
    %c0_29 = arith.constant 0 : index
    %33 = vector.load %arg11[%c56, %c0_29] : memref<240x32xf32, #tpu.memory_space<vmem>>, vector<8x32xf32>
    tpu.vector_store %arg11[%c56, %c0_29], %32 {strides = array<i32>} : memref<240x32xf32, #tpu.memory_space<vmem>>, vector<8x32xf32>,
    %34 = vector.extract_strided_slice %19 {offsets = [0, 224], sizes = [8, 32], strides = [1, 1]} : vector<8x896xf32> to vector<8x32xf32>
    %c64 = arith.constant 64 : index
    %c0_30 = arith.constant 0 : index
    %35 = vector.load %arg11[%c64, %c0_30] : memref<240x32xf32, #tpu.memory_space<vmem>>, vector<8x32xf32>
    tpu.vector_store %arg11[%c64, %c0_30], %34 {strides = array<i32>} : memref<240x32xf32, #tpu.memory_space<vmem>>, vector<8x32xf32>,
    %36 = vector.extract_strided_slice %19 {offsets = [0, 256], sizes = [8, 32], strides = [1, 1]} : vector<8x896xf32> to vector<8x32xf32>
    %c72 = arith.constant 72 : index
    %c0_31 = arith.constant 0 : index
    %37 = vector.load %arg11[%c72, %c0_31] : memref<240x32xf32, #tpu.memory_space<vmem>>, vector<8x32xf32>
    tpu.vector_store %arg11[%c72, %c0_31], %36 {strides = array<i32>} : memref<240x32xf32, #tpu.memory_space<vmem>>, vector<8x32xf32>,
    %38 = vector.extract_strided_slice %19 {offsets = [0, 288], sizes = [8, 32], strides = [1, 1]} : vector<8x896xf32> to vector<8x32xf32>
    %c80 = arith.constant 80 : index
    %c0_32 = arith.constant 0 : index
    %39 = vector.load %arg11[%c80, %c0_32] : memref<240x32xf32, #tpu.memory_space<vmem>>, vector<8x32xf32>
    tpu.vector_store %arg11[%c80, %c0_32], %38 {strides = array<i32>} : memref<240x32xf32, #tpu.memory_space<vmem>>, vector<8x32xf32>,
    %40 = vector.extract_strided_slice %19 {offsets = [0, 320], sizes = [8, 32], strides = [1, 1]} : vector<8x896xf32> to vector<8x32xf32>
    %c88 = arith.constant 88 : index
    %c0_33 = arith.constant 0 : index
    %41 = vector.load %arg11[%c88, %c0_33] : memref<240x32xf32, #tpu.memory_space<vmem>>, vector<8x32xf32>
    tpu.vector_store %arg11[%c88, %c0_33], %40 {strides = array<i32>} : memref<240x32xf32, #tpu.memory_space<vmem>>, vector<8x32xf32>,
    %42 = vector.extract_strided_slice %19 {offsets = [0, 352], sizes = [8, 32], strides = [1, 1]} : vector<8x896xf32> to vector<8x32xf32>
    %c96 = arith.constant 96 : index
    %c0_34 = arith.constant 0 : index
    %43 = vector.load %arg11[%c96, %c0_34] : memref<240x32xf32, #tpu.memory_space<vmem>>, vector<8x32xf32>
    tpu.vector_store %arg11[%c96, %c0_34], %42 {strides = array<i32>} : memref<240x32xf32, #tpu.memory_space<vmem>>, vector<8x32xf32>,
    %44 = vector.extract_strided_slice %19 {offsets = [0, 384], sizes = [8, 32], strides = [1, 1]} : vector<8x896xf32> to vector<8x32xf32>
    %c104 = arith.constant 104 : index
    %c0_35 = arith.constant 0 : index
    %45 = vector.load %arg11[%c104, %c0_35] : memref<240x32xf32, #tpu.memory_space<vmem>>, vector<8x32xf32>
    tpu.vector_store %arg11[%c104, %c0_35], %44 {strides = array<i32>} : memref<240x32xf32, #tpu.memory_space<vmem>>, vector<8x32xf32>,
    %46 = vector.extract_strided_slice %19 {offsets = [0, 416], sizes = [8, 32], strides = [1, 1]} : vector<8x896xf32> to vector<8x32xf32>
    %c112 = arith.constant 112 : index
    %c0_36 = arith.constant 0 : index
    %47 = vector.load %arg11[%c112, %c0_36] : memref<240x32xf32, #tpu.memory_space<vmem>>, vector<8x32xf32>
    tpu.vector_store %arg11[%c112, %c0_36], %46 {strides = array<i32>} : memref<240x32xf32, #tpu.memory_space<vmem>>, vector<8x32xf32>,
    %48 = vector.extract_strided_slice %19 {offsets = [0, 448], sizes = [8, 32], strides = [1, 1]} : vector<8x896xf32> to vector<8x32xf32>
    %c120 = arith.constant 120 : index
    %c0_37 = arith.constant 0 : index
    %49 = vector.load %arg11[%c120, %c0_37] : memref<240x32xf32, #tpu.memory_space<vmem>>, vector<8x32xf32>
    tpu.vector_store %arg11[%c120, %c0_37], %48 {strides = array<i32>} : memref<240x32xf32, #tpu.memory_space<vmem>>, vector<8x32xf32>,
    %50 = vector.extract_strided_slice %19 {offsets = [0, 480], sizes = [8, 32], strides = [1, 1]} : vector<8x896xf32> to vector<8x32xf32>
    %c128 = arith.constant 128 : index
    %c0_38 = arith.constant 0 : index
    %51 = vector.load %arg11[%c128, %c0_38] : memref<240x32xf32, #tpu.memory_space<vmem>>, vector<8x32xf32>
    tpu.vector_store %arg11[%c128, %c0_38], %50 {strides = array<i32>} : memref<240x32xf32, #tpu.memory_space<vmem>>, vector<8x32xf32>,
    %52 = vector.extract_strided_slice %19 {offsets = [0, 512], sizes = [8, 32], strides = [1, 1]} : vector<8x896xf32> to vector<8x32xf32>
    %c136 = arith.constant 136 : index
    %c0_39 = arith.constant 0 : index
    %53 = vector.load %arg11[%c136, %c0_39] : memref<240x32xf32, #tpu.memory_space<vmem>>, vector<8x32xf32>
    tpu.vector_store %arg11[%c136, %c0_39], %52 {strides = array<i32>} : memref<240x32xf32, #tpu.memory_space<vmem>>, vector<8x32xf32>,
    %54 = vector.extract_strided_slice %19 {offsets = [0, 544], sizes = [8, 32], strides = [1, 1]} : vector<8x896xf32> to vector<8x32xf32>
    %c144 = arith.constant 144 : index
    %c0_40 = arith.constant 0 : index
    %55 = vector.load %arg11[%c144, %c0_40] : memref<240x32xf32, #tpu.memory_space<vmem>>, vector<8x32xf32>
    tpu.vector_store %arg11[%c144, %c0_40], %54 {strides = array<i32>} : memref<240x32xf32, #tpu.memory_space<vmem>>, vector<8x32xf32>,
    %56 = vector.extract_strided_slice %19 {offsets = [0, 576], sizes = [8, 32], strides = [1, 1]} : vector<8x896xf32> to vector<8x32xf32>
    %c152 = arith.constant 152 : index
    %c0_41 = arith.constant 0 : index
    %57 = vector.load %arg11[%c152, %c0_41] : memref<240x32xf32, #tpu.memory_space<vmem>>, vector<8x32xf32>
    tpu.vector_store %arg11[%c152, %c0_41], %56 {strides = array<i32>} : memref<240x32xf32, #tpu.memory_space<vmem>>, vector<8x32xf32>,
    %58 = vector.extract_strided_slice %19 {offsets = [0, 608], sizes = [8, 32], strides = [1, 1]} : vector<8x896xf32> to vector<8x32xf32>
    %c160 = arith.constant 160 : index
    %c0_42 = arith.constant 0 : index
    %59 = vector.load %arg11[%c160, %c0_42] : memref<240x32xf32, #tpu.memory_space<vmem>>, vector<8x32xf32>
    tpu.vector_store %arg11[%c160, %c0_42], %58 {strides = array<i32>} : memref<240x32xf32, #tpu.memory_space<vmem>>, vector<8x32xf32>,
    %60 = vector.extract_strided_slice %19 {offsets = [0, 640], sizes = [8, 32], strides = [1, 1]} : vector<8x896xf32> to vector<8x32xf32>
    %c168 = arith.constant 168 : index
    %c0_43 = arith.constant 0 : index
    %61 = vector.load %arg11[%c168, %c0_43] : memref<240x32xf32, #tpu.memory_space<vmem>>, vector<8x32xf32>
    tpu.vector_store %arg11[%c168, %c0_43], %60 {strides = array<i32>} : memref<240x32xf32, #tpu.memory_space<vmem>>, vector<8x32xf32>,
    %62 = vector.extract_strided_slice %19 {offsets = [0, 672], sizes = [8, 32], strides = [1, 1]} : vector<8x896xf32> to vector<8x32xf32>
    %c176 = arith.constant 176 : index
    %c0_44 = arith.constant 0 : index
    %63 = vector.load %arg11[%c176, %c0_44] : memref<240x32xf32, #tpu.memory_space<vmem>>, vector<8x32xf32>
    tpu.vector_store %arg11[%c176, %c0_44], %62 {strides = array<i32>} : memref<240x32xf32, #tpu.memory_space<vmem>>, vector<8x32xf32>,
    %64 = vector.extract_strided_slice %19 {offsets = [0, 704], sizes = [8, 32], strides = [1, 1]} : vector<8x896xf32> to vector<8x32xf32>
    %c184 = arith.constant 184 : index
    %c0_45 = arith.constant 0 : index
    %65 = vector.load %arg11[%c184, %c0_45] : memref<240x32xf32, #tpu.memory_space<vmem>>, vector<8x32xf32>
    tpu.vector_store %arg11[%c184, %c0_45], %64 {strides = array<i32>} : memref<240x32xf32, #tpu.memory_space<vmem>>, vector<8x32xf32>,
    %66 = vector.extract_strided_slice %19 {offsets = [0, 736], sizes = [8, 32], strides = [1, 1]} : vector<8x896xf32> to vector<8x32xf32>
    %c192 = arith.constant 192 : index
    %c0_46 = arith.constant 0 : index
    %67 = vector.load %arg11[%c192, %c0_46] : memref<240x32xf32, #tpu.memory_space<vmem>>, vector<8x32xf32>
    tpu.vector_store %arg11[%c192, %c0_46], %66 {strides = array<i32>} : memref<240x32xf32, #tpu.memory_space<vmem>>, vector<8x32xf32>,
    %68 = vector.extract_strided_slice %19 {offsets = [0, 768], sizes = [8, 32], strides = [1, 1]} : vector<8x896xf32> to vector<8x32xf32>
    %c200 = arith.constant 200 : index
    %c0_47 = arith.constant 0 : index
    %69 = vector.load %arg11[%c200, %c0_47] : memref<240x32xf32, #tpu.memory_space<vmem>>, vector<8x32xf32>
    tpu.vector_store %arg11[%c200, %c0_47], %68 {strides = array<i32>} : memref<240x32xf32, #tpu.memory_space<vmem>>, vector<8x32xf32>,
    %70 = vector.extract_strided_slice %19 {offsets = [0, 800], sizes = [8, 32], strides = [1, 1]} : vector<8x896xf32> to vector<8x32xf32>
    %c208 = arith.constant 208 : index
    %c0_48 = arith.constant 0 : index
    %71 = vector.load %arg11[%c208, %c0_48] : memref<240x32xf32, #tpu.memory_space<vmem>>, vector<8x32xf32>
    tpu.vector_store %arg11[%c208, %c0_48], %70 {strides = array<i32>} : memref<240x32xf32, #tpu.memory_space<vmem>>, vector<8x32xf32>,
    %72 = vector.extract_strided_slice %19 {offsets = [0, 832], sizes = [8, 32], strides = [1, 1]} : vector<8x896xf32> to vector<8x32xf32>
    %c216 = arith.constant 216 : index
    %c0_49 = arith.constant 0 : index
    %73 = vector.load %arg11[%c216, %c0_49] : memref<240x32xf32, #tpu.memory_space<vmem>>, vector<8x32xf32>
    tpu.vector_store %arg11[%c216, %c0_49], %72 {strides = array<i32>} : memref<240x32xf32, #tpu.memory_space<vmem>>, vector<8x32xf32>,
    %74 = vector.extract_strided_slice %19 {offsets = [0, 864], sizes = [8, 32], strides = [1, 1]} : vector<8x896xf32> to vector<8x32xf32>
    %c224 = arith.constant 224 : index
    %c0_50 = arith.constant 0 : index
    %75 = vector.load %arg11[%c224, %c0_50] : memref<240x32xf32, #tpu.memory_space<vmem>>, vector<8x32xf32>
    tpu.vector_store %arg11[%c224, %c0_50], %74 {strides = array<i32>} : memref<240x32xf32, #tpu.memory_space<vmem>>, vector<8x32xf32>,
    %c0_51 = arith.constant 0 : index
    %c0_52 = arith.constant 0 : index
    %76 = vector.load %arg11[%c0_51, %c0_52] : memref<240x32xf32, #tpu.memory_space<vmem>>, vector<224x32xf32>
    %c0_53 = arith.constant 0 : index
    %c0_54 = arith.constant 0 : index
    %c0_55 = arith.constant 0 : index
    %77 = vector.load %arg4[%c0_53, %c0_54, %c0_55] : memref<3x32x384xf32, #tpu.memory_space<vmem>>, vector<1x32x384xf32>
    %78 = vector.shape_cast %77 : vector<1x32x384xf32> to vector<32x384xf32>
    %cst_56 = arith.constant dense<0.000000e+00> : vector<224x384xf32>
    %79 = tpu.matmul %76, %78, %cst_56 {dimension_numbers = #tpu.dot_dimension_numbers<[1], [0], [0], [1], [0, 0, 1, 1], [], []>} : vector<224x32xf32>, vector<32x384xf32>, vector<224x384xf32> -> vector<224x384xf32>
    %c8_57 = arith.constant 8 : index
    %c0_58 = arith.constant 0 : index
    %80 = vector.load %arg11[%c8_57, %c0_58] : memref<240x32xf32, #tpu.memory_space<vmem>>, vector<224x32xf32>
    %c1 = arith.constant 1 : index
    %c0_59 = arith.constant 0 : index
    %c0_60 = arith.constant 0 : index
    %81 = vector.load %arg4[%c1, %c0_59, %c0_60] : memref<3x32x384xf32, #tpu.memory_space<vmem>>, vector<1x32x384xf32>
    %82 = vector.shape_cast %81 : vector<1x32x384xf32> to vector<32x384xf32>
    %cst_61 = arith.constant dense<0.000000e+00> : vector<224x384xf32>
    %83 = tpu.matmul %80, %82, %cst_61 {dimension_numbers = #tpu.dot_dimension_numbers<[1], [0], [0], [1], [0, 0, 1, 1], [], []>} : vector<224x32xf32>, vector<32x384xf32>, vector<224x384xf32> -> vector<224x384xf32>
    %84 = arith.addf %79, %83 : vector<224x384xf32>
    %c16_62 = arith.constant 16 : index
    %c0_63 = arith.constant 0 : index
    %85 = vector.load %arg11[%c16_62, %c0_63] : memref<240x32xf32, #tpu.memory_space<vmem>>, vector<224x32xf32>
    %c2 = arith.constant 2 : index
    %c0_64 = arith.constant 0 : index
    %c0_65 = arith.constant 0 : index
    %86 = vector.load %arg4[%c2, %c0_64, %c0_65] : memref<3x32x384xf32, #tpu.memory_space<vmem>>, vector<1x32x384xf32>
    %87 = vector.shape_cast %86 : vector<1x32x384xf32> to vector<32x384xf32>
    %cst_66 = arith.constant dense<0.000000e+00> : vector<224x384xf32>
    %88 = tpu.matmul %85, %87, %cst_66 {dimension_numbers = #tpu.dot_dimension_numbers<[1], [0], [0], [1], [0, 0, 1, 1], [], []>} : vector<224x32xf32>, vector<32x384xf32>, vector<224x384xf32> -> vector<224x384xf32>
    %89 = arith.addf %84, %88 : vector<224x384xf32>
    %c0_67 = arith.constant 0 : index
    %c0_68 = arith.constant 0 : index
    %90 = vector.load %arg5[%c0_67, %c0_68] : memref<1x384xf32, #tpu.memory_space<vmem>>, vector<1x384xf32>
    %91 = vector.broadcast %90 : vector<1x384xf32> to vector<224x384xf32>
    %92 = arith.addf %89, %91 : vector<224x384xf32>
    %cst_69 = arith.constant 0.000000e+00 : f32
    %93 = vector.broadcast %cst_69 : f32 to vector<224x384xf32>
    %94 = arith.maximumf %92, %93 : vector<224x384xf32>
    %c8_70 = arith.constant 8 : index
    %c0_71 = arith.constant 0 : index
    %95 = vector.load %arg12[%c8_70, %c0_71] : memref<240x384xf32, #tpu.memory_space<vmem>>, vector<224x384xf32>
    tpu.vector_store %arg12[%c8_70, %c0_71], %94 {strides = array<i32>} : memref<240x384xf32, #tpu.memory_space<vmem>>, vector<224x384xf32>,
    %c0_72 = arith.constant 0 : index
    %c0_73 = arith.constant 0 : index
    %96 = vector.load %arg12[%c0_72, %c0_73] : memref<240x384xf32, #tpu.memory_space<vmem>>, vector<224x384xf32>
    %c0_74 = arith.constant 0 : index
    %c0_75 = arith.constant 0 : index
    %c0_76 = arith.constant 0 : index
    %97 = vector.load %arg6[%c0_74, %c0_75, %c0_76] : memref<3x384x256xf32, #tpu.memory_space<vmem>>, vector<1x384x256xf32>
    %98 = vector.shape_cast %97 : vector<1x384x256xf32> to vector<384x256xf32>
    %cst_77 = arith.constant dense<0.000000e+00> : vector<224x256xf32>
    %99 = tpu.matmul %96, %98, %cst_77 {dimension_numbers = #tpu.dot_dimension_numbers<[1], [0], [0], [1], [0, 0, 1, 1], [], []>} : vector<224x384xf32>, vector<384x256xf32>, vector<224x256xf32> -> vector<224x256xf32>
    %c8_78 = arith.constant 8 : index
    %c0_79 = arith.constant 0 : index
    %100 = vector.load %arg12[%c8_78, %c0_79] : memref<240x384xf32, #tpu.memory_space<vmem>>, vector<224x384xf32>
    %c1_80 = arith.constant 1 : index
    %c0_81 = arith.constant 0 : index
    %c0_82 = arith.constant 0 : index
    %101 = vector.load %arg6[%c1_80, %c0_81, %c0_82] : memref<3x384x256xf32, #tpu.memory_space<vmem>>, vector<1x384x256xf32>
    %102 = vector.shape_cast %101 : vector<1x384x256xf32> to vector<384x256xf32>
    %cst_83 = arith.constant dense<0.000000e+00> : vector<224x256xf32>
    %103 = tpu.matmul %100, %102, %cst_83 {dimension_numbers = #tpu.dot_dimension_numbers<[1], [0], [0], [1], [0, 0, 1, 1], [], []>} : vector<224x384xf32>, vector<384x256xf32>, vector<224x256xf32> -> vector<224x256xf32>
    %104 = arith.addf %99, %103 : vector<224x256xf32>
    %c16_84 = arith.constant 16 : index
    %c0_85 = arith.constant 0 : index
    %105 = vector.load %arg12[%c16_84, %c0_85] : memref<240x384xf32, #tpu.memory_space<vmem>>, vector<224x384xf32>
    %c2_86 = arith.constant 2 : index
    %c0_87 = arith.constant 0 : index
    %c0_88 = arith.constant 0 : index
    %106 = vector.load %arg6[%c2_86, %c0_87, %c0_88] : memref<3x384x256xf32, #tpu.memory_space<vmem>>, vector<1x384x256xf32>
    %107 = vector.shape_cast %106 : vector<1x384x256xf32> to vector<384x256xf32>
    %cst_89 = arith.constant dense<0.000000e+00> : vector<224x256xf32>
    %108 = tpu.matmul %105, %107, %cst_89 {dimension_numbers = #tpu.dot_dimension_numbers<[1], [0], [0], [1], [0, 0, 1, 1], [], []>} : vector<224x384xf32>, vector<384x256xf32>, vector<224x256xf32> -> vector<224x256xf32>
    %109 = arith.addf %104, %108 : vector<224x256xf32>
    %c0_90 = arith.constant 0 : index
    %c0_91 = arith.constant 0 : index
    %110 = vector.load %arg7[%c0_90, %c0_91] : memref<1x256xf32, #tpu.memory_space<vmem>>, vector<1x256xf32>
    %111 = vector.broadcast %110 : vector<1x256xf32> to vector<224x256xf32>
    %112 = arith.addf %109, %111 : vector<224x256xf32>
    %cst_92 = arith.constant 0.000000e+00 : f32
    %113 = vector.broadcast %cst_92 : f32 to vector<224x256xf32>
    %114 = arith.maximumf %112, %113 : vector<224x256xf32>
    %c8_93 = arith.constant 8 : index
    %c0_94 = arith.constant 0 : index
    %115 = vector.load %arg13[%c8_93, %c0_94] : memref<240x256xf32, #tpu.memory_space<vmem>>, vector<224x256xf32>
    tpu.vector_store %arg13[%c8_93, %c0_94], %114 {strides = array<i32>} : memref<240x256xf32, #tpu.memory_space<vmem>>, vector<224x256xf32>,
    %c0_95 = arith.constant 0 : index
    %c0_96 = arith.constant 0 : index
    %116 = vector.load %arg13[%c0_95, %c0_96] : memref<240x256xf32, #tpu.memory_space<vmem>>, vector<224x256xf32>
    %c0_97 = arith.constant 0 : index
    %c0_98 = arith.constant 0 : index
    %c0_99 = arith.constant 0 : index
    %117 = vector.load %arg8[%c0_97, %c0_98, %c0_99] : memref<3x256x32xf32, #tpu.memory_space<vmem>>, vector<1x256x32xf32>
    %118 = vector.shape_cast %117 : vector<1x256x32xf32> to vector<256x32xf32>
    %cst_100 = arith.constant dense<0.000000e+00> : vector<224x32xf32>
    %119 = tpu.matmul %116, %118, %cst_100 {dimension_numbers = #tpu.dot_dimension_numbers<[1], [0], [0], [1], [0, 0, 1, 1], [], []>} : vector<224x256xf32>, vector<256x32xf32>, vector<224x32xf32> -> vector<224x32xf32>
    %c8_101 = arith.constant 8 : index
    %c0_102 = arith.constant 0 : index
    %120 = vector.load %arg13[%c8_101, %c0_102] : memref<240x256xf32, #tpu.memory_space<vmem>>, vector<224x256xf32>
    %c1_103 = arith.constant 1 : index
    %c0_104 = arith.constant 0 : index
    %c0_105 = arith.constant 0 : index
    %121 = vector.load %arg8[%c1_103, %c0_104, %c0_105] : memref<3x256x32xf32, #tpu.memory_space<vmem>>, vector<1x256x32xf32>
    %122 = vector.shape_cast %121 : vector<1x256x32xf32> to vector<256x32xf32>
    %cst_106 = arith.constant dense<0.000000e+00> : vector<224x32xf32>
    %123 = tpu.matmul %120, %122, %cst_106 {dimension_numbers = #tpu.dot_dimension_numbers<[1], [0], [0], [1], [0, 0, 1, 1], [], []>} : vector<224x256xf32>, vector<256x32xf32>, vector<224x32xf32> -> vector<224x32xf32>
    %124 = arith.addf %119, %123 : vector<224x32xf32>
    %c16_107 = arith.constant 16 : index
    %c0_108 = arith.constant 0 : index
    %125 = vector.load %arg13[%c16_107, %c0_108] : memref<240x256xf32, #tpu.memory_space<vmem>>, vector<224x256xf32>
    %c2_109 = arith.constant 2 : index
    %c0_110 = arith.constant 0 : index
    %c0_111 = arith.constant 0 : index
    %126 = vector.load %arg8[%c2_109, %c0_110, %c0_111] : memref<3x256x32xf32, #tpu.memory_space<vmem>>, vector<1x256x32xf32>
    %127 = vector.shape_cast %126 : vector<1x256x32xf32> to vector<256x32xf32>
    %cst_112 = arith.constant dense<0.000000e+00> : vector<224x32xf32>
    %128 = tpu.matmul %125, %127, %cst_112 {dimension_numbers = #tpu.dot_dimension_numbers<[1], [0], [0], [1], [0, 0, 1, 1], [], []>} : vector<224x256xf32>, vector<256x32xf32>, vector<224x32xf32> -> vector<224x32xf32>
    %129 = arith.addf %124, %128 : vector<224x32xf32>
    %c0_113 = arith.constant 0 : index
    %c0_114 = arith.constant 0 : index
    %130 = vector.load %arg9[%c0_113, %c0_114] : memref<1x32xf32, #tpu.memory_space<vmem>>, vector<1x32xf32>
    %131 = vector.broadcast %130 : vector<1x32xf32> to vector<224x32xf32>
    %132 = arith.addf %129, %131 : vector<224x32xf32>
    %c0_115 = arith.constant 0 : index
    %c0_116 = arith.constant 0 : index
    %133 = vector.load %arg10[%c0_115, %c0_116] : memref<224x32xf32, #tpu.memory_space<vmem>>, vector<224x32xf32>
    tpu.vector_store %arg10[%c0_115, %c0_116], %132 {strides = array<i32>} : memref<224x32xf32, #tpu.memory_space<vmem>>, vector<224x32xf32>,
    return
  }
  func.func @transform_0(%arg0: i32) -> (i32, i32) {
    %c0_i32 = arith.constant 0 : i32
    %c0_i32_0 = arith.constant 0 : i32
    return %arg0, %c0_i32 : i32, i32
  }
  func.func @transform_1(%arg0: i32) -> (i32, i32) {
    %c0_i32 = arith.constant 0 : i32
    %c0_i32_0 = arith.constant 0 : i32
    %c0_i32_1 = arith.constant 0 : i32
    return %c0_i32, %c0_i32_0 : i32, i32
  }
  func.func @transform_2(%arg0: i32) -> (i32, i32) {
    %c0_i32 = arith.constant 0 : i32
    %c0_i32_0 = arith.constant 0 : i32
    %c0_i32_1 = arith.constant 0 : i32
    return %c0_i32, %c0_i32_0 : i32, i32
  }
  func.func @transform_3(%arg0: i32) -> (i32, i32, i32) {
    %c0_i32 = arith.constant 0 : i32
    %c0_i32_0 = arith.constant 0 : i32
    %c0_i32_1 = arith.constant 0 : i32
    %c0_i32_2 = arith.constant 0 : i32
    return %c0_i32, %c0_i32_0, %c0_i32_1 : i32, i32, i32
  }
  func.func @transform_4(%arg0: i32) -> (i32, i32) {
    %c0_i32 = arith.constant 0 : i32
    %c0_i32_0 = arith.constant 0 : i32
    %c0_i32_1 = arith.constant 0 : i32
    return %c0_i32, %c0_i32_0 : i32, i32
  }
  func.func @transform_5(%arg0: i32) -> (i32, i32, i32) {
    %c0_i32 = arith.constant 0 : i32
    %c0_i32_0 = arith.constant 0 : i32
    %c0_i32_1 = arith.constant 0 : i32
    %c0_i32_2 = arith.constant 0 : i32
    return %c0_i32, %c0_i32_0, %c0_i32_1 : i32, i32, i32
  }
  func.func @transform_6(%arg0: i32) -> (i32, i32) {
    %c0_i32 = arith.constant 0 : i32
    %c0_i32_0 = arith.constant 0 : i32
    %c0_i32_1 = arith.constant 0 : i32
    return %c0_i32, %c0_i32_0 : i32, i32
  }
  func.func @transform_7(%arg0: i32) -> (i32, i32, i32) {
    %c0_i32 = arith.constant 0 : i32
    %c0_i32_0 = arith.constant 0 : i32
    %c0_i32_1 = arith.constant 0 : i32
    %c0_i32_2 = arith.constant 0 : i32
    return %c0_i32, %c0_i32_0, %c0_i32_1 : i32, i32, i32
  }
  func.func @transform_8(%arg0: i32) -> (i32, i32) {
    %c0_i32 = arith.constant 0 : i32
    %c0_i32_0 = arith.constant 0 : i32
    %c0_i32_1 = arith.constant 0 : i32
    return %c0_i32, %c0_i32_0 : i32, i32
  }
  func.func @transform_9(%arg0: i32) -> (i32, i32) {
    %c0_i32 = arith.constant 0 : i32
    %c0_i32_0 = arith.constant 0 : i32
    return %arg0, %c0_i32 : i32, i32
  }
}

</mosaic_0001>

<bundles_post_ra>
// kernel: generator_forward.1
= control target key start
LH: loop header
LB: loop body
LE: loop exit
PB: predicated region body
PF: predicated region fallthrough
CT: control target
= control target key end

     0   :  { %14 = vsyncpa [#allocation6], 0  ;;  %s9960_s0 = inlined_call_operand.vmem [shape: f32[8,100], index: 0, kind: input, shape index: {}]   ;;  %s9961_s1 = inlined_call_operand.hbm [shape: f32[100,896], index: 1, kind: input, shape index: {}]   ;;  %s9962_s2 = inlined_call_operand.hbm [shape: f32[1,896], index: 2, kind: input, shape index: {}]   ;;  %s9963_s3 = inlined_call_operand.hbm [shape: f32[3,32,384], index: 3, kind: input, shape index: {}]   ;;  %s9964_s4 = inlined_call_operand.hbm [shape: f32[1,384], index: 4, kind: input, shape index: {}]   ;;  %s9965_s5 = inlined_call_operand.hbm [shape: f32[3,384,256], index: 5, kind: input, shape index: {}]   ;;  %s9966_s6 = inlined_call_operand.hbm [shape: f32[1,256], index: 6, kind: input, shape index: {}]   ;;  %s9967_s7 = inlined_call_operand.vmem [shape: f32[3,256,32], index: 7, kind: input, shape index: {}]   ;;  %s9968_s8 = inlined_call_operand.hbm [shape: f32[1,32], index: 8, kind: input, shape index: {}]   ;;  %s9969_s9 = inlined_call_operand.vmem [shape: f32[224,32], index: 9, kind: output, shape index: {}]  }
   0x1   :  { %15 = vsyncpa [#allocation8], 0 }
   0x2   :  { %16 = vsyncpa [#allocation11], 0 }
   0x3   :  { %17 = vsyncpa [#allocation14], 0  ;;  %s7378_s30 = smov [#allocation7]   ;;  %s7379_s11 = smov [#allocation10]  }
   0x4   :  { %s38_s10 = sshll.u32 %s7378_s30, 4  ;;  %s60_s12 = sshll.u32 %s7379_s11, 4  ;;  %s39_s10 = int_to_ptr.vmem [resolvable:$true] %s38_s10  ;;  %s61_s12 = int_to_ptr.vmem [resolvable:$true] %s60_s12 }
   0x5   :  { %s7216_s15 = scalar_lea.hbm %s9962_s2, 112 }
   0x6   :  { %p7217_p0 = scmp.ne.s32.totalorder %s9962_s2, %s7216_s15  ;;  %p7220_p1 = scmp.lt.u32.totalorder %s7216_s15, %s9962_s2 }
   0x8   :  { %p7222_p2 = pnand %p7220_p1, %p7217_p0 }
   0xa   :  { %7225 = shalt.err (!%p7222_p2)
}
   0xb   :  { %s7226_s20 = scalar_lea.vmem %s39_s10, 112  ;;  %s7230_s21 = scalar_lea.vmem %s39_s10, 128 }
   0xc   :  { %p7227_p3 = scmp.ne.s32.totalorder %s39_s10, %s7226_s20  ;;  %p7231_p4 = scmp.lt.s32.totalorder %s39_s10, %s39_s10 }
   0xd   :  { %p7232_p5 = scmp.lt.s32.totalorder %s7230_s21, %s7226_s20 }
   0xf   :  { %p7233_p6 = por %p7232_p5, %p7231_p4 }
  0x11   :  { %p7234_p7 = pnand %p7233_p6, %p7227_p3 }
  0x13   :  { %7237 = shalt.err (!%p7234_p7)
}
  0x14   :  { %41 = dma.hbm_to_vmem [thread:$0]  %s9962_s2, 112, %s39_s10, [#allocation8]  }
  0x15   :  { %s7238_s26 = scalar_lea.hbm %s9964_s4, 48 }
  0x16   :  { %p7239_p8 = scmp.ne.s32.totalorder %s9964_s4, %s7238_s26  ;;  %p7242_p9 = scmp.lt.u32.totalorder %s7238_s26, %s9964_s4 }
  0x18   :  { %p7244_p10 = pnand %p7242_p9, %p7239_p8 }
  0x1a   :  { %7247 = shalt.err (!%p7244_p10)
}
  0x1b   :  { %s7248_s11 = scalar_lea.vmem %s61_s12, 48  ;;  %s7252_s13 = scalar_lea.vmem %s61_s12, 64 }
  0x1c   :  { %p7249_p11 = scmp.ne.s32.totalorder %s61_s12, %s7248_s11  ;;  %p7253_p12 = scmp.lt.s32.totalorder %s61_s12, %s61_s12 }
  0x1d   :  { %p7254_p13 = scmp.lt.s32.totalorder %s7252_s13, %s7248_s11 }
  0x1f   :  { %p7255_p0 = por %p7254_p13, %p7253_p12 }
  0x21   :  { %p7256_p1 = pnand %p7255_p0, %p7249_p11 }
  0x23   :  { %7259 = shalt.err (!%p7256_p1)
}
  0x24   :  { %63 = dma.hbm_to_vmem [thread:$0]  %s9964_s4, 48, %s61_s12, [#allocation11]  }
  0x25   :  { %s7380_s14 = smov [#allocation13]   ;;  %s7381_s16 = smov [#allocation5]  }
  0x26   :  { %s82_s15 = sshll.u32 %s7380_s14, 4  ;;  %s25_s17 = sshll.u32 %s7381_s16, 4  ;;  %s83_s15 = int_to_ptr.vmem [resolvable:$true] %s82_s15  ;;  %s7471_s17 = int_to_ptr.vmem [resolvable:$true] %s25_s17 }
  0x27   :  { %s7260_s20 = scalar_lea.hbm %s9966_s6, 32 }
  0x28   :  { %p7261_p2 = scmp.ne.s32.totalorder %s9966_s6, %s7260_s20  ;;  %p7264_p3 = scmp.lt.u32.totalorder %s7260_s20, %s9966_s6 }
  0x2a   :  { %p7266_p4 = pnand %p7264_p3, %p7261_p2 }
  0x2c   :  { %7269 = shalt.err (!%p7266_p4)
}
  0x2d   :  { %s7270_s4 = scalar_lea.vmem %s83_s15, 32  ;;  %p7275_p6 = scmp.lt.s32.totalorder %s83_s15, %s83_s15 }
  0x2e   :  { %p7271_p5 = scmp.ne.s32.totalorder %s83_s15, %s7270_s4  ;;  %p7276_p7 = scmp.lt.s32.totalorder %s7270_s4, %s7270_s4 }
  0x30   :  { %p7277_p8 = por %p7276_p7, %p7275_p6 }
  0x32   :  { %p7278_p9 = pnand %p7277_p8, %p7271_p5 }
  0x34   :  { %7281 = shalt.err (!%p7278_p9)
}
  0x35   :  { %85 = dma.hbm_to_vmem [thread:$0]  %s9966_s6, 32, %s83_s15, [#allocation14]  }
  0x36   :  { %s7282_s28 = scalar_lea.hbm %s9961_s1, 11648 }
  0x37   :  { %p7283_p10 = scmp.ne.s32.totalorder %s9961_s1, %s7282_s28  ;;  %p7286_p11 = scmp.lt.u32.totalorder %s7282_s28, %s9961_s1 }
  0x39   :  { %p7288_p12 = pnand %p7286_p11, %p7283_p10 }
  0x3b   :  { %7291 = shalt.err (!%p7288_p12)
}
  0x3c   :  { %s7292_s2 = scalar_lea.vmem %s7471_s17, 11648  ;;  %p7297_p0 = scmp.lt.s32.totalorder %s7471_s17, %s7471_s17 }
  0x3d   :  { %p7293_p13 = scmp.ne.s32.totalorder %s7471_s17, %s7292_s2  ;;  %p7298_p1 = scmp.lt.s32.totalorder %s7292_s2, %s7292_s2 }
  0x3f   :  { %p7299_p2 = por %p7298_p1, %p7297_p0 }
  0x41   :  { %p7300_p3 = pnand %p7299_p2, %p7293_p13 }
  0x43   :  { %7303 = shalt.err (!%p7300_p3)
}
  0x44   :  { %s7382_s6 = smov 896   ;;  %s7383_s10 = smov 56  }
  0x45   :  { %31 = dma.hbm_to_vmem [thread:$0]  %s9961_s1, 11648, %s7471_s17, [#allocation6], %s7382_s6, %s7382_s6, %s7383_s10  }
  0x46   :  { %s7384_s16 = smov [#allocation9]   ;;  %s7304_s21 = scalar_lea.hbm %s9963_s3, 4608 }
  0x47   :  { %s47_s18 = sshll.u32 %s7384_s16, 4  ;;  %p7305_p4 = scmp.ne.s32.totalorder %s9963_s3, %s7304_s21  ;;  %s48_s18 = int_to_ptr.vmem [resolvable:$true] %s47_s18 }
  0x48   :  { %p7308_p5 = scmp.lt.u32.totalorder %s7304_s21, %s9963_s3 }
  0x4a   :  { %p7310_p6 = pnand %p7308_p5, %p7305_p4 }
  0x4c   :  { %7313 = shalt.err (!%p7310_p6)
}
  0x4d   :  { %s7314_s12 = scalar_lea.vmem %s48_s18, 4608  ;;  %p7319_p8 = scmp.lt.s32.totalorder %s48_s18, %s48_s18 }
  0x4e   :  { %p7315_p7 = scmp.ne.s32.totalorder %s48_s18, %s7314_s12  ;;  %p7320_p9 = scmp.lt.s32.totalorder %s7314_s12, %s7314_s12 }
  0x50   :  { %p7321_p10 = por %p7320_p9, %p7319_p8 }
  0x52   :  { %p7322_p11 = pnand %p7321_p10, %p7315_p7 }
  0x54   :  { %7325 = shalt.err (!%p7322_p11)
}
  0x55   :  { %s7385_s1 = smov 384   ;;  %s7386_s17 = smov 24  }
  0x56   :  { %53 = dma.hbm_to_vmem [thread:$0]  %s9963_s3, 4608, %s48_s18, [#allocation8], %s7385_s1, %s7385_s1, %s7386_s17  }
  0x57   :  { %s7387_s27 = smov [#allocation12]   ;;  %s7326_s11 = scalar_lea.hbm %s9965_s5, 36864 }
  0x58   :  { %s69_s28 = sshll.u32 %s7387_s27, 4  ;;  %p7327_p12 = scmp.ne.s32.totalorder %s9965_s5, %s7326_s11  ;;  %s70_s28 = int_to_ptr.vmem [resolvable:$true] %s69_s28 }
  0x59   :  { %p7330_p13 = scmp.lt.u32.totalorder %s7326_s11, %s9965_s5 }
  0x5b   :  { %p7332_p0 = pnand %p7330_p13, %p7327_p12 }
  0x5d   :  { %7335 = shalt.err (!%p7332_p0)
}
  0x5e   :  { %s7336_s14 = scalar_lea.vmem %s70_s28, 36864  ;;  %p7341_p2 = scmp.lt.s32.totalorder %s70_s28, %s70_s28 }
  0x5f   :  { %p7337_p1 = scmp.ne.s32.totalorder %s70_s28, %s7336_s14  ;;  %p7342_p3 = scmp.lt.s32.totalorder %s7336_s14, %s7336_s14 }
  0x61   :  { %p7343_p4 = por %p7342_p3, %p7341_p2 }
  0x63   :  { %p7344_p5 = pnand %p7343_p4, %p7337_p1 }
  0x65   :  { %7347 = shalt.err (!%p7344_p5)
}
  0x66   :  { %s7388_s3 = smov 256   ;;  %s7389_s15 = smov 16  }
  0x67   :  { %75 = dma.hbm_to_vmem [thread:$0]  %s9965_s5, 36864, %s70_s28, [#allocation11], %s7388_s3, %s7388_s3, %s7389_s15  }
  0x68   :  { %s7390_s19 = smov [#allocation15]   ;;  %s7348_s23 = scalar_lea.hbm %s9968_s8, 16 }
  0x69   :  { %s94_s20 = sshll.u32 %s7390_s19, 4  ;;  %p7349_p6 = scmp.ne.s32.totalorder %s9968_s8, %s7348_s23  ;;  %s95_s20 = int_to_ptr.vmem [resolvable:$true] %s94_s20 }
  0x6a   :  { %p7352_p7 = scmp.lt.u32.totalorder %s7348_s23, %s9968_s8 }
  0x6c   :  { %p7354_p8 = pnand %p7352_p7, %p7349_p6 }
  0x6e   :  { %7357 = shalt.err (!%p7354_p8)
}
  0x6f   :  { %s7358_s17 = scalar_lea.vmem %s95_s20, 16  ;;  %s7362_s5 = scalar_lea.vmem %s95_s20, 32 }
  0x70   :  { %p7359_p9 = scmp.ne.s32.totalorder %s95_s20, %s7358_s17  ;;  %p7363_p10 = scmp.lt.s32.totalorder %s95_s20, %s95_s20 }
  0x71   :  { %p7364_p11 = scmp.lt.s32.totalorder %s7362_s5, %s7358_s17 }
  0x73   :  { %p7365_p12 = por %p7364_p11, %p7363_p10 }
  0x75   :  { %p7366_p13 = pnand %p7365_p12, %p7359_p9 }
  0x77   :  { %7369 = shalt.err (!%p7366_p13)
}
  0x78   :  { %97 = dma.hbm_to_vmem [thread:$0]  %s9968_s8, 16, %s95_s20, [#allocation14]  }
  0x79   :  { %7370 = dma.done.wait [#allocation6], 11648  }
  0x7a   :  { %7371 = vsyncadd [#allocation6], 4294955648 }
  0x7b   :  { %7372 = dma.done.wait [#allocation8], 4720  }
  0x7c   :  { %7373 = vsyncadd [#allocation8], 4294962576 }
  0x7d   :  { %7374 = dma.done.wait [#allocation11], 36912  }
  0x7e   :  { %7375 = vsyncadd [#allocation11], 4294930384 }
  0x7f   :  { %7376 = dma.done.wait [#allocation14], 48  }
  0x80   :  { %7377 = vsyncadd [#allocation14], 4294967248  ;;  %v9972_v0 = vmov 0.0   ;;  %vm119_vm0 = vcmask 261120   ;;  %v134_v1 = vld [vmem:[#allocation5 + $0x8] sm:$0xff]  ;;  %v141_v2 = vld [vmem:[#allocation5 + $0x40] sm:$0xff] }
  0x81   :  { %351 = vmatprep.mubr.f32.mxu0 %v9972_v0  ;;  %422 = vmatprep.mubr.f32.mxu1 %v9972_v0  ;;  %120 = vst.msk [vmem:[#allocation2] sm:$0xff] %vm119_vm0, %v9972_v0  ;;  %121 = vst.msk [vmem:[#allocation2 + $0xe8] sm:$0xff] %vm119_vm0, %v9972_v0  ;;  %v133_v3 = vld [vmem:[#allocation5] sm:$0xff]  ;;  %v6162_v4 = vpack.c.bf16 %v141_v2, %v134_v1  ;;  %v140_v5 = vld [vmem:[#allocation5 + $0x38] sm:$0xff]  ;;  %vm265_vm1 = vcmask 1043456   ;;  %vm261_vm2 = vcmask 818176  }
  0x82   :  { %v148_v6 = vld [vmem:[#allocation5 + $0x78] sm:$0xff]  ;;  %v155_v7 = vld [vmem:[#allocation5 + $0xb0] sm:$0xff]  ;;  %v6164_v8 = vpack.c.bf16 %v140_v5, %v133_v3  ;;  %v154_v11 = vld [vmem:[#allocation5 + $0xa8] sm:$0xff]  ;;  %vm7393_vm3 = vmmov 0   ;;  %s7395_s28 = smov 96   ;;  %s7396_s29 = smov 64  }
  0x83   :  { %v6166_v9 = vpack.c.bf16 %v155_v7, %v148_v6  ;;  %v147_v10 = vld [vmem:[#allocation5 + $0x70] sm:$0xff]  ;;  %v162_v12 = vld [vmem:[#allocation5 + $0xe8] sm:$0xff]  ;;  %6163 = vmatprep.subr.bf16.mxu0 %v6162_v4  ;;  %v169_v13 = vld [vmem:[#allocation5 + $0x120] sm:$0xff] }
  0x84   :  { %6165 = vmatpush1.bf16.msra.mxu0 %v6164_v8  ;;  %v6168_v14 = vpack.c.bf16 %v154_v11, %v147_v10  ;;  %v6170_v15 = vpack.c.bf16 %v169_v13, %v162_v12  ;;  %v161_v16 = vld [vmem:[#allocation5 + $0xe0] sm:$0xff]  ;;  %v168_v17 = vld [vmem:[#allocation5 + $0x118] sm:$0xff]  ;;  %v183_v19 = vld [vmem:[#allocation5 + $0x190] sm:$0xff] }
  0x85   :  { %6167 = vmatprep.subr.bf16.mxu0 %v6166_v9  ;;  %v176_v18 = vld [vmem:[#allocation5 + $0x158] sm:$0xff]  ;;  %v143_v21 = vld [vmem:[#allocation5 + $0x50] sm:$0xff]  ;;  %v142_v23 = vld [vmem:[#allocation5 + $0x48] sm:$0xff]  ;;  %v6172_v24 = vpack.c.bf16 %v168_v17, %v161_v16 }
  0x86   :  { %v136_v20 = vld [vmem:[#allocation5 + $0x18] sm:$0xff]  ;;  %v135_v22 = vld [vmem:[#allocation5 + $0x10] sm:$0xff]  ;;  %v182_v26 = vld [vmem:[#allocation5 + $0x188] sm:$0xff]  ;;  %v6174_v29 = vpack.c.bf16 %v183_v19, %v176_v18 }
  0x87   :  { %v175_v25 = vld [vmem:[#allocation5 + $0x150] sm:$0xff]  ;;  %v6186_v27 = vpack.c.bf16 %v143_v21, %v136_v20  ;;  %v6188_v28 = vpack.c.bf16 %v142_v23, %v135_v22  ;;  %v190_v30 = vld [vmem:[#allocation5 + $0x1c8] sm:$0xff]  ;;  %v157_v32 = vld [vmem:[#allocation5 + $0xc0] sm:$0xff] }
  0x88   :  { %6169 = vmatpush1.bf16.msra.mxu0 %v6168_v14  ;;  %v150_v31 = vld [vmem:[#allocation5 + $0x88] sm:$0xff]  ;;  %v197_v33 = vld [vmem:[#allocation5 + $0x200] sm:$0xff]  ;;  %v156_v36 = vld [vmem:[#allocation5 + $0xb8] sm:$0xff]  ;;  %v6176_v40 = vpack.c.bf16 %v182_v26, %v175_v25 }
  0x89   :  { %6171 = vmatprep.subr.bf16.mxu0 %v6170_v15  ;;  %6187 = vmatprep.subr.bf16.mxu1 %v6186_v27  ;;  %v6190_v34 = vpack.c.bf16 %v157_v32, %v150_v31  ;;  %v149_v35 = vld [vmem:[#allocation5 + $0x80] sm:$0xff]  ;;  %v164_v38 = vld [vmem:[#allocation5 + $0xf8] sm:$0xff]  ;;  %v171_v39 = vld [vmem:[#allocation5 + $0x130] sm:$0xff]  ;;  %v6178_v45 = vpack.c.bf16 %v197_v33, %v190_v30 }
  0x8a   :  { %6189 = vmatpush1.bf16.msra.mxu1 %v6188_v28  ;;  %v6192_v37 = vpack.c.bf16 %v156_v36, %v149_v35  ;;  %v189_v41 = vld [vmem:[#allocation5 + $0x1c0] sm:$0xff]  ;;  %v6194_v42 = vpack.c.bf16 %v171_v39, %v164_v38  ;;  %v163_v43 = vld [vmem:[#allocation5 + $0xf0] sm:$0xff]  ;;  %v170_v44 = vld [vmem:[#allocation5 + $0x128] sm:$0xff] }
  0x8b   :  { %6191 = vmatprep.subr.bf16.mxu1 %v6190_v34  ;;  %v196_v46 = vld [vmem:[#allocation5 + $0x1f8] sm:$0xff]  ;;  %v178_v47 = vld [vmem:[#allocation5 + $0x168] sm:$0xff]  ;;  %v185_v48 = vld [vmem:[#allocation5 + $0x1a0] sm:$0xff]  ;;  %v6196_v51 = vpack.c.bf16 %v170_v44, %v163_v43 }
  0x8c   :  { %6173 = vmatpush1.bf16.msra.mxu0 %v6172_v24  ;;  %v204_v49 = vld [vmem:[#allocation5 + $0x238] sm:$0xff]  ;;  %v211_v50 = vld [vmem:[#allocation5 + $0x270] sm:$0xff]  ;;  %v6180_v52 = vpack.c.bf16 %v196_v46, %v189_v41  ;;  %v6198_v54 = vpack.c.bf16 %v185_v48, %v178_v47  ;;  %v177_v55 = vld [vmem:[#allocation5 + $0x160] sm:$0xff] }
  0x8d   :  { %6175 = vmatprep.subr.bf16.mxu0 %v6174_v29  ;;  %v203_v53 = vld [vmem:[#allocation5 + $0x230] sm:$0xff]  ;;  %v184_v56 = vld [vmem:[#allocation5 + $0x198] sm:$0xff]  ;;  %v6182_v57 = vpack.c.bf16 %v211_v50, %v204_v49  ;;  %v210_v58 = vld [vmem:[#allocation5 + $0x268] sm:$0xff] }
  0x8e   :  { %6193 = vmatpush1.bf16.msra.mxu1 %v6192_v37  ;;  %v192_v59 = vld [vmem:[#allocation5 + $0x1d8] sm:$0xff]  ;;  %v199_v60 = vld [vmem:[#allocation5 + $0x210] sm:$0xff]  ;;  %v6200_v61 = vpack.c.bf16 %v184_v56, %v177_v55  ;;  %v6184_v62 = vpack.c.bf16 %v210_v58, %v203_v53  ;;  %v198_v2 = vld [vmem:[#allocation5 + $0x208] sm:$0xff] }
  0x8f   :  { %6195 = vmatprep.subr.bf16.mxu1 %v6194_v42  ;;  %v6202_v63 = vpack.c.bf16 %v199_v60, %v192_v59  ;;  %v191_v1 = vld [vmem:[#allocation5 + $0x1d0] sm:$0xff]  ;;  %v206_v3 = vld [vmem:[#allocation5 + $0x248] sm:$0xff]  ;;  %v213_v4 = vld [vmem:[#allocation5 + $0x280] sm:$0xff] }
  0x90   :  { %6177 = vmatpush1.bf16.msra.mxu0 %v6176_v40  ;;  %v218_v5 = vld [vmem:[#allocation5 + $0x2a8] sm:$0xf]  ;;  %v145_v7 = vld [vmem:[#allocation5 + $0x60] sm:$0xff]  ;;  %v6204_v8 = vpack.c.bf16 %v198_v2, %v191_v1  ;;  %v144_v10 = vld [vmem:[#allocation5 + $0x58] sm:$0xff]  ;;  %v6206_v12 = vpack.c.bf16 %v213_v4, %v206_v3 }
  0x91   :  { %6179 = vmatprep.subr.bf16.mxu0 %v6178_v45  ;;  %v138_v6 = vld [vmem:[#allocation5 + $0x28] sm:$0xff]  ;;  %v137_v9 = vld [vmem:[#allocation5 + $0x20] sm:$0xff]  ;;  %v152_v11 = vld [vmem:[#allocation5 + $0x98] sm:$0xff]  ;;  %v9970_v45 = vmov 0.0|0.0  }
  0x92   :  { %6197 = vmatpush1.bf16.msra.mxu1 %v6196_v51  ;;  %v159_v13 = vld [vmem:[#allocation5 + $0xd0] sm:$0xff]  ;;  %v205_v14 = vld [vmem:[#allocation5 + $0x240] sm:$0xff]  ;;  %v212_v15 = vld [vmem:[#allocation5 + $0x278] sm:$0xff]  ;;  %v6210_v17 = vpack.c.bf16 %v145_v7, %v138_v6  ;;  %v6212_v19 = vpack.c.bf16 %v144_v10, %v137_v9  ;;  %v226_v10 = vlaneseq }
  0x93   :  { %6199 = vmatprep.subr.bf16.mxu1 %v6198_v54  ;;  %v217_v16 = vld [vmem:[#allocation5 + $0x2a0] sm:$0xf]  ;;  %v7548_v18 = vld [vmem:[%s9960_s0] sm:$0xff]  ;;  %v6214_v20 = vpack.c.bf16 %v159_v13, %v152_v11  ;;  %v6208_v21 = vpack.c.bf16 %v212_v15, %v205_v14  ;;  %v158_v23 = vld [vmem:[#allocation5 + $0xc8] sm:$0xff]  ;;  %s7394_s0 = smov 32  }
  0x94   :  { %6181 = vmatpush1.bf16.msra.mxu0 %v6180_v52  ;;  %v151_v22 = vld [vmem:[#allocation5 + $0x90] sm:$0xff]  ;;  %v166_v24 = vld [vmem:[#allocation5 + $0x108] sm:$0xff]  ;;  %v173_v25 = vld [vmem:[#allocation5 + $0x140] sm:$0xff]  ;;  %v7574_v11 = vshrl.u32 %v226_v10, 7 }
  0x95   :  { %6183 = vmatprep.subr.bf16.mxu0 %v6182_v57  ;;  %v220_v26 = vld [vmem:[#allocation5 + $0x2b8] sm:$0xf]  ;;  %v6216_v27 = vpack.c.bf16 %v158_v23, %v151_v22  ;;  %v139_v28 = vld [vmem:[#allocation5 + $0x30] sm:$0xff]  ;;  %v146_v29 = vld [vmem:[#allocation5 + $0x68] sm:$0xff]  ;;  %v6218_v30 = vpack.c.bf16 %v173_v25, %v166_v24 }
  0x96   :  { %6201 = vmatpush1.bf16.msra.mxu1 %v6200_v61  ;;  %v165_v31 = vld [vmem:[#allocation5 + $0x100] sm:$0xff]  ;;  %v172_v32 = vld [vmem:[#allocation5 + $0x138] sm:$0xff]  ;;  %v219_v33 = vld [vmem:[#allocation5 + $0x2b0] sm:$0xf]  ;;  %v6235_v36 = vpack.c.bf16 %v146_v29, %v139_v28 }
  0x97   :  { %6203 = vmatprep.subr.bf16.mxu1 %v6202_v63  ;;  %v180_v34 = vld [vmem:[#allocation5 + $0x178] sm:$0xff]  ;;  %v187_v35 = vld [vmem:[#allocation5 + $0x1b0] sm:$0xff]  ;;  %v6220_v37 = vpack.c.bf16 %v172_v32, %v165_v31  ;;  %v153_v38 = vld [vmem:[#allocation5 + $0xa0] sm:$0xff]  ;;  %v7583_v32 = vsub.s32 0, %v7574_v11 }
  0x98   :  { %6185 = vmatpush1.bf16.msra.mxu0 %v6184_v62  ;;  %v160_v39 = vld [vmem:[#allocation5 + $0xd8] sm:$0xff]  ;;  %v6222_v40 = vpack.c.bf16 %v187_v35, %v180_v34  ;;  %v179_v41 = vld [vmem:[#allocation5 + $0x170] sm:$0xff]  ;;  %v186_v42 = vld [vmem:[#allocation5 + $0x1a8] sm:$0xff] }
  0x99   :  { %5629 = vmatprep.subr.msk.mxu0 %vm265_vm1, %v218_v5  ;;  %v194_v43 = vld [vmem:[#allocation5 + $0x1e8] sm:$0xff]  ;;  %v201_v44 = vld [vmem:[#allocation5 + $0x220] sm:$0xff]  ;;  %v6238_v46 = vpack.c.bf16 %v160_v39, %v153_v38  ;;  %v6224_v47 = vpack.c.bf16 %v186_v42, %v179_v41  ;;  %v167_v48 = vld [vmem:[#allocation5 + $0x110] sm:$0xff]  ;;  %10080 = vst [vmem:[#allocation21_spill] sm:$0xff] %v7583_v32  ;;  %v236_v41 = vsub.s32 2, %v7574_v11 }
  0x9a   :  { %6205 = vmatpush1.bf16.msra.mxu1 %v6204_v8  ;;  %v174_v49 = vld [vmem:[#allocation5 + $0x148] sm:$0xff]  ;;  %v6226_v50 = vpack.c.bf16 %v201_v44, %v194_v43  ;;  %v193_v51 = vld [vmem:[#allocation5 + $0x1e0] sm:$0xff]  ;;  %v200_v52 = vld [vmem:[#allocation5 + $0x218] sm:$0xff]  ;;  %v240_v44 = vsub.s32 3, %v7574_v11 }
  0x9b   :  { %6207 = vmatprep.subr.bf16.mxu1 %v6206_v12  ;;  %v208_v53 = vld [vmem:[#allocation5 + $0x258] sm:$0xff]  ;;  %v215_v54 = vld [vmem:[#allocation5 + $0x290] sm:$0xff]  ;;  %v6241_v55 = vpack.c.bf16 %v174_v49, %v167_v48  ;;  %v6228_v56 = vpack.c.bf16 %v200_v52, %v193_v51  ;;  %v181_v57 = vld [vmem:[#allocation5 + $0x180] sm:$0xff] }
  0x9c   :  { %5630 = vmatpush1.msk.msra.mxu0 %vm265_vm1, %v217_v16  ;;  %v188_v58 = vld [vmem:[#allocation5 + $0x1b8] sm:$0xff]  ;;  %v6230_v59 = vpack.c.bf16 %v215_v54, %v208_v53  ;;  %v207_v60 = vld [vmem:[#allocation5 + $0x250] sm:$0xff]  ;;  %v214_v61 = vld [vmem:[#allocation5 + $0x288] sm:$0xff] }
  0x9d   :  { %5631 = vmatmul.mubr.msk.f32.vlgmr.msra.gmra.mrb[0].mxu0 %vm261_vm2, %v7548_v18  ;;  %6211 = vmatprep.subr.bf16.mxu0 %v6210_v17  ;;  %v6244_v62 = vpack.c.bf16 %v188_v58, %v181_v57  ;;  %v6232_v63 = vpack.c.bf16 %v214_v61, %v207_v60  ;;  %v195_v1 = vld [vmem:[#allocation5 + $0x1f0] sm:$0xff]  ;;  %v202_v2 = vld [vmem:[#allocation5 + $0x228] sm:$0xff]  ;;  %v209_v5 = vld [vmem:[#allocation5 + $0x260] sm:$0xff]  ;;  %v7577_v17 = vsub.s32 1, %v7574_v11  ;;  %v244_v61 = vsub.s32 4, %v7574_v11 }
  0x9e   :  { %6213 = vmatpush1.bf16.msra.mxu0 %v6212_v19  ;;  %493 = vmatprep.mubr.f32.mxu0 %v9972_v0  ;;  %v222_v3 = vld [vmem:[#allocation5 + $0x2c8] sm:$0xf]  ;;  %v6247_v4 = vpack.c.bf16 %v202_v2, %v195_v1  ;;  %v216_v6 = vld [vmem:[#allocation5 + $0x298] sm:$0xff]  ;;  %v221_v7 = vld [vmem:[#allocation5 + $0x2c0] sm:$0xf] }
  0x9f   :  { %6215 = vmatprep.subr.bf16.mxu0 %v6214_v20  ;;  %6209 = vmatpush1.bf16.msra.mxu1 %v6208_v21  ;;  %v6250_v8 = vpack.c.bf16 %v216_v6, %v209_v5  ;;  %v223_v9 = vld [vmem:[#allocation5 + $0x2d0] sm:$0xf]  ;;  %v718_v12 = vld [vmem:[#allocation9 + $0x68] sm:$0xff]  ;;  %v721_v13 = vld [vmem:[#allocation9 + $0x80] sm:$0xff]  ;;  %10079 = vst [vmem:[#allocation20_spill] sm:$0xff] %v7577_v17 }
  0xa0   :  { %5632 = vmatprep.subr.msk.mxu1 %vm265_vm1, %v220_v26  ;;  %v6252_v14 = vpack.c.bf16 %v721_v13, %v718_v12  ;;  %v717_v15 = vld [vmem:[#allocation9 + $0x60] sm:$0xff]  ;;  %v720_v16 = vld [vmem:[#allocation9 + $0x78] sm:$0xff]  ;;  %v723_v24 = vld [vmem:[#allocation9 + $0x90] sm:$0xff] }
  0xa1   :  { %v6254_v19 = vpack.c.bf16 %v720_v16, %v717_v15  ;;  %v2339_v20 = vld [vmem:[#allocation10] sm:$0x7]  ;;  %v724_v22 = vld [vmem:[#allocation9 + $0x98] sm:$0xff]  ;;  %v726_v25 = vld [vmem:[#allocation9 + $0xa8] sm:$0xff] }
  0xa2   :  { %6217 = vmatpush1.bf16.msra.mxu0 %v6216_v27  ;;  %v7580_v21 = vrot.slane %v2339_v20, %v7577_v17  ;;  %v6258_v26 = vpack.c.bf16 %v726_v25, %v723_v24  ;;  %v719_v27 = vld [vmem:[#allocation9 + $0x70] sm:$0xff]  ;;  %v722_v28 = vld [vmem:[#allocation9 + $0x88] sm:$0xff]  ;;  %v707_v31 = vld [vmem:[#allocation9 + $0x20] sm:$0xff] }
  0xa3   :  { %6219 = vmatprep.subr.bf16.mxu0 %v6218_v30  ;;  %5633 = vmatpush1.msk.msra.mxu1 %vm265_vm1, %v219_v33  ;;  %v6260_v29 = vpack.c.bf16 %v722_v28, %v719_v27  ;;  %v704_v30 = vld [vmem:[#allocation9 + $0x8] sm:$0xff]  ;;  %v7585_v34 = vld [vmem:[#allocation7] sm:$0xff]  ;;  %v725_v35 = vld [vmem:[#allocation9 + $0xa0] sm:$0xff] }
  0xa4   :  { %5634 = vmatmul.mubr.msk.f32.vlgmr.msra.gmra.mrb[0].mxu1 %vm261_vm2, %v7548_v18  ;;  %6234 = vmatprep.subr.bf16.mxu1 %v9970_v45  ;;  %v6268_v33 = vpack.c.bf16 %v707_v31, %v704_v30  ;;  %v229_v38 = vrot.slane %v7585_v34, %v7583_v32  ;;  %v233_v39 = vrot.slane %v7585_v34, %v7577_v17  ;;  %v703_v54 = vld [vmem:[#allocation9] sm:$0xff]  ;;  %v705_v15 = vld [vmem:[#allocation9 + $0x10] sm:$0xff]  ;;  %v708_v16 = vld [vmem:[#allocation9 + $0x28] sm:$0xff] }
  0xa5   :  { %6236 = vmatpush3.bf16.msra.mxu1 %v6235_v36  ;;  %6009 = vmatprep.mubr.msk.f32.mxu1 %vm7393_vm3, %v9972_v0  ;;  %v728_v36 = vld [vmem:[#allocation9 + $0xb8] sm:$0xff]  ;;  %v237_v49 = vrot.slane %v7585_v34, %v236_v41  ;;  %v712_v24 = vld [vmem:[#allocation9 + $0x48] sm:$0xff]  ;;  %v1725_v27 = vld [vmem:[#allocation9 + $0xe0] sm:$0xff] }
  0xa6   :  { %6221 = vmatpush1.bf16.msra.mxu0 %v6220_v37  ;;  %6237 = vmatprep.subr.bf16.mxu1 %v9970_v45  ;;  %v6264_v37 = vpack.c.bf16 %v728_v36, %v725_v35  ;;  %v710_v20 = vld [vmem:[#allocation9 + $0x38] sm:$0xff] }
  0xa7   :  { %6223 = vmatprep.subr.bf16.mxu0 %v6222_v40  ;;  %v714_v35 = vld [vmem:[#allocation9 + $0x58] sm:$0xff] }
  0xa9   :  { %6239 = vmatpush3.bf16.msra.mxu1 %v6238_v46 }
  0xaa   :  { %6225 = vmatpush1.bf16.msra.mxu0 %v6224_v47  ;;  %6240 = vmatprep.subr.bf16.mxu1 %v9970_v45 }
  0xab   :  { %6227 = vmatprep.subr.bf16.mxu0 %v6226_v50  ;;  %v241_v50 = vrot.slane %v7585_v34, %v240_v44 }
  0xad   :  { %6242 = vmatpush3.bf16.msra.mxu1 %v6241_v55  ;;  %v706_v55 = vld [vmem:[#allocation9 + $0x18] sm:$0xff] }
  0xae   :  { %6229 = vmatpush1.bf16.msra.mxu0 %v6228_v56  ;;  %6243 = vmatprep.subr.bf16.mxu1 %v9970_v45 }
  0xaf   :  { %6231 = vmatprep.subr.bf16.mxu0 %v6230_v59  ;;  %v6270_v59 = vpack.c.bf16 %v706_v55, %v703_v54 }
  0xb1   :  { %6245 = vmatpush3.bf16.msra.mxu1 %v6244_v62  ;;  %v248_v62 = vsub.s32 5, %v7574_v11 }
  0xb2   :  { %6233 = vmatpush1.bf16.msra.mxu0 %v6232_v63  ;;  %6246 = vmatprep.subr.bf16.mxu1 %v9970_v45  ;;  %v245_v63 = vrot.slane %v7585_v34, %v244_v61 }
  0xb3   :  { %5635 = vmatprep.subr.msk.mxu0 %vm265_vm1, %v222_v3  ;;  %v249_v1 = vrot.slane %v7585_v34, %v248_v62  ;;  %v252_v3 = vsub.s32 6, %v7574_v11 }
  0xb5   :  { %6248 = vmatpush3.bf16.msra.mxu1 %v6247_v4 }
  0xb6   :  { %5636 = vmatpush1.msk.msra.mxu0 %vm265_vm1, %v221_v7  ;;  %6249 = vmatprep.subr.bf16.mxu1 %v9970_v45 }
  0xb7   :  { %5637 = vmatmul.mubr.msk.f32.vlgmr.msra.gmra.mrb[2].mxu0 %vm261_vm2, %v7548_v18  ;;  %6253 = vmatprep.subr.bf16.mxu0 %v6252_v14 }
  0xb8   :  { %877 = vmatprep.mubr.f32.mxu0 %v9972_v0  ;;  %6255 = vmatpush1.bf16.msra.mxu0 %v6254_v19  ;;  %v6276_v19 = vpack.c.bf16 %v708_v16, %v705_v15 }
  0xb9   :  { %6251 = vmatpush3.bf16.msra.mxu1 %v6250_v8 }
  0xba   :  { %6007 = vmatprep.subr.mxu1 %v9972_v0 }
  0xbd   :  { %6008 = vmatpush3.msk.msra.mxu1 %vm265_vm1, %v223_v9  ;;  %v253_v9 = vrot.slane %v7585_v34, %v252_v3  ;;  %v711_v34 = vld [vmem:[#allocation9 + $0x40] sm:$0xff] }
  0xbe   :  { %6010 = vmatmul.mubr.msk.f32.vlgmr.msra.gmra.mrb[2].mxu1 %vm261_vm2, %v7548_v18  ;;  %v727_v18 = vld [vmem:[#allocation9 + $0xb0] sm:$0xff]  ;;  %6261 = vmatprep.subr.bf16.mxu1 %v6260_v29  ;;  %v6280_v36 = vpack.c.bf16 %v714_v35, %v711_v34  ;;  %v1728_v34 = vld [vmem:[#allocation9 + $0xf8] sm:$0xff] }
  0xbf   :  { %v6256_v23 = vpack.c.bf16 %v727_v18, %v724_v22  ;;  %6263 = vmatpush3.bf16.msra.mxu1 %v6260_v29  ;;  %v713_v22 = vld [vmem:[#allocation9 + $0x50] sm:$0xff] }
  0xc0   :  { %6265 = vmatprep.subr.bf16.mxu1 %v6264_v37  ;;  %v6272_v18 = vpack.c.bf16 %v713_v22, %v710_v20  ;;  %v1731_v35 = vld [vmem:[#allocation9 + $0x110] sm:$0xff] }
  0xc1   :  { %6257 = vmatprep.subr.bf16.mxu0 %v6256_v23  ;;  %v709_v23 = vld [vmem:[#allocation9 + $0x30] sm:$0xff] }
  0xc2   :  { %6259 = vmatpush1.bf16.msra.mxu0 %v6258_v26  ;;  %v6274_v25 = vpack.c.bf16 %v712_v24, %v709_v23  ;;  %v1722_v26 = vld [vmem:[#allocation9 + $0xc8] sm:$0xff] }
  0xc3   :  { %6269 = vmatprep.subr.bf16.mxu0 %v6268_v33  ;;  %6267 = vmatpush3.bf16.msra.mxu1 %v6264_v37  ;;  %v6284_v28 = vpack.c.bf16 %v1725_v27, %v1722_v26  ;;  %v7807_v27 = vld [vmem:[#allocation2] sm:$0xff] }
  0xc4   :  { %6277 = vmatprep.subr.bf16.mxu1 %v6276_v19 }
 0x170   :  { %v353_v40 = vpop.f32.mrb[0].mxu0 }
 0x171   :  { %v354_v42 = vadd.f32 %v353_v40, %v229_v38  ;;  %v355_v43 = vpop.f32.mrb[1].mxu0  ;;  %v1723_v40 = vld [vmem:[#allocation9 + $0xd0] sm:$0xff] }
 0x172   :  { %v356_v46 = vadd.f32 %v355_v43, %v233_v39 }
 0x173   :  { %v570_v47 = vmax.f32 %v354_v42, 0.0  ;;  %v1726_v42 = vld [vmem:[#allocation9 + $0xe8] sm:$0xff] }
 0x174   :  { %v571_v48 = vmax.f32 %v356_v46, 0.0 }
 0x175   :  { %577 = vst.msk [vmem:[#allocation2 + $0x8] sm:$0xff] %vm119_vm0, %v570_v47  ;;  %587 = vrot.lane.b32.xlu1 %v570_v47, %s7394_s0  ;;  %579 = vrot.lane.b32.xlu0 %v570_v47, %s7395_s28 }
 0x176   :  { %591 = vst.msk [vmem:[#allocation2 + $0x28] sm:$0xff] %vm119_vm0, %v571_v48 }
 0x177   :  { %v424_v51 = vpop.f32.mrb[0].mxu1 }
 0x178   :  { %v425_v52 = vadd.f32 %v424_v51, %v237_v49  ;;  %v426_v53 = vpop.f32.mrb[1].mxu1 }
 0x179   :  { %593 = vrot.lane.b32.xlu1 %v571_v48, %s7395_s28  ;;  %583 = vrot.lane.b32.xlu0 %v570_v47, %s7396_s29  ;;  %v427_v56 = vadd.f32 %v426_v53, %v241_v50  ;;  %v7653_v47 = vpack.c.bf16 %v1726_v42, %v1723_v40  ;;  %v1730_v40 = vld [vmem:[#allocation9 + $0x108] sm:$0xff] }
 0x17a   :  { %v572_v57 = vmax.f32 %v425_v52, 0.0 }
 0x17b   :  { %v573_v58 = vmax.f32 %v427_v56, 0.0 }
 0x17c   :  { %v7603_v60 = vld [vmem:[#allocation2 + $0x8] sm:$0xff]  ;;  %605 = vst.msk [vmem:[#allocation2 + $0x48] sm:$0xff] %vm119_vm0, %v572_v57 }
 0x17d   :  { %601 = vrot.lane.b32.xlu1 %v571_v48, %s7394_s0  ;;  %597 = vrot.lane.b32.xlu0 %v571_v48, %s7396_s29  ;;  %619 = vst.msk [vmem:[#allocation2 + $0x68] sm:$0xff] %vm119_vm0, %v573_v58  ;;  %v7665_v49 = vld [vmem:[#allocation2 + $0x28] sm:$0xff] }
 0x17e   :  { %5640 = vmatmul.mubr.msk.f32.vlgmr.msra.gmra.mrb[4].mxu0 %vm119_vm0, %v7603_v60  ;;  %6020 = vmatprep.mubr.msk.f32.mxu1 %vm119_vm0, %v7603_v60 }
 0x17f   :  { %6271 = vmatpush1.bf16.msra.mxu0 %v6270_v59  ;;  %883 = vmatprep.mubr.f32.mxu0 %v9972_v0 }
 0x180   :  { %6273 = vmatprep.subr.bf16.mxu0 %v6272_v18 }
 0x181   :  { %607 = vrot.lane.b32.xlu0 %v572_v57, %s7395_s28  ;;  %611 = vrot.lane.b32.xlu1 %v572_v57, %s7396_s29 }
 0x183   :  { %6275 = vmatpush1.bf16.msra.mxu0 %v6274_v25 }
 0x184   :  { %6285 = vmatprep.subr.bf16.mxu0 %v6284_v28  ;;  %v1729_v28 = vld [vmem:[#allocation9 + $0x100] sm:$0xff] }
 0x185   :  { %615 = vrot.lane.b32.xlu0 %v572_v57, %s7394_s0  ;;  %621 = vrot.lane.b32.xlu1 %v573_v58, %s7395_s28  ;;  %v7692_v57 = vld [vmem:[#allocation2 + $0x48] sm:$0xff] }
 0x189   :  { %625 = vrot.lane.b32.xlu0 %v573_v58, %s7396_s29  ;;  %629 = vrot.lane.b32.xlu1 %v573_v58, %s7394_s0 }
 0x18a   :  { %v495_v2 = vpop.f32.mrb[2].mxu0 }
 0x18b   :  { %v496_v4 = vadd.f32 %v495_v2, %v245_v63  ;;  %v497_v5 = vpop.f32.mrb[3].mxu0 }
 0x18c   :  { %v498_v6 = vadd.f32 %v497_v5, %v249_v1  ;;  %v7716_v1 = vld [vmem:[#allocation2 + $0x68] sm:$0xff] }
 0x18d   :  { %v574_v7 = vmax.f32 %v496_v4, 0.0 }
 0x18e   :  { %v575_v8 = vmax.f32 %v498_v6, 0.0 }
 0x18f   :  { %633 = vst.msk [vmem:[#allocation2 + $0x88] sm:$0xff] %vm119_vm0, %v574_v7  ;;  %635 = vrot.lane.b32.xlu0 %v574_v7, %s7395_s28  ;;  %639 = vrot.lane.b32.xlu1 %v574_v7, %s7396_s29 }
 0x190   :  { %647 = vst.msk [vmem:[#allocation2 + $0xa8] sm:$0xff] %vm119_vm0, %v575_v8 }
 0x191   :  { %v566_v10 = vpop.f32.mrb[2].mxu1 }
 0x192   :  { %v567_v12 = vadd.f32 %v566_v10, %v253_v9  ;;  %v6011_v13 = vpop.f32.mrb[3].mxu1 }
 0x193   :  { %643 = vrot.lane.b32.xlu0 %v574_v7, %s7394_s0  ;;  %649 = vrot.lane.b32.xlu1 %v575_v8, %s7395_s28 }
 0x194   :  { %v576_v14 = vmax.f32 %v567_v12, 0.0 }
 0x196   :  { %661 = vst.msk [vmem:[#allocation2 + $0xc8] sm:$0xff] %vm119_vm0, %v576_v14  ;;  %v7742_v9 = vld [vmem:[#allocation2 + $0x88] sm:$0xff] }
 0x197   :  { %653 = vrot.lane.b32.xlu0 %v575_v8, %s7396_s29  ;;  %657 = vrot.lane.b32.xlu1 %v575_v8, %s7394_s0 }
 0x19b   :  { %663 = vrot.lane.b32.xlu0 %v576_v14, %s7395_s28  ;;  %667 = vrot.lane.b32.xlu1 %v576_v14, %s7396_s29 }
 0x19d   :  { %v7789_v23 = vld [vmem:[#allocation2 + $0xc8] sm:$0xff] }
 0x19f   :  { %671 = vrot.lane.b32.xlu0 %v576_v14, %s7394_s0 }
 0x1e7   :  { %v588_v29 = vpop.permute.xlu1 %587  ;;  %v580_v30 = vpop.permute.xlu0 %579 }
 0x1e8   :  { %590 = vst.msk [vmem:[#allocation2 + $0x20] sm:$0xff] %vm119_vm0, %v588_v29  ;;  %582 = vst.msk [vmem:[#allocation2 + $0x10] sm:$0xff] %vm119_vm0, %v580_v30  ;;  %v1732_v29 = vld [vmem:[#allocation9 + $0x118] sm:$0xff] }
 0x1e9   :  { %v6296_v30 = vpack.c.bf16 %v1732_v29, %v1729_v28  ;;  %v3982_v28 = vld [vmem:[#allocation12 + $0x868] sm:$0xff]  ;;  %v3984_v29 = vld [vmem:[#allocation12 + $0x878] sm:$0xff] }
 0x1eb   :  { %v594_v31 = vpop.permute.xlu1 %593  ;;  %v584_v33 = vpop.permute.xlu0 %583 }
 0x1ec   :  { %596 = vst.msk [vmem:[#allocation2 + $0x30] sm:$0xff] %vm119_vm0, %v594_v31  ;;  %586 = vst.msk [vmem:[#allocation2 + $0x18] sm:$0xff] %vm119_vm0, %v584_v33  ;;  %v1721_v31 = vld [vmem:[#allocation9 + $0xc0] sm:$0xff]  ;;  %v1724_v33 = vld [vmem:[#allocation9 + $0xd8] sm:$0xff] }
 0x1ef   :  { %v602_v37 = vpop.permute.xlu1 %601  ;;  %v598_v38 = vpop.permute.xlu0 %597  ;;  %v7642_v39 = vld [vmem:[#allocation2 + $0x10] sm:$0xff]  ;;  %v7659_v48 = vld [vmem:[#allocation2 + $0x20] sm:$0xff] }
 0x1f0   :  { %604 = vst.msk [vmem:[#allocation2 + $0x40] sm:$0xff] %vm119_vm0, %v602_v37  ;;  %600 = vst.msk [vmem:[#allocation2 + $0x38] sm:$0xff] %vm119_vm0, %v598_v38  ;;  %5641 = vmatmul.mubr.msk.f32.gmra.mrb[6].mxu0 %vm119_vm0, %v7642_v39  ;;  %6021 = vmatmul.mubr.msk.f32.vlgmr.msra.gmra.mrb[4].mxu1 %vm119_vm0, %v7642_v39  ;;  %v6288_v37 = vpack.c.bf16 %v1731_v35, %v1728_v34  ;;  %v1727_v38 = vld [vmem:[#allocation9 + $0xf0] sm:$0xff]  ;;  %v3988_v35 = vld [vmem:[#allocation12 + $0x898] sm:$0xff] }
 0x1f1   :  { %889 = vmatprep.mubr.f32.mxu0 %v9972_v0  ;;  %6279 = vmatpush3.bf16.msra.mxu1 %v6276_v19  ;;  %v7767_v19 = vld [vmem:[#allocation2 + $0xa8] sm:$0xff]  ;;  %v6290_v42 = vpack.c.bf16 %v1730_v40, %v1727_v38  ;;  %v3986_v34 = vld [vmem:[#allocation12 + $0x888] sm:$0xff] }
 0x1f2   :  { %6281 = vmatprep.subr.bf16.mxu1 %v6280_v36  ;;  %v3987_v38 = vld [vmem:[#allocation12 + $0x890] sm:$0xff]  ;;  %v3990_v40 = vld [vmem:[#allocation12 + $0x8a8] sm:$0xff] }
 0x1f3   :  { %v7651_v43 = vld [vmem:[#allocation2 + $0x18] sm:$0xff]  ;;  %v608_v44 = vpop.permute.xlu0 %607  ;;  %v612_v46 = vpop.permute.xlu1 %611  ;;  %v7673_v52 = vld [vmem:[#allocation2 + $0x30] sm:$0xff] }
 0x1f4   :  { %5642 = vmatmul.mubr.msk.f32.gmra.mrb[8].mxu0 %vm119_vm0, %v7651_v43  ;;  %6023 = vmatprep.mubr.msk.f32.mxu1 %vm119_vm0, %v7651_v43  ;;  %610 = vst.msk [vmem:[#allocation2 + $0x50] sm:$0xff] %vm119_vm0, %v608_v44  ;;  %614 = vst.msk [vmem:[#allocation2 + $0x58] sm:$0xff] %vm119_vm0, %v612_v46  ;;  %v3970_v44 = vld [vmem:[#allocation12 + $0x808] sm:$0xff]  ;;  %v3972_v46 = vld [vmem:[#allocation12 + $0x818] sm:$0xff] }
 0x1f5   :  { %6024 = vmatmul.mubr.msk.f32.gmra.mrb[6].mxu1 %vm119_vm0, %v7659_v48  ;;  %895 = vmatprep.mubr.f32.mxu0 %v9972_v0 }
 0x1f6   :  { %6026 = vmatprep.mubr.msk.f32.mxu1 %vm119_vm0, %v7665_v49  ;;  %6283 = vmatpush3.bf16.msra.mxu1 %v6280_v36  ;;  %v6286_v36 = vpack.c.bf16 %v1724_v33, %v1721_v31  ;;  %v3981_v31 = vld [vmem:[#allocation12 + $0x860] sm:$0xff]  ;;  %v3983_v33 = vld [vmem:[#allocation12 + $0x870] sm:$0xff] }
 0x1f7   :  { %v616_v50 = vpop.permute.xlu0 %615  ;;  %v622_v51 = vpop.permute.xlu1 %621  ;;  %6293 = vmatprep.subr.bf16.mxu1 %v7653_v47  ;;  %v7679_v53 = vld [vmem:[#allocation2 + $0x38] sm:$0xff]  ;;  %v7686_v56 = vld [vmem:[#allocation2 + $0x40] sm:$0xff] }
 0x1f8   :  { %5643 = vmatmul.mubr.msk.f32.gmra.mrb[10].mxu0 %vm119_vm0, %v7659_v48  ;;  %618 = vst.msk [vmem:[#allocation2 + $0x60] sm:$0xff] %vm119_vm0, %v616_v50  ;;  %624 = vst.msk [vmem:[#allocation2 + $0x70] sm:$0xff] %vm119_vm0, %v622_v51  ;;  %v3969_v50 = vld [vmem:[#allocation12 + $0x800] sm:$0xff]  ;;  %v3971_v51 = vld [vmem:[#allocation12 + $0x810] sm:$0xff] }
 0x1f9   :  { %6027 = vmatmul.mubr.msk.f32.gmra.mrb[8].mxu1 %vm119_vm0, %v7673_v52  ;;  %901 = vmatprep.mubr.f32.mxu0 %v9972_v0 }
 0x1fa   :  { %6029 = vmatprep.mubr.msk.f32.mxu1 %vm119_vm0, %v7679_v53 }
 0x1fb   :  { %v626_v54 = vpop.permute.xlu0 %625  ;;  %v630_v55 = vpop.permute.xlu1 %629  ;;  %v7697_v58 = vld [vmem:[#allocation2 + $0x50] sm:$0xff]  ;;  %v7699_v59 = vld [vmem:[#allocation2 + $0x58] sm:$0xff] }
 0x1fc   :  { %5644 = vmatmul.mubr.msk.f32.gmra.mrb[12].mxu0 %vm119_vm0, %v7665_v49  ;;  %628 = vst.msk [vmem:[#allocation2 + $0x78] sm:$0xff] %vm119_vm0, %v626_v54  ;;  %632 = vst.msk [vmem:[#allocation2 + $0x80] sm:$0xff] %vm119_vm0, %v630_v55  ;;  %v3974_v54 = vld [vmem:[#allocation12 + $0x828] sm:$0xff]  ;;  %v3976_v55 = vld [vmem:[#allocation12 + $0x838] sm:$0xff] }
 0x1fd   :  { %6030 = vmatmul.mubr.msk.f32.gmra.mrb[10].mxu1 %vm119_vm0, %v7686_v56  ;;  %907 = vmatprep.mubr.f32.mxu0 %v9972_v0 }
 0x1fe   :  { %6032 = vmatprep.mubr.msk.f32.mxu1 %vm119_vm0, %v7692_v57 }
 0x1ff   :  { %v7708_v63 = vld [vmem:[#allocation2 + $0x60] sm:$0xff]  ;;  %v7721_v4 = vld [vmem:[#allocation2 + $0x70] sm:$0xff] }
 0x200   :  { %5645 = vmatmul.mubr.msk.f32.gmra.mrb[14].mxu0 %vm119_vm0, %v7673_v52 }
 0x201   :  { %6033 = vmatmul.mubr.msk.f32.gmra.mrb[12].mxu1 %vm119_vm0, %v7697_v58  ;;  %913 = vmatprep.mubr.f32.mxu0 %v9972_v0  ;;  %v636_v61 = vpop.permute.xlu0 %635  ;;  %v640_v62 = vpop.permute.xlu1 %639 }
 0x202   :  { %6035 = vmatprep.mubr.msk.f32.mxu1 %vm119_vm0, %v7699_v59  ;;  %638 = vst.msk [vmem:[#allocation2 + $0x90] sm:$0xff] %vm119_vm0, %v636_v61  ;;  %642 = vst.msk [vmem:[#allocation2 + $0x98] sm:$0xff] %vm119_vm0, %v640_v62  ;;  %v8055_v61 = vpack.c.bf16 %v3971_v51, %v3969_v50  ;;  %v8057_v62 = vpack.c.bf16 %v3976_v55, %v3974_v54  ;;  %v3991_v50 = vld [vmem:[#allocation12 + $0x8b0] sm:$0xff]  ;;  %v3994_v51 = vld [vmem:[#allocation12 + $0x8c8] sm:$0xff] }
 0x203   :  { %v7725_v5 = vld [vmem:[#allocation2 + $0x78] sm:$0xff]  ;;  %v7734_v8 = vld [vmem:[#allocation2 + $0x80] sm:$0xff]  ;;  %v3996_v54 = vld [vmem:[#allocation12 + $0x8d8] sm:$0xff] }
 0x204   :  { %5646 = vmatmul.mubr.msk.f32.gmra.mrb[16].mxu0 %vm119_vm0, %v7679_v53  ;;  %10082 = vst [vmem:[#allocation23_spill] sm:$0xff] %v8055_v61  ;;  %10083 = vst [vmem:[#allocation24_spill] sm:$0xff] %v8057_v62  ;;  %v8102_v55 = vpack.c.bf16 %v3996_v54, %v3994_v51  ;;  %v2801_v51 = vld [vmem:[#allocation12 + $0x348] sm:$0xff]  ;;  %v2800_v54 = vld [vmem:[#allocation12 + $0x340] sm:$0xff] }
 0x205   :  { %6036 = vmatmul.mubr.msk.f32.gmra.mrb[14].mxu1 %vm119_vm0, %v7708_v63  ;;  %919 = vmatprep.mubr.f32.mxu0 %v9972_v0  ;;  %v644_v2 = vpop.permute.xlu0 %643  ;;  %v650_v3 = vpop.permute.xlu1 %649 }
 0x206   :  { %6038 = vmatprep.mubr.msk.f32.mxu1 %vm119_vm0, %v7716_v1  ;;  %646 = vst.msk [vmem:[#allocation2 + $0xa0] sm:$0xff] %vm119_vm0, %v644_v2  ;;  %652 = vst.msk [vmem:[#allocation2 + $0xb0] sm:$0xff] %vm119_vm0, %v650_v3  ;;  %v3973_v2 = vld [vmem:[#allocation12 + $0x820] sm:$0xff]  ;;  %v3975_v3 = vld [vmem:[#allocation12 + $0x830] sm:$0xff] }
 0x207   :  { %10093 = vst [vmem:[#allocation34_spill] sm:$0xff] %v8102_v55 }
 0x208   :  { %5647 = vmatmul.mubr.msk.f32.gmra.mrb[18].mxu0 %vm119_vm0, %v7686_v56 }
 0x209   :  { %6039 = vmatmul.mubr.msk.f32.gmra.mrb[16].mxu1 %vm119_vm0, %v7721_v4  ;;  %925 = vmatprep.mubr.f32.mxu0 %v9972_v0  ;;  %v654_v6 = vpop.permute.xlu0 %653  ;;  %v658_v7 = vpop.permute.xlu1 %657  ;;  %v7747_v13 = vld [vmem:[#allocation2 + $0x90] sm:$0xff]  ;;  %v7751_v14 = vld [vmem:[#allocation2 + $0x98] sm:$0xff] }
 0x20a   :  { %6041 = vmatprep.mubr.msk.f32.mxu1 %vm119_vm0, %v7725_v5  ;;  %656 = vst.msk [vmem:[#allocation2 + $0xb8] sm:$0xff] %vm119_vm0, %v654_v6  ;;  %660 = vst.msk [vmem:[#allocation2 + $0xc0] sm:$0xff] %vm119_vm0, %v658_v7  ;;  %v3978_v6 = vld [vmem:[#allocation12 + $0x848] sm:$0xff]  ;;  %v3980_v7 = vld [vmem:[#allocation12 + $0x858] sm:$0xff] }
 0x20c   :  { %5648 = vmatmul.mubr.msk.f32.gmra.mrb[20].mxu0 %vm119_vm0, %v7692_v57 }
 0x20d   :  { %6042 = vmatmul.mubr.msk.f32.gmra.mrb[18].mxu1 %vm119_vm0, %v7734_v8  ;;  %931 = vmatprep.mubr.f32.mxu0 %v9972_v0  ;;  %v664_v10 = vpop.permute.xlu0 %663  ;;  %v668_v12 = vpop.permute.xlu1 %667  ;;  %v7760_v16 = vld [vmem:[#allocation2 + $0xa0] sm:$0xff]  ;;  %v7772_v20 = vld [vmem:[#allocation2 + $0xb0] sm:$0xff] }
 0x20e   :  { %6044 = vmatprep.mubr.msk.f32.mxu1 %vm119_vm0, %v7742_v9  ;;  %666 = vst.msk [vmem:[#allocation2 + $0xd0] sm:$0xff] %vm119_vm0, %v664_v10  ;;  %670 = vst.msk [vmem:[#allocation2 + $0xd8] sm:$0xff] %vm119_vm0, %v668_v12  ;;  %v8063_v10 = vpack.c.bf16 %v3975_v3, %v3973_v2  ;;  %v8066_v12 = vpack.c.bf16 %v3980_v7, %v3978_v6  ;;  %v3993_v2 = vld [vmem:[#allocation12 + $0x8c0] sm:$0xff]  ;;  %v3995_v3 = vld [vmem:[#allocation12 + $0x8d0] sm:$0xff] }
 0x20f   :  { %v3998_v6 = vld [vmem:[#allocation12 + $0x8e8] sm:$0xff]  ;;  %v4000_v7 = vld [vmem:[#allocation12 + $0x8f8] sm:$0xff] }
 0x210   :  { %5649 = vmatmul.mubr.msk.f32.gmra.mrb[22].mxu0 %vm119_vm0, %v7697_v58  ;;  %10084 = vst [vmem:[#allocation25_spill] sm:$0xff] %v8063_v10  ;;  %10085 = vst [vmem:[#allocation26_spill] sm:$0xff] %v8066_v12 }
 0x211   :  { %6045 = vmatmul.mubr.msk.f32.gmra.mrb[20].mxu1 %vm119_vm0, %v7747_v13  ;;  %937 = vmatprep.mubr.f32.mxu0 %v9972_v0  ;;  %v672_v15 = vpop.permute.xlu0 %671  ;;  %v7774_v22 = vld [vmem:[#allocation2 + $0xb8] sm:$0xff]  ;;  %v7783_v18 = vld [vmem:[#allocation2 + $0xc0] sm:$0xff] }
 0x212   :  { %6047 = vmatprep.mubr.msk.f32.mxu1 %vm119_vm0, %v7751_v14  ;;  %674 = vst.msk [vmem:[#allocation2 + $0xe0] sm:$0xff] %vm119_vm0, %v672_v15  ;;  %v3977_v15 = vld [vmem:[#allocation12 + $0x840] sm:$0xff] }
 0x214   :  { %5650 = vmatmul.mubr.msk.f32.gmra.mrb[24].mxu0 %vm119_vm0, %v7699_v59 }
 0x215   :  { %6048 = vmatmul.mubr.msk.f32.gmra.mrb[22].mxu1 %vm119_vm0, %v7760_v16  ;;  %943 = vmatprep.mubr.f32.mxu0 %v9972_v0  ;;  %v7794_v24 = vld [vmem:[#allocation2 + $0xd0] sm:$0xff]  ;;  %v7796_v25 = vld [vmem:[#allocation2 + $0xd8] sm:$0xff] }
 0x216   :  { %6050 = vmatprep.mubr.msk.f32.mxu1 %vm119_vm0, %v7767_v19 }
 0x218   :  { %5651 = vmatmul.mubr.msk.f32.gmra.mrb[26].mxu0 %vm119_vm0, %v7708_v63 }
 0x219   :  { %6051 = vmatmul.mubr.msk.f32.gmra.mrb[24].mxu1 %vm119_vm0, %v7772_v20  ;;  %949 = vmatprep.mubr.f32.mxu0 %v9972_v0  ;;  %v7805_v26 = vld [vmem:[#allocation2 + $0xe0] sm:$0xff] }
 0x21a   :  { %6053 = vmatprep.mubr.msk.f32.mxu1 %vm119_vm0, %v7774_v22 }
 0x21c   :  { %5652 = vmatmul.mubr.msk.f32.gmra.mrb[28].mxu0 %vm119_vm0, %v7716_v1 }
 0x21d   :  { %6054 = vmatmul.mubr.msk.f32.gmra.mrb[26].mxu1 %vm119_vm0, %v7783_v18  ;;  %955 = vmatprep.mubr.f32.mxu0 %v9972_v0 }
 0x21e   :  { %6056 = vmatprep.mubr.msk.f32.mxu1 %vm119_vm0, %v7789_v23 }
 0x220   :  { %5653 = vmatmul.mubr.msk.f32.gmra.mrb[30].mxu0 %vm119_vm0, %v7721_v4 }
 0x221   :  { %6057 = vmatmul.mubr.msk.f32.gmra.mrb[28].mxu1 %vm119_vm0, %v7794_v24  ;;  %961 = vmatprep.mubr.f32.mxu0 %v9972_v0 }
 0x222   :  { %6059 = vmatprep.mubr.msk.f32.mxu1 %vm119_vm0, %v7796_v25 }
 0x224   :  { %5654 = vmatmul.mubr.msk.f32.gmra.mrb[32].mxu0 %vm119_vm0, %v7725_v5 }
 0x225   :  { %6060 = vmatmul.mubr.msk.f32.gmra.mrb[30].mxu1 %vm119_vm0, %v7805_v26  ;;  %967 = vmatprep.mubr.f32.mxu0 %v9972_v0 }
 0x226   :  { %6070 = vmatprep.mubr.msk.f32.mxu1 %vm119_vm0, %v7807_v27 }
 0x228   :  { %5655 = vmatmul.mubr.msk.f32.gmra.mrb[34].mxu0 %vm119_vm0, %v7734_v8 }
 0x229   :  { %6071 = vmatmul.mubr.msk.f32.vlgmr.msra.gmra.mrb[4].mxu1 %vm119_vm0, %v7603_v60  ;;  %973 = vmatprep.mubr.f32.mxu0 %v9972_v0 }
 0x22a   :  { %6073 = vmatprep.mubr.msk.f32.mxu1 %vm119_vm0, %v7642_v39  ;;  %6295 = vmatpush3.bf16.msra.mxu1 %v7653_v47  ;;  %v8016_v47 = vpack.c.bf16 %v3972_v46, %v3970_v44  ;;  %v3989_v46 = vld [vmem:[#allocation12 + $0x8a0] sm:$0xff] }
 0x22b   :  { %6297 = vmatprep.subr.bf16.mxu1 %v6296_v30 }
 0x22c   :  { %5656 = vmatmul.mubr.msk.f32.gmra.mrb[36].mxu0 %vm119_vm0, %v7742_v9  ;;  %10081 = vst [vmem:[#allocation22_spill] sm:$0xff] %v8016_v47 }
 0x22d   :  { %6074 = vmatmul.mubr.msk.f32.gmra.mrb[6].mxu1 %vm119_vm0, %v7651_v43  ;;  %979 = vmatprep.mubr.f32.mxu0 %v9972_v0 }
 0x22e   :  { %6076 = vmatprep.mubr.msk.f32.mxu1 %vm119_vm0, %v7659_v48  ;;  %6299 = vmatpush3.bf16.msra.mxu1 %v6296_v30  ;;  %v8075_v30 = vpack.c.bf16 %v3984_v29, %v3982_v28  ;;  %v3999_v28 = vld [vmem:[#allocation12 + $0x8f0] sm:$0xff]  ;;  %v2793_v29 = vld [vmem:[#allocation12 + $0x308] sm:$0xff] }
 0x230   :  { %5657 = vmatmul.mubr.msk.f32.gmra.mrb[38].mxu0 %vm119_vm0, %v7747_v13  ;;  %10087 = vst [vmem:[#allocation28_spill] sm:$0xff] %v8075_v30 }
 0x231   :  { %6077 = vmatmul.mubr.msk.f32.gmra.mrb[8].mxu1 %vm119_vm0, %v7665_v49  ;;  %985 = vmatprep.mubr.f32.mxu0 %v9972_v0 }
 0x232   :  { %6079 = vmatprep.mubr.msk.f32.mxu1 %vm119_vm0, %v7673_v52 }
 0x234   :  { %5658 = vmatmul.mubr.msk.f32.gmra.mrb[40].mxu0 %vm119_vm0, %v7751_v14 }
 0x235   :  { %6080 = vmatmul.mubr.msk.f32.gmra.mrb[10].mxu1 %vm119_vm0, %v7679_v53  ;;  %991 = vmatprep.mubr.f32.mxu0 %v9972_v0 }
 0x236   :  { %6082 = vmatprep.mubr.msk.f32.mxu1 %vm119_vm0, %v7686_v56 }
 0x238   :  { %5659 = vmatmul.mubr.msk.f32.gmra.mrb[42].mxu0 %vm119_vm0, %v7760_v16 }
 0x239   :  { %6083 = vmatmul.mubr.msk.f32.gmra.mrb[12].mxu1 %vm119_vm0, %v7692_v57  ;;  %997 = vmatprep.mubr.f32.mxu0 %v9972_v0 }
 0x23a   :  { %6085 = vmatprep.mubr.msk.f32.mxu1 %vm119_vm0, %v7697_v58 }
 0x23c   :  { %5660 = vmatmul.mubr.msk.f32.gmra.mrb[44].mxu0 %vm119_vm0, %v7767_v19 }
 0x23d   :  { %6086 = vmatmul.mubr.msk.f32.gmra.mrb[14].mxu1 %vm119_vm0, %v7699_v59  ;;  %1003 = vmatprep.mubr.f32.mxu0 %v9972_v0 }
 0x23e   :  { %6088 = vmatprep.mubr.msk.f32.mxu1 %vm119_vm0, %v7708_v63 }
 0x240   :  { %5661 = vmatmul.mubr.msk.f32.gmra.mrb[46].mxu0 %vm119_vm0, %v7772_v20 }
 0x241   :  { %6089 = vmatmul.mubr.msk.f32.gmra.mrb[16].mxu1 %vm119_vm0, %v7716_v1  ;;  %1009 = vmatprep.mubr.f32.mxu0 %v9972_v0 }
 0x242   :  { %6091 = vmatprep.mubr.msk.f32.mxu1 %vm119_vm0, %v7721_v4 }
 0x244   :  { %5662 = vmatmul.mubr.msk.f32.gmra.mrb[48].mxu0 %vm119_vm0, %v7774_v22 }
 0x245   :  { %6092 = vmatmul.mubr.msk.f32.gmra.mrb[18].mxu1 %vm119_vm0, %v7725_v5  ;;  %1015 = vmatprep.mubr.f32.mxu0 %v9972_v0 }
 0x246   :  { %6094 = vmatprep.mubr.msk.f32.mxu1 %vm119_vm0, %v7734_v8 }
 0x248   :  { %5663 = vmatmul.mubr.msk.f32.gmra.mrb[50].mxu0 %vm119_vm0, %v7783_v18 }
 0x249   :  { %6095 = vmatmul.mubr.msk.f32.gmra.mrb[20].mxu1 %vm119_vm0, %v7742_v9  ;;  %1021 = vmatprep.mubr.f32.mxu0 %v9972_v0 }
 0x24a   :  { %6097 = vmatprep.mubr.msk.f32.mxu1 %vm119_vm0, %v7747_v13 }
 0x24c   :  { %5664 = vmatmul.mubr.msk.f32.gmra.mrb[52].mxu0 %vm119_vm0, %v7789_v23 }
 0x24d   :  { %6098 = vmatmul.mubr.msk.f32.gmra.mrb[22].mxu1 %vm119_vm0, %v7751_v14  ;;  %1027 = vmatprep.mubr.f32.mxu0 %v9972_v0 }
 0x24e   :  { %6100 = vmatprep.mubr.msk.f32.mxu1 %vm119_vm0, %v7760_v16 }
 0x250   :  { %5665 = vmatmul.mubr.msk.f32.gmra.mrb[54].mxu0 %vm119_vm0, %v7794_v24 }
 0x251   :  { %6101 = vmatmul.mubr.msk.f32.gmra.mrb[24].mxu1 %vm119_vm0, %v7767_v19  ;;  %1033 = vmatprep.mubr.f32.mxu0 %v9972_v0 }
 0x252   :  { %6103 = vmatprep.mubr.msk.f32.mxu1 %vm119_vm0, %v7772_v20 }
 0x254   :  { %5666 = vmatmul.mubr.msk.f32.gmra.mrb[56].mxu0 %vm119_vm0, %v7796_v25 }
 0x255   :  { %6104 = vmatmul.mubr.msk.f32.gmra.mrb[26].mxu1 %vm119_vm0, %v7774_v22  ;;  %1039 = vmatprep.mubr.f32.mxu0 %v9972_v0 }
 0x256   :  { %6106 = vmatprep.mubr.msk.f32.mxu1 %vm119_vm0, %v7783_v18 }
 0x258   :  { %5667 = vmatmul.mubr.msk.f32.gmra.mrb[58].mxu0 %vm119_vm0, %v7805_v26 }
 0x259   :  { %6107 = vmatmul.mubr.msk.f32.gmra.mrb[28].mxu1 %vm119_vm0, %v7789_v23  ;;  %1318 = vmatprep.mubr.f32.mxu0 %v9972_v0 }
 0x25a   :  { %6109 = vmatprep.mubr.msk.f32.mxu1 %vm119_vm0, %v7794_v24 }
 0x25c   :  { %5696 = vmatmul.mubr.msk.f32.vlgmr.msra.gmra.mrb[4].mxu0 %vm119_vm0, %v7807_v27  ;;  %v3979_v27 = vld [vmem:[#allocation12 + $0x850] sm:$0xff] }
 0x25d   :  { %6287 = vmatpush1.bf16.msra.mxu0 %v6286_v36  ;;  %6110 = vmatmul.mubr.msk.f32.gmra.mrb[30].mxu1 %vm119_vm0, %v7796_v25  ;;  %v8084_v36 = vpack.c.bf16 %v3988_v35, %v3986_v34  ;;  %v2792_v34 = vld [vmem:[#allocation12 + $0x300] sm:$0xff]  ;;  %v2794_v35 = vld [vmem:[#allocation12 + $0x310] sm:$0xff] }
 0x25e   :  { %6120 = vmatprep.mubr.msk.f32.mxu1 %vm119_vm0, %v7642_v39  ;;  %1324 = vmatprep.mubr.f32.mxu0 %v9972_v0 }
 0x25f   :  { %6289 = vmatprep.subr.bf16.mxu0 %v6288_v37  ;;  %10089 = vst [vmem:[#allocation30_spill] sm:$0xff] %v8084_v36  ;;  %v3985_v37 = vld [vmem:[#allocation12 + $0x880] sm:$0xff] }
 0x260   :  { %5697 = vmatmul.mubr.msk.f32.gmra.mrb[6].mxu0 %vm119_vm0, %v7603_v60  ;;  %v8006_v60 = vld [vmem:[#allocation2 + $0xe8] sm:$0xff] }
 0x261   :  { %6121 = vmatmul.mubr.msk.f32.vlgmr.msra.gmra.mrb[4].mxu1 %vm119_vm0, %v7651_v43  ;;  %1330 = vmatprep.mubr.f32.mxu0 %v9972_v0 }
 0x262   :  { %6123 = vmatprep.mubr.msk.f32.mxu1 %vm119_vm0, %v7659_v48  ;;  %6291 = vmatpush1.bf16.msra.mxu0 %v6290_v42  ;;  %v3992_v42 = vld [vmem:[#allocation12 + $0x8b8] sm:$0xff] }
 0x263   :  { %6557 = vmatprep.subr.bf16.mxu0 %v8016_v47  ;;  %v8093_v44 = vpack.c.bf16 %v3992_v42, %v3990_v40  ;;  %v2796_v42 = vld [vmem:[#allocation12 + $0x320] sm:$0xff] }
 0x264   :  { %5698 = vmatmul.mubr.msk.f32.gmra.mrb[8].mxu0 %vm119_vm0, %v7642_v39 }
 0x265   :  { %6124 = vmatmul.mubr.msk.f32.gmra.mrb[6].mxu1 %vm119_vm0, %v7665_v49  ;;  %1336 = vmatprep.mubr.f32.mxu0 %v9972_v0  ;;  %10091 = vst [vmem:[#allocation32_spill] sm:$0xff] %v8093_v44 }
 0x266   :  { %6126 = vmatprep.mubr.msk.f32.mxu1 %vm119_vm0, %v7673_v52 }
 0x268   :  { %5699 = vmatmul.mubr.msk.f32.gmra.mrb[10].mxu0 %vm119_vm0, %v7651_v43 }
 0x269   :  { %6127 = vmatmul.mubr.msk.f32.gmra.mrb[8].mxu1 %vm119_vm0, %v7679_v53  ;;  %1342 = vmatprep.mubr.f32.mxu0 %v9972_v0 }
 0x26a   :  { %6129 = vmatprep.mubr.msk.f32.mxu1 %vm119_vm0, %v7686_v56 }
 0x26c   :  { %5700 = vmatmul.mubr.msk.f32.gmra.mrb[12].mxu0 %vm119_vm0, %v7659_v48 }
 0x26d   :  { %6130 = vmatmul.mubr.msk.f32.gmra.mrb[10].mxu1 %vm119_vm0, %v7692_v57  ;;  %1348 = vmatprep.mubr.f32.mxu0 %v9972_v0 }
 0x26e   :  { %6132 = vmatprep.mubr.msk.f32.mxu1 %vm119_vm0, %v7697_v58 }
 0x270   :  { %5701 = vmatmul.mubr.msk.f32.gmra.mrb[14].mxu0 %vm119_vm0, %v7665_v49 }
 0x271   :  { %6133 = vmatmul.mubr.msk.f32.gmra.mrb[12].mxu1 %vm119_vm0, %v7699_v59  ;;  %1354 = vmatprep.mubr.f32.mxu0 %v9972_v0 }
 0x272   :  { %6135 = vmatprep.mubr.msk.f32.mxu1 %vm119_vm0, %v7708_v63 }
 0x274   :  { %5702 = vmatmul.mubr.msk.f32.gmra.mrb[16].mxu0 %vm119_vm0, %v7673_v52 }
 0x275   :  { %6136 = vmatmul.mubr.msk.f32.gmra.mrb[14].mxu1 %vm119_vm0, %v7716_v1  ;;  %1360 = vmatprep.mubr.f32.mxu0 %v9972_v0 }
 0x276   :  { %6138 = vmatprep.mubr.msk.f32.mxu1 %vm119_vm0, %v7721_v4 }
 0x278   :  { %5703 = vmatmul.mubr.msk.f32.gmra.mrb[18].mxu0 %vm119_vm0, %v7679_v53 }
 0x279   :  { %6139 = vmatmul.mubr.msk.f32.gmra.mrb[16].mxu1 %vm119_vm0, %v7725_v5  ;;  %1366 = vmatprep.mubr.f32.mxu0 %v9972_v0 }
 0x27a   :  { %6141 = vmatprep.mubr.msk.f32.mxu1 %vm119_vm0, %v7734_v8 }
 0x27c   :  { %5704 = vmatmul.mubr.msk.f32.gmra.mrb[20].mxu0 %vm119_vm0, %v7686_v56 }
 0x27d   :  { %6142 = vmatmul.mubr.msk.f32.gmra.mrb[18].mxu1 %vm119_vm0, %v7742_v9  ;;  %1372 = vmatprep.mubr.f32.mxu0 %v9972_v0 }
 0x27e   :  { %6144 = vmatprep.mubr.msk.f32.mxu1 %vm119_vm0, %v7747_v13 }
 0x280   :  { %5705 = vmatmul.mubr.msk.f32.gmra.mrb[22].mxu0 %vm119_vm0, %v7692_v57 }
 0x281   :  { %6145 = vmatmul.mubr.msk.f32.gmra.mrb[20].mxu1 %vm119_vm0, %v7751_v14  ;;  %1378 = vmatprep.mubr.f32.mxu0 %v9972_v0 }
 0x282   :  { %6147 = vmatprep.mubr.msk.f32.mxu1 %vm119_vm0, %v7760_v16 }
 0x284   :  { %5706 = vmatmul.mubr.msk.f32.gmra.mrb[24].mxu0 %vm119_vm0, %v7697_v58 }
 0x285   :  { %6148 = vmatmul.mubr.msk.f32.gmra.mrb[22].mxu1 %vm119_vm0, %v7767_v19  ;;  %1384 = vmatprep.mubr.f32.mxu0 %v9972_v0 }
 0x286   :  { %6150 = vmatprep.mubr.msk.f32.mxu1 %vm119_vm0, %v7772_v20 }
 0x288   :  { %5707 = vmatmul.mubr.msk.f32.gmra.mrb[26].mxu0 %vm119_vm0, %v7699_v59 }
 0x289   :  { %6151 = vmatmul.mubr.msk.f32.gmra.mrb[24].mxu1 %vm119_vm0, %v7774_v22  ;;  %1390 = vmatprep.mubr.f32.mxu0 %v9972_v0 }
 0x28a   :  { %6153 = vmatprep.mubr.msk.f32.mxu1 %vm119_vm0, %v7783_v18 }
 0x28c   :  { %5708 = vmatmul.mubr.msk.f32.gmra.mrb[28].mxu0 %vm119_vm0, %v7708_v63 }
 0x28d   :  { %6154 = vmatmul.mubr.msk.f32.gmra.mrb[26].mxu1 %vm119_vm0, %v7789_v23  ;;  %1396 = vmatprep.mubr.f32.mxu0 %v9972_v0 }
 0x28e   :  { %6156 = vmatprep.mubr.msk.f32.mxu1 %vm119_vm0, %v7794_v24 }
 0x290   :  { %5709 = vmatmul.mubr.msk.f32.gmra.mrb[30].mxu0 %vm119_vm0, %v7716_v1 }
 0x291   :  { %6157 = vmatmul.mubr.msk.f32.gmra.mrb[28].mxu1 %vm119_vm0, %v7796_v25  ;;  %1402 = vmatprep.mubr.f32.mxu0 %v9972_v0 }
 0x292   :  { %6159 = vmatprep.mubr.msk.f32.mxu1 %vm119_vm0, %v7805_v26 }
 0x294   :  { %5710 = vmatmul.mubr.msk.f32.gmra.mrb[32].mxu0 %vm119_vm0, %v7721_v4 }
 0x295   :  { %6160 = vmatmul.mubr.msk.f32.gmra.mrb[30].mxu1 %vm119_vm0, %v8006_v60  ;;  %1408 = vmatprep.mubr.f32.mxu0 %v9972_v0 }
 0x298   :  { %5711 = vmatmul.mubr.msk.f32.gmra.mrb[34].mxu0 %vm119_vm0, %v7725_v5 }
 0x299   :  { %1414 = vmatprep.mubr.f32.mxu0 %v9972_v0 }
 0x29c   :  { %5712 = vmatmul.mubr.msk.f32.gmra.mrb[36].mxu0 %vm119_vm0, %v7734_v8 }
 0x29d   :  { %1420 = vmatprep.mubr.f32.mxu0 %v9972_v0 }
 0x2a0   :  { %5713 = vmatmul.mubr.msk.f32.gmra.mrb[38].mxu0 %vm119_vm0, %v7742_v9 }
 0x2a1   :  { %1426 = vmatprep.mubr.f32.mxu0 %v9972_v0 }
 0x2a4   :  { %5714 = vmatmul.mubr.msk.f32.gmra.mrb[40].mxu0 %vm119_vm0, %v7747_v13 }
 0x2a5   :  { %1432 = vmatprep.mubr.f32.mxu0 %v9972_v0 }
 0x2a8   :  { %5715 = vmatmul.mubr.msk.f32.gmra.mrb[42].mxu0 %vm119_vm0, %v7751_v14 }
 0x2a9   :  { %1438 = vmatprep.mubr.f32.mxu0 %v9972_v0 }
 0x2ac   :  { %5716 = vmatmul.mubr.msk.f32.gmra.mrb[44].mxu0 %vm119_vm0, %v7760_v16 }
 0x2ad   :  { %1444 = vmatprep.mubr.f32.mxu0 %v9972_v0 }
 0x2b0   :  { %5717 = vmatmul.mubr.msk.f32.gmra.mrb[46].mxu0 %vm119_vm0, %v7767_v19 }
 0x2b1   :  { %1450 = vmatprep.mubr.f32.mxu0 %v9972_v0 }
 0x2b4   :  { %5718 = vmatmul.mubr.msk.f32.gmra.mrb[48].mxu0 %vm119_vm0, %v7772_v20 }
 0x2b5   :  { %1456 = vmatprep.mubr.f32.mxu0 %v9972_v0 }
 0x2b8   :  { %5719 = vmatmul.mubr.msk.f32.gmra.mrb[50].mxu0 %vm119_vm0, %v7774_v22 }
 0x2b9   :  { %1462 = vmatprep.mubr.f32.mxu0 %v9972_v0 }
 0x2bc   :  { %5720 = vmatmul.mubr.msk.f32.gmra.mrb[52].mxu0 %vm119_vm0, %v7783_v18 }
 0x2bd   :  { %1468 = vmatprep.mubr.f32.mxu0 %v9972_v0 }
 0x2c0   :  { %5721 = vmatmul.mubr.msk.f32.gmra.mrb[54].mxu0 %vm119_vm0, %v7789_v23 }
 0x2c1   :  { %1474 = vmatprep.mubr.f32.mxu0 %v9972_v0 }
 0x2c4   :  { %5722 = vmatmul.mubr.msk.f32.gmra.mrb[56].mxu0 %vm119_vm0, %v7794_v24 }
 0x2c5   :  { %1480 = vmatprep.mubr.f32.mxu0 %v9972_v0 }
 0x2c8   :  { %5723 = vmatmul.mubr.msk.f32.gmra.mrb[58].mxu0 %vm119_vm0, %v7796_v25 }
 0x2c9   :  { %1881 = vmatprep.mubr.f32.mxu0 %v9972_v0 }
 0x2cc   :  { %5752 = vmatmul.mubr.msk.f32.vlgmr.msra.gmra.mrb[4].mxu0 %vm119_vm0, %v7642_v39  ;;  %v8072_v39 = vpack.c.bf16 %v3979_v27, %v3977_v15  ;;  %v8111_v15 = vpack.c.bf16 %v4000_v7, %v3998_v6  ;;  %v3997_v27 = vld [vmem:[#allocation12 + $0x8e0] sm:$0xff]  ;;  %v2805_v7 = vld [vmem:[#allocation12 + $0x368] sm:$0xff] }
 0x2cd   :  { %1887 = vmatprep.mubr.f32.mxu0 %v9972_v0  ;;  %6559 = vmatpush1.bf16.msra.mxu0 %v8055_v61 }
 0x2ce   :  { %6561 = vmatprep.subr.bf16.mxu0 %v8057_v62  ;;  %10086 = vst [vmem:[#allocation27_spill] sm:$0xff] %v8072_v39  ;;  %10095 = vst [vmem:[#allocation36_spill] sm:$0xff] %v8111_v15  ;;  %v2695_v62 = vld [vmem:[#allocation12 + $0x18] sm:$0xff] }
 0x2d0   :  { %5753 = vmatmul.mubr.msk.f32.gmra.mrb[6].mxu0 %vm119_vm0, %v7651_v43  ;;  %v8081_v43 = vpack.c.bf16 %v3983_v33, %v3981_v31  ;;  %v2795_v31 = vld [vmem:[#allocation12 + $0x318] sm:$0xff] }
 0x2d1   :  { %1893 = vmatprep.mubr.f32.mxu0 %v9972_v0  ;;  %6563 = vmatpush1.bf16.msra.mxu0 %v8063_v10  ;;  %v6300_v33 = vpack.c.bf16 %v2795_v31, %v2793_v29  ;;  %v2806_v29 = vld [vmem:[#allocation12 + $0x370] sm:$0xff]  ;;  %v2693_v10 = vld [vmem:[#allocation12 + $0x8] sm:$0xff] }
 0x2d2   :  { %6565 = vmatprep.subr.bf16.mxu0 %v8066_v12  ;;  %10088 = vst [vmem:[#allocation29_spill] sm:$0xff] %v8081_v43  ;;  %v2887_v12 = vld [vmem:[#allocation12 + $0x5f8] sm:$0xff] }
 0x2d3   :  { %6301 = vmatprep.subr.bf16.mxu1 %v6300_v33  ;;  %v2809_v33 = vld [vmem:[#allocation12 + $0x388] sm:$0xff] }
 0x2d4   :  { %5754 = vmatmul.mubr.msk.f32.gmra.mrb[8].mxu0 %vm119_vm0, %v7659_v48  ;;  %v8090_v48 = vpack.c.bf16 %v3987_v38, %v3985_v37  ;;  %v6302_v37 = vpack.c.bf16 %v2794_v35, %v2792_v34  ;;  %v2799_v38 = vld [vmem:[#allocation12 + $0x338] sm:$0xff]  ;;  %v2808_v35 = vld [vmem:[#allocation12 + $0x380] sm:$0xff] }
 0x2d5   :  { %1899 = vmatprep.mubr.f32.mxu0 %v9972_v0  ;;  %6567 = vmatpush1.bf16.msra.mxu0 %v8072_v39  ;;  %v2811_v34 = vld [vmem:[#allocation12 + $0x398] sm:$0xff]  ;;  %v2885_v39 = vld [vmem:[#allocation12 + $0x5e8] sm:$0xff] }
 0x2d6   :  { %6569 = vmatprep.subr.bf16.mxu0 %v8075_v30  ;;  %10090 = vst [vmem:[#allocation31_spill] sm:$0xff] %v8090_v48  ;;  %6303 = vmatpush1.bf16.msra.mxu1 %v6302_v37  ;;  %v2810_v37 = vld [vmem:[#allocation12 + $0x390] sm:$0xff]  ;;  %v2883_v30 = vld [vmem:[#allocation12 + $0x5d8] sm:$0xff] }
 0x2d8   :  { %5755 = vmatmul.mubr.msk.f32.gmra.mrb[10].mxu0 %vm119_vm0, %v7665_v49  ;;  %v8099_v49 = vpack.c.bf16 %v3991_v50, %v3989_v46  ;;  %v2798_v46 = vld [vmem:[#allocation12 + $0x330] sm:$0xff] }
 0x2d9   :  { %1905 = vmatprep.mubr.f32.mxu0 %v9972_v0  ;;  %6571 = vmatpush1.bf16.msra.mxu0 %v8081_v43  ;;  %v6306_v50 = vpack.c.bf16 %v2798_v46, %v2796_v42  ;;  %v2812_v42 = vld [vmem:[#allocation12 + $0x3a0] sm:$0xff]  ;;  %v2814_v46 = vld [vmem:[#allocation12 + $0x3b0] sm:$0xff]  ;;  %v2881_v43 = vld [vmem:[#allocation12 + $0x5c8] sm:$0xff] }
 0x2da   :  { %6573 = vmatprep.subr.bf16.mxu0 %v8084_v36  ;;  %10092 = vst [vmem:[#allocation33_spill] sm:$0xff] %v8099_v49  ;;  %v2879_v36 = vld [vmem:[#allocation12 + $0x5b8] sm:$0xff] }
 0x2dc   :  { %5756 = vmatmul.mubr.msk.f32.gmra.mrb[12].mxu0 %vm119_vm0, %v7673_v52  ;;  %v8108_v52 = vpack.c.bf16 %v3995_v3, %v3993_v2  ;;  %v2802_v3 = vld [vmem:[#allocation12 + $0x350] sm:$0xff] }
 0x2dd   :  { %1911 = vmatprep.mubr.f32.mxu0 %v9972_v0  ;;  %6575 = vmatpush1.bf16.msra.mxu0 %v8090_v48  ;;  %v6310_v6 = vpack.c.bf16 %v2802_v3, %v2800_v54  ;;  %v2816_v54 = vld [vmem:[#allocation12 + $0x3c0] sm:$0xff]  ;;  %v2877_v48 = vld [vmem:[#allocation12 + $0x5a8] sm:$0xff] }
 0x2de   :  { %6577 = vmatprep.subr.bf16.mxu0 %v8093_v44  ;;  %10094 = vst [vmem:[#allocation35_spill] sm:$0xff] %v8108_v52  ;;  %v2875_v44 = vld [vmem:[#allocation12 + $0x598] sm:$0xff] }
 0x2e0   :  { %5757 = vmatmul.mubr.msk.f32.gmra.mrb[14].mxu0 %vm119_vm0, %v7679_v53  ;;  %v8117_v53 = vpack.c.bf16 %v3999_v28, %v3997_v27  ;;  %v2807_v27 = vld [vmem:[#allocation12 + $0x378] sm:$0xff]  ;;  %v2804_v28 = vld [vmem:[#allocation12 + $0x360] sm:$0xff] }
 0x2e1   :  { %1917 = vmatprep.mubr.f32.mxu0 %v9972_v0  ;;  %6579 = vmatpush1.bf16.msra.mxu0 %v8099_v49  ;;  %v6314_v31 = vpack.c.bf16 %v2806_v29, %v2804_v28  ;;  %v2822_v28 = vld [vmem:[#allocation12 + $0x3f0] sm:$0xff]  ;;  %v2825_v29 = vld [vmem:[#allocation12 + $0x408] sm:$0xff] }
 0x2e2   :  { %6581 = vmatprep.subr.bf16.mxu0 %v8102_v55  ;;  %10096 = vst [vmem:[#allocation37_spill] sm:$0xff] %v8117_v53  ;;  %v2869_v55 = vld [vmem:[#allocation12 + $0x568] sm:$0xff] }
 0x2e3   :  { %v2873_v49 = vld [vmem:[#allocation12 + $0x588] sm:$0xff] }
 0x2e4   :  { %5758 = vmatmul.mubr.msk.f32.gmra.mrb[16].mxu0 %vm119_vm0, %v7686_v56  ;;  %v2797_v56 = vld [vmem:[#allocation12 + $0x328] sm:$0xff] }
 0x2e5   :  { %1923 = vmatprep.mubr.f32.mxu0 %v9972_v0  ;;  %6583 = vmatpush1.bf16.msra.mxu0 %v8108_v52  ;;  %v6304_v40 = vpack.c.bf16 %v2799_v38, %v2797_v56  ;;  %v6318_v56 = vpack.c.bf16 %v2810_v37, %v2808_v35  ;;  %v2813_v38 = vld [vmem:[#allocation12 + $0x3a8] sm:$0xff]  ;;  %v2831_v37 = vld [vmem:[#allocation12 + $0x438] sm:$0xff]  ;;  %v2866_v52 = vld [vmem:[#allocation12 + $0x550] sm:$0xff] }
 0x2e6   :  { %6585 = vmatprep.subr.bf16.mxu0 %v8111_v15  ;;  %v2864_v15 = vld [vmem:[#allocation12 + $0x540] sm:$0xff] }
 0x2e7   :  { %6305 = vmatprep.subr.bf16.mxu1 %v6304_v40  ;;  %v2815_v40 = vld [vmem:[#allocation12 + $0x3b8] sm:$0xff] }
 0x2e8   :  { %5759 = vmatmul.mubr.msk.f32.gmra.mrb[18].mxu0 %vm119_vm0, %v7692_v57  ;;  %6307 = vmatpush1.bf16.msra.mxu1 %v6306_v50  ;;  %v2803_v57 = vld [vmem:[#allocation12 + $0x358] sm:$0xff]  ;;  %v6322_v50 = vpack.c.bf16 %v2814_v46, %v2812_v42  ;;  %v2833_v42 = vld [vmem:[#allocation12 + $0x448] sm:$0xff]  ;;  %v2832_v46 = vld [vmem:[#allocation12 + $0x440] sm:$0xff] }
 0x2e9   :  { %1929 = vmatprep.mubr.f32.mxu0 %v9972_v0  ;;  %6587 = vmatpush1.bf16.msra.mxu0 %v8117_v53  ;;  %v6308_v2 = vpack.c.bf16 %v2803_v57, %v2801_v51  ;;  %v2817_v51 = vld [vmem:[#allocation12 + $0x3c8] sm:$0xff]  ;;  %v2819_v57 = vld [vmem:[#allocation12 + $0x3d8] sm:$0xff] }
 0x2ea   :  { %6588 = vmatprep.subr.bf16.mxu0 %v9970_v45 }
 0x2eb   :  { %6309 = vmatprep.subr.bf16.mxu1 %v6308_v2  ;;  %v2818_v2 = vld [vmem:[#allocation12 + $0x3d0] sm:$0xff] }
 0x2ec   :  { %5760 = vmatmul.mubr.msk.f32.gmra.mrb[20].mxu0 %vm119_vm0, %v7697_v58  ;;  %6311 = vmatpush1.bf16.msra.mxu1 %v6310_v6  ;;  %v6312_v58 = vpack.c.bf16 %v2807_v27, %v2805_v7  ;;  %v6326_v3 = vpack.c.bf16 %v2818_v2, %v2816_v54  ;;  %v2821_v6 = vld [vmem:[#allocation12 + $0x3e8] sm:$0xff]  ;;  %v2823_v7 = vld [vmem:[#allocation12 + $0x3f8] sm:$0xff]  ;;  %v2820_v27 = vld [vmem:[#allocation12 + $0x3e0] sm:$0xff] }
 0x2ed   :  { %1935 = vmatprep.mubr.f32.mxu0 %v9972_v0  ;;  %v2839_v54 = vld [vmem:[#allocation12 + $0x478] sm:$0xff]  ;;  %v2838_v2 = vld [vmem:[#allocation12 + $0x470] sm:$0xff] }
 0x2ee   :  { %6313 = vmatprep.subr.bf16.mxu1 %v6312_v58  ;;  %v6330_v58 = vpack.c.bf16 %v2822_v28, %v2820_v27  ;;  %v2842_v28 = vld [vmem:[#allocation12 + $0x490] sm:$0xff] }
 0x2f0   :  { %5761 = vmatmul.mubr.msk.f32.gmra.mrb[22].mxu0 %vm119_vm0, %v7699_v59  ;;  %6315 = vmatpush1.bf16.msra.mxu1 %v6314_v31  ;;  %v6316_v59 = vpack.c.bf16 %v2811_v34, %v2809_v33  ;;  %v2827_v31 = vld [vmem:[#allocation12 + $0x418] sm:$0xff]  ;;  %v2824_v33 = vld [vmem:[#allocation12 + $0x400] sm:$0xff]  ;;  %v2826_v34 = vld [vmem:[#allocation12 + $0x410] sm:$0xff] }
 0x2f1   :  { %1941 = vmatprep.mubr.f32.mxu0 %v9972_v0  ;;  %v6334_v35 = vpack.c.bf16 %v2826_v34, %v2824_v33  ;;  %v2844_v33 = vld [vmem:[#allocation12 + $0x4a0] sm:$0xff]  ;;  %v2849_v34 = vld [vmem:[#allocation12 + $0x4c8] sm:$0xff] }
 0x2f2   :  { %6317 = vmatprep.subr.bf16.mxu1 %v6316_v59  ;;  %v2829_v59 = vld [vmem:[#allocation12 + $0x428] sm:$0xff] }
 0x2f4   :  { %5762 = vmatmul.mubr.msk.f32.gmra.mrb[24].mxu0 %vm119_vm0, %v7708_v63  ;;  %6319 = vmatpush1.bf16.msra.mxu1 %v6318_v56  ;;  %v6320_v63 = vpack.c.bf16 %v2815_v40, %v2813_v38  ;;  %v2828_v56 = vld [vmem:[#allocation12 + $0x420] sm:$0xff]  ;;  %v2830_v38 = vld [vmem:[#allocation12 + $0x430] sm:$0xff] }
 0x2f5   :  { %1947 = vmatprep.mubr.f32.mxu0 %v9972_v0  ;;  %v6338_v40 = vpack.c.bf16 %v2830_v38, %v2828_v56  ;;  %v2850_v56 = vld [vmem:[#allocation12 + $0x4d0] sm:$0xff]  ;;  %v2855_v38 = vld [vmem:[#allocation12 + $0x4f8] sm:$0xff] }
 0x2f6   :  { %6321 = vmatprep.subr.bf16.mxu1 %v6320_v63  ;;  %v2835_v63 = vld [vmem:[#allocation12 + $0x458] sm:$0xff] }
 0x2f8   :  { %5763 = vmatmul.mubr.msk.f32.gmra.mrb[26].mxu0 %vm119_vm0, %v7716_v1  ;;  %6323 = vmatpush1.bf16.msra.mxu1 %v6322_v50  ;;  %v6324_v1 = vpack.c.bf16 %v2819_v57, %v2817_v51  ;;  %v2834_v50 = vld [vmem:[#allocation12 + $0x450] sm:$0xff]  ;;  %v2837_v57 = vld [vmem:[#allocation12 + $0x468] sm:$0xff] }
 0x2f9   :  { %1953 = vmatprep.mubr.f32.mxu0 %v9972_v0  ;;  %v6342_v51 = vpack.c.bf16 %v2834_v50, %v2832_v46 }
 0x2fa   :  { %6325 = vmatprep.subr.bf16.mxu1 %v6324_v1  ;;  %v2836_v1 = vld [vmem:[#allocation12 + $0x460] sm:$0xff] }
 0x2fc   :  { %5764 = vmatmul.mubr.msk.f32.gmra.mrb[28].mxu0 %vm119_vm0, %v7721_v4  ;;  %6327 = vmatpush1.bf16.msra.mxu1 %v6326_v3  ;;  %v6328_v4 = vpack.c.bf16 %v2823_v7, %v2821_v6  ;;  %v2841_v3 = vld [vmem:[#allocation12 + $0x488] sm:$0xff]  ;;  %v2843_v6 = vld [vmem:[#allocation12 + $0x498] sm:$0xff]  ;;  %v6346_v7 = vpack.c.bf16 %v2838_v2, %v2836_v1 }
 0x2fd   :  { %1959 = vmatprep.mubr.f32.mxu0 %v9972_v0  ;;  %v6348_v27 = vpack.c.bf16 %v2843_v6, %v2841_v3 }
 0x2fe   :  { %6329 = vmatprep.subr.bf16.mxu1 %v6328_v4  ;;  %v2840_v4 = vld [vmem:[#allocation12 + $0x480] sm:$0xff] }
 0x300   :  { %5765 = vmatmul.mubr.msk.f32.gmra.mrb[30].mxu0 %vm119_vm0, %v7725_v5  ;;  %6331 = vmatpush1.bf16.msra.mxu1 %v6330_v58  ;;  %v6332_v5 = vpack.c.bf16 %v2827_v31, %v2825_v29  ;;  %v2845_v58 = vld [vmem:[#allocation12 + $0x4a8] sm:$0xff]  ;;  %v2847_v29 = vld [vmem:[#allocation12 + $0x4b8] sm:$0xff] }
 0x301   :  { %1965 = vmatprep.mubr.f32.mxu0 %v9972_v0  ;;  %v6352_v31 = vpack.c.bf16 %v2847_v29, %v2845_v58 }
 0x302   :  { %6333 = vmatprep.subr.bf16.mxu1 %v6332_v5  ;;  %v2846_v5 = vld [vmem:[#allocation12 + $0x4b0] sm:$0xff] }
 0x304   :  { %5766 = vmatmul.mubr.msk.f32.gmra.mrb[32].mxu0 %vm119_vm0, %v7734_v8  ;;  %6335 = vmatpush1.bf16.msra.mxu1 %v6334_v35  ;;  %v6336_v8 = vpack.c.bf16 %v2831_v37, %v2829_v59  ;;  %v2851_v35 = vld [vmem:[#allocation12 + $0x4d8] sm:$0xff]  ;;  %v6354_v59 = vpack.c.bf16 %v2846_v5, %v2844_v33 }
 0x305   :  { %1971 = vmatprep.mubr.f32.mxu0 %v9972_v0  ;;  %v6356_v37 = vpack.c.bf16 %v2851_v35, %v2849_v34 }
 0x306   :  { %6337 = vmatprep.subr.bf16.mxu1 %v6336_v8 }
 0x308   :  { %5767 = vmatmul.mubr.msk.f32.gmra.mrb[34].mxu0 %vm119_vm0, %v7742_v9  ;;  %6339 = vmatpush1.bf16.msra.mxu1 %v6338_v40  ;;  %v6340_v9 = vpack.c.bf16 %v2835_v63, %v2833_v42  ;;  %v2852_v42 = vld [vmem:[#allocation12 + $0x4e0] sm:$0xff]  ;;  %v2854_v63 = vld [vmem:[#allocation12 + $0x4f0] sm:$0xff] }
 0x309   :  { %1977 = vmatprep.mubr.f32.mxu0 %v9972_v0  ;;  %v6362_v46 = vpack.c.bf16 %v2854_v63, %v2852_v42 }
 0x30a   :  { %6341 = vmatprep.subr.bf16.mxu1 %v6340_v9  ;;  %v2859_v9 = vld [vmem:[#allocation12 + $0x518] sm:$0xff] }
 0x30c   :  { %5768 = vmatmul.mubr.msk.f32.gmra.mrb[36].mxu0 %vm119_vm0, %v7747_v13  ;;  %6343 = vmatpush1.bf16.msra.mxu1 %v6342_v51  ;;  %v6344_v13 = vpack.c.bf16 %v2839_v54, %v2837_v57 }
 0x30d   :  { %1983 = vmatprep.mubr.f32.mxu0 %v9972_v0 }
 0x30e   :  { %6345 = vmatprep.subr.bf16.mxu1 %v6344_v13 }
 0x310   :  { %5769 = vmatmul.mubr.msk.f32.gmra.mrb[38].mxu0 %vm119_vm0, %v7751_v14  ;;  %6347 = vmatpush1.bf16.msra.mxu1 %v6346_v7  ;;  %v6350_v14 = vpack.c.bf16 %v2842_v28, %v2840_v4 }
 0x311   :  { %1989 = vmatprep.mubr.f32.mxu0 %v9972_v0  ;;  %6349 = vmatprep.subr.bf16.mxu1 %v6348_v27 }
 0x314   :  { %5770 = vmatmul.mubr.msk.f32.gmra.mrb[40].mxu0 %vm119_vm0, %v7760_v16  ;;  %6351 = vmatpush1.bf16.msra.mxu1 %v6350_v14  ;;  %v2848_v16 = vld [vmem:[#allocation12 + $0x4c0] sm:$0xff] }
 0x315   :  { %1995 = vmatprep.mubr.f32.mxu0 %v9972_v0  ;;  %6353 = vmatprep.subr.bf16.mxu1 %v6352_v31  ;;  %v6358_v8 = vpack.c.bf16 %v2850_v56, %v2848_v16 }
 0x318   :  { %5771 = vmatmul.mubr.msk.f32.gmra.mrb[42].mxu0 %vm119_vm0, %v7767_v19  ;;  %6355 = vmatpush1.bf16.msra.mxu1 %v6354_v59  ;;  %v2853_v19 = vld [vmem:[#allocation12 + $0x4e8] sm:$0xff] }
 0x319   :  { %2001 = vmatprep.mubr.f32.mxu0 %v9972_v0  ;;  %6357 = vmatprep.subr.bf16.mxu1 %v6356_v37  ;;  %v6360_v40 = vpack.c.bf16 %v2855_v38, %v2853_v19 }
 0x31c   :  { %5772 = vmatmul.mubr.msk.f32.gmra.mrb[44].mxu0 %vm119_vm0, %v7772_v20  ;;  %6359 = vmatpush1.bf16.msra.mxu1 %v6358_v8  ;;  %v2857_v20 = vld [vmem:[#allocation12 + $0x508] sm:$0xff] }
 0x31d   :  { %2007 = vmatprep.mubr.f32.mxu0 %v9972_v0  ;;  %6361 = vmatprep.subr.bf16.mxu1 %v6360_v40  ;;  %v6364_v50 = vpack.c.bf16 %v2859_v9, %v2857_v20 }
 0x320   :  { %5773 = vmatmul.mubr.msk.f32.gmra.mrb[46].mxu0 %vm119_vm0, %v7774_v22  ;;  %6363 = vmatpush1.bf16.msra.mxu1 %v6362_v46  ;;  %v8178_v22 = vld [vmem:[#allocation10] sm:$0x7] }
 0x321   :  { %2013 = vmatprep.mubr.f32.mxu0 %v9972_v0  ;;  %6365 = vmatprep.subr.bf16.mxu1 %v6364_v50 }
 0x324   :  { %5774 = vmatmul.mubr.msk.f32.gmra.mrb[48].mxu0 %vm119_vm0, %v7783_v18  ;;  %v8183_v18 = vrot.slane %v8178_v22, %v236_v41 }
 0x325   :  { %2019 = vmatprep.mubr.f32.mxu0 %v9972_v0 }
 0x328   :  { %5775 = vmatmul.mubr.msk.f32.gmra.mrb[50].mxu0 %vm119_vm0, %v7789_v23 }
 0x329   :  { %2025 = vmatprep.mubr.f32.mxu0 %v9972_v0 }
 0x32c   :  { %5776 = vmatmul.mubr.msk.f32.gmra.mrb[52].mxu0 %vm119_vm0, %v7794_v24 }
 0x32d   :  { %2031 = vmatprep.mubr.f32.mxu0 %v9972_v0 }
 0x330   :  { %5777 = vmatmul.mubr.msk.f32.gmra.mrb[54].mxu0 %vm119_vm0, %v7796_v25 }
 0x331   :  { %2037 = vmatprep.mubr.f32.mxu0 %v9972_v0 }
 0x334   :  { %5778 = vmatmul.mubr.msk.f32.gmra.mrb[56].mxu0 %vm119_vm0, %v7805_v26  ;;  %v6122_v23 = vpop.f32.mrb[4].mxu1 }
 0x335   :  { %v2361_v24 = vadd.f32 %v6122_v23, %v8183_v18  ;;  %v2116_v51 = vpop.f32.mrb[5].mxu1  ;;  %2043 = vmatprep.mubr.f32.mxu0 %v9972_v0 }
 0x336   :  { %v8191_v25 = vadd.f32 %v8183_v18, %v2116_v51 }
 0x337   :  { %v8197_v54 = vmax.f32 %v2361_v24, 0.0 }
 0x338   :  { %5779 = vmatmul.mubr.msk.f32.gmra.mrb[58].mxu0 %vm119_vm0, %v8006_v60  ;;  %v6125_v11 = vpop.f32.mrb[6].mxu1 }
 0x339   :  { %v2367_v41 = vadd.f32 %v6125_v11, %v8183_v18  ;;  %v2126_v57 = vpop.f32.mrb[7].mxu1  ;;  %4298 = vmatprep.mubr.f32.mxu0 %v9972_v0 }
 0x33a   :  { %v2364_v26 = vadd.f32 %v8183_v18, %v2126_v57 }
 0x33b   :  { %v8209_v4 = vmax.f32 %v2367_v41, 0.0 }
 0x33c   :  { %v6128_v1 = vpop.f32.mrb[8].mxu1  ;;  %4299 = vmatmul.mubr.f32.vlgmr.msra.gmra.mrb[60].mxu0 %v8197_v54  ;;  %v8203_v3 = vmax.f32 %v2364_v26, 0.0 }
 0x33d   :  { %v2373_v13 = vadd.f32 %v6128_v1, %v8183_v18  ;;  %v2136_v2 = vpop.f32.mrb[9].mxu1  ;;  %4304 = vmatprep.mubr.f32.mxu0 %v9972_v0 }
 0x33e   :  { %v2370_v60 = vadd.f32 %v8183_v18, %v2136_v2 }
 0x33f   :  { %v8221_v59 = vmax.f32 %v2373_v13, 0.0 }
 0x340   :  { %v6131_v6 = vpop.f32.mrb[10].mxu1  ;;  %4305 = vmatmul.mubr.f32.gmra.mrb[62].mxu0 %v8203_v3  ;;  %v8215_v31 = vmax.f32 %v2370_v60, 0.0 }
 0x341   :  { %v2379_v7 = vadd.f32 %v6131_v6, %v8183_v18  ;;  %v2146_v27 = vpop.f32.mrb[11].mxu1  ;;  %4310 = vmatprep.mubr.f32.mxu0 %v9972_v0 }
 0x342   :  { %v2376_v28 = vadd.f32 %v8183_v18, %v2146_v27 }
 0x343   :  { %v8233_v46 = vmax.f32 %v2379_v7, 0.0 }
 0x344   :  { %v6134_v58 = vpop.f32.mrb[12].mxu1  ;;  %4311 = vmatmul.mubr.f32.gmra.mrb[64].mxu0 %v8209_v4  ;;  %v8227_v19 = vmax.f32 %v2376_v28, 0.0 }
 0x345   :  { %v2385_v29 = vadd.f32 %v6134_v58, %v8183_v18  ;;  %v2156_v14 = vpop.f32.mrb[13].mxu1  ;;  %4316 = vmatprep.mubr.f32.mxu0 %v9972_v0 }
 0x346   :  { %v2382_v33 = vadd.f32 %v8183_v18, %v2156_v14 }
 0x347   :  { %v8245_v26 = vmax.f32 %v2385_v29, 0.0 }
 0x348   :  { %v6137_v5 = vpop.f32.mrb[14].mxu1  ;;  %4317 = vmatmul.mubr.f32.gmra.mrb[66].mxu0 %v8215_v31  ;;  %v8239_v24 = vmax.f32 %v2382_v33, 0.0 }
 0x349   :  { %v2391_v34 = vadd.f32 %v6137_v5, %v8183_v18  ;;  %v2166_v35 = vpop.f32.mrb[15].mxu1  ;;  %4322 = vmatprep.mubr.f32.mxu0 %v9972_v0 }
 0x34a   :  { %v2388_v37 = vadd.f32 %v8183_v18, %v2166_v35 }
 0x34b   :  { %v8259_v29 = vmax.f32 %v2391_v34, 0.0 }
 0x34c   :  { %v6140_v16 = vpop.f32.mrb[16].mxu1  ;;  %4323 = vmatmul.mubr.f32.gmra.mrb[68].mxu0 %v8221_v59  ;;  %v8251_v6 = vmax.f32 %v2388_v37, 0.0 }
 0x34d   :  { %v2397_v56 = vadd.f32 %v6140_v16, %v8183_v18  ;;  %v2176_v8 = vpop.f32.mrb[17].mxu1  ;;  %4328 = vmatprep.mubr.f32.mxu0 %v9972_v0 }
 0x34e   :  { %v2394_v38 = vadd.f32 %v8183_v18, %v2176_v8 }
 0x350   :  { %v6143_v40 = vpop.f32.mrb[18].mxu1  ;;  %4329 = vmatmul.mubr.f32.gmra.mrb[70].mxu0 %v8227_v19  ;;  %v8267_v37 = vmax.f32 %v2394_v38, 0.0 }
 0x351   :  { %v2403_v42 = vadd.f32 %v6143_v40, %v8183_v18  ;;  %v2186_v63 = vpop.f32.mrb[19].mxu1  ;;  %4334 = vmatprep.mubr.f32.mxu0 %v9972_v0 }
 0x352   :  { %v2400_v20 = vadd.f32 %v8183_v18, %v2186_v63  ;;  %v8277_v63 = vmax.f32 %v2397_v56, 0.0 }
 0x354   :  { %v6146_v9 = vpop.f32.mrb[20].mxu1  ;;  %4335 = vmatmul.mubr.f32.gmra.mrb[72].mxu0 %v8233_v46  ;;  %v8284_v38 = vmax.f32 %v2400_v20, 0.0 }
 0x355   :  { %v2409_v50 = vadd.f32 %v6146_v9, %v8183_v18  ;;  %v2196_v23 = vpop.f32.mrb[21].mxu1  ;;  %4340 = vmatprep.mubr.f32.mxu0 %v9972_v0 }
 0x356   :  { %v2406_v51 = vadd.f32 %v8183_v18, %v2196_v23  ;;  %v8288_v23 = vmax.f32 %v2403_v42, 0.0 }
 0x358   :  { %v6149_v11 = vpop.f32.mrb[22].mxu1  ;;  %4341 = vmatmul.mubr.f32.gmra.mrb[74].mxu0 %v8239_v24  ;;  %v8292_v56 = vmax.f32 %v2406_v51, 0.0 }
 0x359   :  { %v2415_v41 = vadd.f32 %v6149_v11, %v8183_v18  ;;  %v2206_v57 = vpop.f32.mrb[23].mxu1  ;;  %4346 = vmatprep.mubr.f32.mxu0 %v9972_v0 }
 0x35a   :  { %v2412_v1 = vadd.f32 %v8183_v18, %v2206_v57 }
 0x35b   :  { %v8304_v42 = vmax.f32 %v2415_v41, 0.0  ;;  %v8321_v41 = vrot.slane %v8178_v22, %v7583_v32  ;;  %v2867_v32 = vld [vmem:[#allocation12 + $0x558] sm:$0xff] }
 0x35c   :  { %v6152_v13 = vpop.f32.mrb[24].mxu1  ;;  %4347 = vmatmul.mubr.f32.gmra.mrb[76].mxu0 %v8245_v26  ;;  %v8300_v20 = vmax.f32 %v2412_v1, 0.0 }
 0x35d   :  { %v2421_v2 = vadd.f32 %v6152_v13, %v8183_v18  ;;  %v2216_v60 = vpop.f32.mrb[25].mxu1  ;;  %4352 = vmatprep.mubr.f32.mxu0 %v9972_v0 }
 0x35e   :  { %v2418_v7 = vadd.f32 %v8183_v18, %v2216_v60  ;;  %v2856_v60 = vld [vmem:[#allocation12 + $0x500] sm:$0xff] }
 0x360   :  { %v6155_v27 = vpop.f32.mrb[26].mxu1  ;;  %4353 = vmatmul.mubr.f32.gmra.mrb[78].mxu0 %v8251_v6  ;;  %v8308_v51 = vmax.f32 %v2418_v7, 0.0 }
 0x361   :  { %v8256_v28 = vadd.f32 %v6155_v27, %v8183_v18  ;;  %v2226_v58 = vpop.f32.mrb[27].mxu1  ;;  %4358 = vmatprep.mubr.f32.mxu0 %v9972_v0  ;;  %v2861_v27 = vld [vmem:[#allocation12 + $0x528] sm:$0xff] }
 0x362   :  { %v2424_v14 = vadd.f32 %v8183_v18, %v2226_v58  ;;  %v2863_v58 = vld [vmem:[#allocation12 + $0x538] sm:$0xff] }
 0x363   :  { %v6368_v45 = vpack.c.bf16 %v2863_v58, %v2861_v27 }
 0x364   :  { %v6158_v33 = vpop.f32.mrb[28].mxu1  ;;  %4359 = vmatmul.mubr.f32.gmra.mrb[80].mxu0 %v8259_v29  ;;  %v8316_v11 = vmax.f32 %v2424_v14, 0.0 }
 0x365   :  { %v8264_v5 = vadd.f32 %v6158_v33, %v8183_v18  ;;  %v2236_v35 = vpop.f32.mrb[29].mxu1  ;;  %4364 = vmatprep.mubr.f32.mxu0 %v9972_v0 }
 0x366   :  { %v8270_v16 = vadd.f32 %v8183_v18, %v2236_v35 }
 0x368   :  { %v6161_v8 = vpop.f32.mrb[30].mxu1  ;;  %4365 = vmatmul.mubr.f32.gmra.mrb[82].mxu0 %v8267_v37 }
 0x369   :  { %v8274_v34 = vadd.f32 %v6161_v8, %v8183_v18  ;;  %v2246_v40 = vpop.f32.mrb[31].mxu1  ;;  %4370 = vmatprep.mubr.f32.mxu0 %v9972_v0 }
 0x36a   :  { %v8280_v9 = vadd.f32 %v8183_v18, %v2246_v40  ;;  %v8296_v18 = vmax.f32 %v2409_v50, 0.0  ;;  %v8312_v50 = vmax.f32 %v2421_v2, 0.0  ;;  %v2858_v2 = vld [vmem:[#allocation12 + $0x510] sm:$0xff] }
 0x36b   :  { %10097 = vst [vmem:[#allocation38_spill] sm:$0xff] %v8274_v34  ;;  %v6366_v35 = vpack.c.bf16 %v2858_v2, %v2856_v60 }
 0x36c   :  { %4371 = vmatmul.mubr.f32.gmra.mrb[84].mxu0 %v8277_v63 }
 0x36d   :  { %4376 = vmatprep.mubr.f32.mxu0 %v9972_v0 }
 0x370   :  { %4377 = vmatmul.mubr.f32.gmra.mrb[86].mxu0 %v8284_v38 }
 0x371   :  { %4382 = vmatprep.mubr.f32.mxu0 %v9972_v0 }
 0x374   :  { %4383 = vmatmul.mubr.f32.gmra.mrb[88].mxu0 %v8288_v23 }
 0x375   :  { %4388 = vmatprep.mubr.f32.mxu0 %v9972_v0 }
 0x378   :  { %4389 = vmatmul.mubr.f32.gmra.mrb[90].mxu0 %v8292_v56 }
 0x379   :  { %4394 = vmatprep.mubr.f32.mxu0 %v9972_v0 }
 0x37c   :  { %4395 = vmatmul.mubr.f32.gmra.mrb[92].mxu0 %v8296_v18 }
 0x37d   :  { %4400 = vmatprep.mubr.f32.mxu0 %v9972_v0 }
 0x380   :  { %4401 = vmatmul.mubr.f32.gmra.mrb[94].mxu0 %v8300_v20 }
 0x381   :  { %4406 = vmatprep.mubr.f32.mxu0 %v9972_v0 }
 0x384   :  { %4407 = vmatmul.mubr.f32.gmra.mrb[96].mxu0 %v8304_v42 }
 0x385   :  { %4412 = vmatprep.mubr.f32.mxu0 %v9972_v0 }
 0x388   :  { %4413 = vmatmul.mubr.f32.gmra.mrb[98].mxu0 %v8308_v51 }
 0x389   :  { %4418 = vmatprep.mubr.f32.mxu0 %v9972_v0 }
 0x38c   :  { %4419 = vmatmul.mubr.f32.gmra.mrb[100].mxu0 %v8312_v50 }
 0x38d   :  { %4424 = vmatprep.mubr.f32.mxu0 %v9972_v0  ;;  %v2862_v0 = vld [vmem:[#allocation12 + $0x530] sm:$0xff] }
 0x390   :  { %4425 = vmatmul.mubr.f32.gmra.mrb[102].mxu0 %v8316_v11 }
 0x39f   :  { %v1883_v57 = vpop.f32.mrb[4].mxu0 }
 0x3a0   :  { %v8324_v1 = vadd.f32 %v8321_v41, %v1883_v57  ;;  %v1885_v13 = vpop.f32.mrb[5].mxu0  ;;  %v2860_v57 = vld [vmem:[#allocation12 + $0x520] sm:$0xff] }
 0x3a1   :  { %v8327_v7 = vadd.f32 %v7580_v21, %v1885_v13  ;;  %v2865_v13 = vld [vmem:[#allocation12 + $0x548] sm:$0xff]  ;;  %v6370_v53 = vpack.c.bf16 %v2862_v0, %v2860_v57  ;;  %v6374_v0 = vpack.c.bf16 %v2866_v52, %v2864_v15 }
 0x3a2   :  { %v9981_v8 = vmax.f32 %v8324_v1, 0.0 }
 0x3a3   :  { %v1889_v14 = vpop.f32.mrb[6].mxu0  ;;  %v9979_v33 = vmax.f32 %v8327_v7, 0.0 }
 0x3a4   :  { %v2359_v22 = vadd.f32 %v8321_v41, %v1889_v14  ;;  %v1891_v40 = vpop.f32.mrb[7].mxu0 }
 0x3a5   :  { %v2360_v17 = vadd.f32 %v7580_v21, %v1891_v40  ;;  %2952 = vmatprep.mubr.f32.mxu1 %v9979_v33  ;;  %v6372_v40 = vpack.c.bf16 %v2867_v32, %v2865_v13  ;;  %v2868_v13 = vld [vmem:[#allocation12 + $0x560] sm:$0xff] }
 0x3a6   :  { %2953 = vmatmul.mubr.f32.vlgmr.msra.gmra.mrb[32].mxu1 %v9981_v8  ;;  %v8340_v58 = vmax.f32 %v2359_v22, 0.0  ;;  %v2871_v8 = vld [vmem:[#allocation12 + $0x578] sm:$0xff] }
 0x3a7   :  { %6367 = vmatpush1.bf16.msra.mxu1 %v6366_v35  ;;  %v1895_v60 = vpop.f32.mrb[8].mxu0  ;;  %v8337_v2 = vmax.f32 %v2360_v17, 0.0  ;;  %v6376_v32 = vpack.c.bf16 %v2871_v8, %v2869_v55  ;;  %v6380_v55 = vpack.c.bf16 %v2875_v44, %v2873_v49  ;;  %v2872_v8 = vld [vmem:[#allocation12 + $0x580] sm:$0xff]  ;;  %v6384_v44 = vpack.c.bf16 %v2879_v36, %v2877_v48 }
 0x3a8   :  { %v2362_v14 = vadd.f32 %v8321_v41, %v1895_v60  ;;  %v1897_v27 = vpop.f32.mrb[9].mxu0  ;;  %6369 = vmatprep.subr.bf16.mxu1 %v6368_v45  ;;  %v2870_v60 = vld [vmem:[#allocation12 + $0x570] sm:$0xff]  ;;  %v2876_v49 = vld [vmem:[#allocation12 + $0x5a0] sm:$0xff]  ;;  %v6388_v36 = vpack.c.bf16 %v2883_v30, %v2881_v43  ;;  %v6392_v43 = vpack.c.bf16 %v2887_v12, %v2885_v39  ;;  %v6396_v39 = vpack.c.bf16 %v2695_v62, %v2693_v10 }
 0x3a9   :  { %v2363_v33 = vadd.f32 %v7580_v21, %v1897_v27  ;;  %2958 = vmatprep.mubr.f32.mxu1 %v8337_v2  ;;  %v6378_v52 = vpack.c.bf16 %v2870_v60, %v2868_v13  ;;  %v2880_v48 = vld [vmem:[#allocation12 + $0x5c0] sm:$0xff] }
 0x3aa   :  { %2959 = vmatmul.mubr.f32.gmra.mrb[34].mxu1 %v8340_v58  ;;  %v8348_v45 = vmax.f32 %v2362_v14, 0.0 }
 0x3ab   :  { %v1901_v17 = vpop.f32.mrb[10].mxu0  ;;  %v8345_v35 = vmax.f32 %v2363_v33, 0.0  ;;  %6371 = vmatpush1.bf16.msra.mxu1 %v6370_v53 }
 0x3ac   :  { %v2365_v22 = vadd.f32 %v8321_v41, %v1901_v17  ;;  %v1903_v57 = vpop.f32.mrb[11].mxu0  ;;  %6373 = vmatprep.subr.bf16.mxu1 %v6372_v40  ;;  %v2874_v17 = vld [vmem:[#allocation12 + $0x590] sm:$0xff] }
 0x3ad   :  { %v2366_v27 = vadd.f32 %v7580_v21, %v1903_v57  ;;  %2964 = vmatprep.mubr.f32.mxu1 %v8345_v35  ;;  %v6382_v13 = vpack.c.bf16 %v2874_v17, %v2872_v8 }
 0x3ae   :  { %2965 = vmatmul.mubr.f32.gmra.mrb[36].mxu1 %v8348_v45  ;;  %v8356_v40 = vmax.f32 %v2365_v22, 0.0 }
 0x3af   :  { %v1907_v33 = vpop.f32.mrb[12].mxu0  ;;  %v8353_v53 = vmax.f32 %v2366_v27, 0.0  ;;  %6375 = vmatpush1.bf16.msra.mxu1 %v6374_v0 }
 0x3b0   :  { %v2368_v15 = vadd.f32 %v8321_v41, %v1907_v33  ;;  %v1909_v14 = vpop.f32.mrb[13].mxu0  ;;  %6377 = vmatprep.subr.bf16.mxu1 %v6376_v32  ;;  %v2878_v33 = vld [vmem:[#allocation12 + $0x5b0] sm:$0xff] }
 0x3b1   :  { %v2369_v57 = vadd.f32 %v7580_v21, %v1909_v14  ;;  %2970 = vmatprep.mubr.f32.mxu1 %v8353_v53  ;;  %v6386_v8 = vpack.c.bf16 %v2878_v33, %v2876_v49 }
 0x3b2   :  { %2971 = vmatmul.mubr.f32.gmra.mrb[38].mxu1 %v8356_v40  ;;  %v8364_v32 = vmax.f32 %v2368_v15, 0.0 }
 0x3b3   :  { %v1913_v27 = vpop.f32.mrb[14].mxu0  ;;  %v8361_v0 = vmax.f32 %v2369_v57, 0.0  ;;  %6379 = vmatpush1.bf16.msra.mxu1 %v6378_v52 }
 0x3b4   :  { %v2371_v22 = vadd.f32 %v8321_v41, %v1913_v27  ;;  %v1915_v60 = vpop.f32.mrb[15].mxu0  ;;  %6381 = vmatprep.subr.bf16.mxu1 %v6380_v55  ;;  %v2882_v27 = vld [vmem:[#allocation12 + $0x5d0] sm:$0xff] }
 0x3b5   :  { %v2372_v14 = vadd.f32 %v7580_v21, %v1915_v60  ;;  %2976 = vmatprep.mubr.f32.mxu1 %v8361_v0  ;;  %v6390_v49 = vpack.c.bf16 %v2882_v27, %v2880_v48 }
 0x3b6   :  { %2977 = vmatmul.mubr.f32.gmra.mrb[40].mxu1 %v8364_v32  ;;  %v8372_v55 = vmax.f32 %v2371_v22, 0.0 }
 0x3b7   :  { %v1919_v57 = vpop.f32.mrb[16].mxu0  ;;  %v8369_v52 = vmax.f32 %v2372_v14, 0.0  ;;  %6383 = vmatpush1.bf16.msra.mxu1 %v6382_v13 }
 0x3b8   :  { %v2374_v15 = vadd.f32 %v8321_v41, %v1919_v57  ;;  %v1921_v17 = vpop.f32.mrb[17].mxu0  ;;  %6385 = vmatprep.subr.bf16.mxu1 %v6384_v44  ;;  %v2884_v44 = vld [vmem:[#allocation12 + $0x5e0] sm:$0xff]  ;;  %v2886_v57 = vld [vmem:[#allocation12 + $0x5f0] sm:$0xff] }
 0x3b9   :  { %v2375_v60 = vadd.f32 %v7580_v21, %v1921_v17  ;;  %2982 = vmatprep.mubr.f32.mxu1 %v8369_v52 }
 0x3ba   :  { %2983 = vmatmul.mubr.f32.gmra.mrb[42].mxu1 %v8372_v55  ;;  %v8379_v33 = vmax.f32 %v2374_v15, 0.0  ;;  %v6394_v15 = vpack.c.bf16 %v2886_v57, %v2884_v44 }
 0x3bb   :  { %v8377_v14 = vmax.f32 %v2375_v60, 0.0  ;;  %v1925_v13 = vpop.f32.mrb[18].mxu0  ;;  %6387 = vmatpush1.bf16.msra.mxu1 %v6386_v8 }
 0x3bc   :  { %v2377_v22 = vadd.f32 %v8321_v41, %v1925_v13  ;;  %v1927_v30 = vpop.f32.mrb[19].mxu0  ;;  %6389 = vmatprep.subr.bf16.mxu1 %v6388_v36 }
 0x3bd   :  { %v2378_v17 = vadd.f32 %v7580_v21, %v1927_v30  ;;  %2988 = vmatprep.mubr.f32.mxu1 %v8377_v14 }
 0x3be   :  { %2989 = vmatmul.mubr.f32.gmra.mrb[44].mxu1 %v8379_v33  ;;  %v8387_v48 = vmax.f32 %v2377_v22, 0.0 }
 0x3bf   :  { %v8385_v60 = vmax.f32 %v2378_v17, 0.0  ;;  %v1931_v8 = vpop.f32.mrb[20].mxu0  ;;  %6391 = vmatpush1.bf16.msra.mxu1 %v6390_v49 }
 0x3c0   :  { %v2380_v36 = vadd.f32 %v8321_v41, %v1931_v8  ;;  %v1933_v12 = vpop.f32.mrb[21].mxu0  ;;  %6393 = vmatprep.subr.bf16.mxu1 %v6392_v43 }
 0x3c1   :  { %v2381_v27 = vadd.f32 %v7580_v21, %v1933_v12  ;;  %2994 = vmatprep.mubr.f32.mxu1 %v8385_v60 }
 0x3c2   :  { %2995 = vmatmul.mubr.f32.gmra.mrb[46].mxu1 %v8387_v48  ;;  %v8395_v17 = vmax.f32 %v2380_v36, 0.0 }
 0x3c3   :  { %v8393_v13 = vmax.f32 %v2381_v27, 0.0  ;;  %v1937_v30 = vpop.f32.mrb[22].mxu0  ;;  %6395 = vmatpush1.bf16.msra.mxu1 %v6394_v15 }
 0x3c4   :  { %v2383_v49 = vadd.f32 %v8321_v41, %v1937_v30  ;;  %v1939_v22 = vpop.f32.mrb[23].mxu0  ;;  %6397 = vmatprep.subr.bf16.mxu1 %v6396_v39 }
 0x3c5   :  { %v2384_v44 = vadd.f32 %v7580_v21, %v1939_v22  ;;  %3000 = vmatprep.mubr.f32.mxu1 %v8393_v13 }
 0x3c6   :  { %3001 = vmatmul.mubr.f32.gmra.mrb[48].mxu1 %v8395_v17  ;;  %v8403_v43 = vmax.f32 %v2383_v49, 0.0 }
 0x3c7   :  { %v8401_v62 = vmax.f32 %v2384_v44, 0.0  ;;  %v1943_v10 = vpop.f32.mrb[24].mxu0 }
 0x3c8   :  { %10098 = vst [vmem:[#allocation39_spill] sm:$0xff] %v8403_v43  ;;  %v2386_v57 = vadd.f32 %v8321_v41, %v1943_v10  ;;  %v1945_v8 = vpop.f32.mrb[25].mxu0 }
 0x3c9   :  { %v2387_v15 = vadd.f32 %v7580_v21, %v1945_v8  ;;  %3006 = vmatprep.mubr.f32.mxu1 %v8401_v62 }
 0x3ca   :  { %3007 = vmatmul.mubr.f32.gmra.mrb[50].mxu1 %v8403_v43  ;;  %v8411_v39 = vmax.f32 %v2386_v57, 0.0  ;;  %v2701_v43 = vld [vmem:[#allocation12 + $0x48] sm:$0xff] }
 0x3cb   :  { %v8409_v36 = vmax.f32 %v2387_v15, 0.0  ;;  %v1949_v12 = vpop.f32.mrb[26].mxu0 }
 0x3cc   :  { %10100 = vst [vmem:[#allocation41_spill] sm:$0xff] %v8411_v39  ;;  %v2389_v27 = vadd.f32 %v8321_v41, %v1949_v12  ;;  %v1951_v30 = vpop.f32.mrb[27].mxu0 }
 0x3cd   :  { %10099 = vst [vmem:[#allocation40_spill] sm:$0xff] %v8409_v36  ;;  %v2390_v49 = vadd.f32 %v7580_v21, %v1951_v30  ;;  %3012 = vmatprep.mubr.f32.mxu1 %v8409_v36  ;;  %v2698_v36 = vld [vmem:[#allocation12 + $0x30] sm:$0xff] }
 0x3ce   :  { %3013 = vmatmul.mubr.f32.gmra.mrb[52].mxu1 %v8411_v39  ;;  %v8419_v10 = vmax.f32 %v2389_v27, 0.0  ;;  %v2696_v39 = vld [vmem:[#allocation12 + $0x20] sm:$0xff] }
 0x3cf   :  { %v8417_v22 = vmax.f32 %v2390_v49, 0.0  ;;  %v1955_v44 = vpop.f32.mrb[28].mxu0 }
 0x3d0   :  { %10102 = vst [vmem:[#allocation43_spill] sm:$0xff] %v8419_v10  ;;  %v2392_v8 = vadd.f32 %v8321_v41, %v1955_v44  ;;  %v1957_v15 = vpop.f32.mrb[29].mxu0 }
 0x3d1   :  { %10101 = vst [vmem:[#allocation42_spill] sm:$0xff] %v8417_v22  ;;  %v2393_v57 = vadd.f32 %v7580_v21, %v1957_v15  ;;  %3018 = vmatprep.mubr.f32.mxu1 %v8417_v22 }
 0x3d2   :  { %3019 = vmatmul.mubr.f32.gmra.mrb[54].mxu1 %v8419_v10  ;;  %v8427_v61 = vmax.f32 %v2392_v8, 0.0 }
 0x3d3   :  { %v8425_v12 = vmax.f32 %v2393_v57, 0.0  ;;  %v1961_v30 = vpop.f32.mrb[30].mxu0 }
 0x3d4   :  { %10104 = vst [vmem:[#allocation45_spill] sm:$0xff] %v8427_v61  ;;  %v2395_v49 = vadd.f32 %v8321_v41, %v1961_v30  ;;  %v1963_v47 = vpop.f32.mrb[31].mxu0 }
 0x3d5   :  { %10103 = vst [vmem:[#allocation44_spill] sm:$0xff] %v8425_v12  ;;  %v2396_v27 = vadd.f32 %v7580_v21, %v1963_v47  ;;  %3024 = vmatprep.mubr.f32.mxu1 %v8425_v12 }
 0x3d6   :  { %3025 = vmatmul.mubr.f32.gmra.mrb[56].mxu1 %v8427_v61  ;;  %v8435_v22 = vmax.f32 %v2395_v49, 0.0 }
 0x3d7   :  { %v8433_v44 = vmax.f32 %v2396_v27, 0.0  ;;  %v1967_v15 = vpop.f32.mrb[32].mxu0 }
 0x3d8   :  { %10106 = vst [vmem:[#allocation47_spill] sm:$0xff] %v8435_v22  ;;  %v2398_v57 = vadd.f32 %v8321_v41, %v1967_v15  ;;  %v1969_v10 = vpop.f32.mrb[33].mxu0 }
 0x3d9   :  { %10105 = vst [vmem:[#allocation46_spill] sm:$0xff] %v8433_v44  ;;  %v2399_v8 = vadd.f32 %v7580_v21, %v1969_v10  ;;  %3030 = vmatprep.mubr.f32.mxu1 %v8433_v44 }
 0x3da   :  { %3031 = vmatmul.mubr.f32.gmra.mrb[58].mxu1 %v8435_v22  ;;  %v8443_v12 = vmax.f32 %v2398_v57, 0.0 }
 0x3db   :  { %v8441_v30 = vmax.f32 %v2399_v8, 0.0  ;;  %v1973_v47 = vpop.f32.mrb[34].mxu0 }
 0x3dc   :  { %10108 = vst [vmem:[#allocation49_spill] sm:$0xff] %v8443_v12  ;;  %v2401_v27 = vadd.f32 %v8321_v41, %v1973_v47  ;;  %v1975_v61 = vpop.f32.mrb[35].mxu0 }
 0x3dd   :  { %10107 = vst [vmem:[#allocation48_spill] sm:$0xff] %v8441_v30  ;;  %v2402_v49 = vadd.f32 %v7580_v21, %v1975_v61  ;;  %3036 = vmatprep.mubr.f32.mxu1 %v8441_v30 }
 0x3de   :  { %3037 = vmatmul.mubr.f32.gmra.mrb[60].mxu1 %v8443_v12  ;;  %v8451_v44 = vmax.f32 %v2401_v27, 0.0 }
 0x3df   :  { %v8449_v15 = vmax.f32 %v2402_v49, 0.0  ;;  %v1979_v10 = vpop.f32.mrb[36].mxu0 }
 0x3e0   :  { %10110 = vst [vmem:[#allocation51_spill] sm:$0xff] %v8451_v44  ;;  %v2404_v8 = vadd.f32 %v8321_v41, %v1979_v10  ;;  %v1981_v22 = vpop.f32.mrb[37].mxu0 }
 0x3e1   :  { %10109 = vst [vmem:[#allocation50_spill] sm:$0xff] %v8449_v15  ;;  %v2405_v57 = vadd.f32 %v7580_v21, %v1981_v22  ;;  %3042 = vmatprep.mubr.f32.mxu1 %v8449_v15 }
 0x3e2   :  { %3043 = vmatmul.mubr.f32.gmra.mrb[62].mxu1 %v8451_v44  ;;  %v8459_v30 = vmax.f32 %v2404_v8, 0.0 }
 0x3e3   :  { %v8457_v47 = vmax.f32 %v2405_v57, 0.0  ;;  %v1985_v61 = vpop.f32.mrb[38].mxu0 }
 0x3e4   :  { %10112 = vst [vmem:[#allocation53_spill] sm:$0xff] %v8459_v30  ;;  %v2407_v49 = vadd.f32 %v8321_v41, %v1985_v61  ;;  %v1987_v12 = vpop.f32.mrb[39].mxu0 }
 0x3e5   :  { %10111 = vst [vmem:[#allocation52_spill] sm:$0xff] %v8457_v47  ;;  %v2408_v27 = vadd.f32 %v7580_v21, %v1987_v12  ;;  %3048 = vmatprep.mubr.f32.mxu1 %v8457_v47 }
 0x3e6   :  { %3049 = vmatmul.mubr.f32.gmra.mrb[64].mxu1 %v8459_v30  ;;  %v8467_v15 = vmax.f32 %v2407_v49, 0.0 }
 0x3e7   :  { %v8465_v10 = vmax.f32 %v2408_v27, 0.0  ;;  %v1991_v22 = vpop.f32.mrb[40].mxu0 }
 0x3e8   :  { %10114 = vst [vmem:[#allocation55_spill] sm:$0xff] %v8467_v15  ;;  %v2410_v57 = vadd.f32 %v8321_v41, %v1991_v22  ;;  %v1993_v44 = vpop.f32.mrb[41].mxu0 }
 0x3e9   :  { %10113 = vst [vmem:[#allocation54_spill] sm:$0xff] %v8465_v10  ;;  %v2411_v8 = vadd.f32 %v7580_v21, %v1993_v44  ;;  %3054 = vmatprep.mubr.f32.mxu1 %v8465_v10 }
 0x3ea   :  { %3055 = vmatmul.mubr.f32.gmra.mrb[66].mxu1 %v8467_v15  ;;  %v8475_v47 = vmax.f32 %v2410_v57, 0.0 }
 0x3eb   :  { %v8473_v61 = vmax.f32 %v2411_v8, 0.0  ;;  %v1997_v12 = vpop.f32.mrb[42].mxu0 }
 0x3ec   :  { %10116 = vst [vmem:[#allocation57_spill] sm:$0xff] %v8475_v47  ;;  %v2413_v27 = vadd.f32 %v8321_v41, %v1997_v12  ;;  %v1999_v30 = vpop.f32.mrb[43].mxu0 }
 0x3ed   :  { %10115 = vst [vmem:[#allocation56_spill] sm:$0xff] %v8473_v61  ;;  %v2414_v49 = vadd.f32 %v7580_v21, %v1999_v30  ;;  %3060 = vmatprep.mubr.f32.mxu1 %v8473_v61 }
 0x3ee   :  { %3061 = vmatmul.mubr.f32.gmra.mrb[68].mxu1 %v8475_v47  ;;  %v8483_v10 = vmax.f32 %v2413_v27, 0.0 }
 0x3ef   :  { %v8481_v22 = vmax.f32 %v2414_v49, 0.0  ;;  %v2003_v44 = vpop.f32.mrb[44].mxu0 }
 0x3f0   :  { %10118 = vst [vmem:[#allocation59_spill] sm:$0xff] %v8483_v10  ;;  %v2416_v8 = vadd.f32 %v8321_v41, %v2003_v44  ;;  %v2005_v15 = vpop.f32.mrb[45].mxu0 }
 0x3f1   :  { %10117 = vst [vmem:[#allocation58_spill] sm:$0xff] %v8481_v22  ;;  %v2417_v57 = vadd.f32 %v7580_v21, %v2005_v15  ;;  %3066 = vmatprep.mubr.f32.mxu1 %v8481_v22 }
 0x3f2   :  { %3067 = vmatmul.mubr.f32.gmra.mrb[70].mxu1 %v8483_v10  ;;  %v8491_v61 = vmax.f32 %v2416_v8, 0.0 }
 0x3f3   :  { %v8489_v12 = vmax.f32 %v2417_v57, 0.0  ;;  %v2009_v30 = vpop.f32.mrb[46].mxu0 }
 0x3f4   :  { %10120 = vst [vmem:[#allocation61_spill] sm:$0xff] %v8491_v61  ;;  %v2419_v49 = vadd.f32 %v8321_v41, %v2009_v30  ;;  %v2011_v47 = vpop.f32.mrb[47].mxu0 }
 0x3f5   :  { %10119 = vst [vmem:[#allocation60_spill] sm:$0xff] %v8489_v12  ;;  %v2420_v27 = vadd.f32 %v7580_v21, %v2011_v47  ;;  %3072 = vmatprep.mubr.f32.mxu1 %v8489_v12 }
 0x3f6   :  { %3073 = vmatmul.mubr.f32.gmra.mrb[72].mxu1 %v8491_v61  ;;  %v8499_v22 = vmax.f32 %v2419_v49, 0.0 }
 0x3f7   :  { %v8497_v44 = vmax.f32 %v2420_v27, 0.0  ;;  %v2015_v15 = vpop.f32.mrb[48].mxu0 }
 0x3f8   :  { %10122 = vst [vmem:[#allocation63_spill] sm:$0xff] %v8499_v22  ;;  %v2422_v57 = vadd.f32 %v8321_v41, %v2015_v15  ;;  %v2017_v10 = vpop.f32.mrb[49].mxu0 }
 0x3f9   :  { %10121 = vst [vmem:[#allocation62_spill] sm:$0xff] %v8497_v44  ;;  %v2423_v8 = vadd.f32 %v7580_v21, %v2017_v10  ;;  %3078 = vmatprep.mubr.f32.mxu1 %v8497_v44 }
 0x3fa   :  { %3079 = vmatmul.mubr.f32.gmra.mrb[74].mxu1 %v8499_v22  ;;  %v8507_v12 = vmax.f32 %v2422_v57, 0.0 }
 0x3fb   :  { %v8505_v30 = vmax.f32 %v2423_v8, 0.0  ;;  %v2021_v47 = vpop.f32.mrb[50].mxu0 }
 0x3fc   :  { %10124 = vst [vmem:[#allocation65_spill] sm:$0xff] %v8507_v12  ;;  %v2425_v27 = vadd.f32 %v8321_v41, %v2021_v47  ;;  %v2023_v61 = vpop.f32.mrb[51].mxu0 }
 0x3fd   :  { %10123 = vst [vmem:[#allocation64_spill] sm:$0xff] %v8505_v30  ;;  %v2426_v49 = vadd.f32 %v7580_v21, %v2023_v61  ;;  %3084 = vmatprep.mubr.f32.mxu1 %v8505_v30 }
 0x3fe   :  { %3085 = vmatmul.mubr.f32.gmra.mrb[76].mxu1 %v8507_v12  ;;  %v8515_v44 = vmax.f32 %v2425_v27, 0.0 }
 0x3ff   :  { %v8513_v15 = vmax.f32 %v2426_v49, 0.0  ;;  %v2027_v10 = vpop.f32.mrb[52].mxu0 }
 0x400   :  { %10126 = vst [vmem:[#allocation67_spill] sm:$0xff] %v8515_v44  ;;  %v2428_v8 = vadd.f32 %v8321_v41, %v2027_v10  ;;  %v2029_v22 = vpop.f32.mrb[53].mxu0 }
 0x401   :  { %10125 = vst [vmem:[#allocation66_spill] sm:$0xff] %v8513_v15  ;;  %v2429_v57 = vadd.f32 %v7580_v21, %v2029_v22  ;;  %3090 = vmatprep.mubr.f32.mxu1 %v8513_v15 }
 0x402   :  { %3091 = vmatmul.mubr.f32.gmra.mrb[78].mxu1 %v8515_v44  ;;  %v8523_v30 = vmax.f32 %v2428_v8, 0.0 }
 0x403   :  { %v8521_v47 = vmax.f32 %v2429_v57, 0.0  ;;  %v2033_v61 = vpop.f32.mrb[54].mxu0 }
 0x404   :  { %10128 = vst [vmem:[#allocation69_spill] sm:$0xff] %v8523_v30  ;;  %v2431_v49 = vadd.f32 %v8321_v41, %v2033_v61  ;;  %v2035_v12 = vpop.f32.mrb[55].mxu0 }
 0x405   :  { %10127 = vst [vmem:[#allocation68_spill] sm:$0xff] %v8521_v47  ;;  %v2432_v27 = vadd.f32 %v7580_v21, %v2035_v12  ;;  %3096 = vmatprep.mubr.f32.mxu1 %v8521_v47 }
 0x406   :  { %3097 = vmatmul.mubr.f32.gmra.mrb[80].mxu1 %v8523_v30  ;;  %v8531_v15 = vmax.f32 %v2431_v49, 0.0 }
 0x407   :  { %v8529_v10 = vmax.f32 %v2432_v27, 0.0  ;;  %v2039_v22 = vpop.f32.mrb[56].mxu0 }
 0x408   :  { %10130 = vst [vmem:[#allocation71_spill] sm:$0xff] %v8531_v15  ;;  %v2434_v57 = vadd.f32 %v8321_v41, %v2039_v22  ;;  %v2041_v44 = vpop.f32.mrb[57].mxu0 }
 0x409   :  { %10129 = vst [vmem:[#allocation70_spill] sm:$0xff] %v8529_v10  ;;  %v2435_v8 = vadd.f32 %v7580_v21, %v2041_v44  ;;  %3102 = vmatprep.mubr.f32.mxu1 %v8529_v10  ;;  %v2694_v10 = vld [vmem:[#allocation12 + $0x10] sm:$0xff] }
 0x40a   :  { %3103 = vmatmul.mubr.f32.gmra.mrb[82].mxu1 %v8531_v15  ;;  %v8539_v47 = vmax.f32 %v2434_v57, 0.0  ;;  %v2692_v57 = vld [vmem:[#allocation12] sm:$0xff] }
 0x40b   :  { %v8537_v61 = vmax.f32 %v2435_v8, 0.0  ;;  %v2045_v12 = vpop.f32.mrb[58].mxu0 }
 0x40c   :  { %10132 = vst [vmem:[#allocation73_spill] sm:$0xff] %v8539_v47  ;;  %v8542_v27 = vadd.f32 %v8321_v41, %v2045_v12  ;;  %v2047_v30 = vpop.f32.mrb[59].mxu0  ;;  %v2697_v41 = vld [vmem:[#allocation12 + $0x28] sm:$0xff]  ;;  %v10138_v12 = vmov 0.0  }
 0x40d   :  { %10131 = vst [vmem:[#allocation72_spill] sm:$0xff] %v8537_v61  ;;  %v8545_v49 = vadd.f32 %v7580_v21, %v2047_v30  ;;  %3108 = vmatprep.mubr.f32.mxu1 %v8537_v61  ;;  %v2699_v21 = vld [vmem:[#allocation12 + $0x38] sm:$0xff] }
 0x40e   :  { %10133 = vst [vmem:[#allocation74_spill] sm:$0xff] %v8542_v27  ;;  %3109 = vmatmul.mubr.f32.gmra.mrb[84].mxu1 %v8539_v47  ;;  %v10066_v8 = vmax.f32 %v8542_v27, 0.0  ;;  %v6398_v47 = vpack.c.bf16 %v2694_v10, %v2692_v57  ;;  %v2700_v57 = vld [vmem:[#allocation12 + $0x40] sm:$0xff] }
 0x40f   :  { %10134 = vst [vmem:[#allocation75_spill] sm:$0xff] %v8545_v49  ;;  %v10065_v44 = vmax.f32 %v8545_v49, 0.0  ;;  %v8550_v22 = vpop.f32.mrb[60].mxu0  ;;  %v2703_v49 = vld [vmem:[#allocation12 + $0x58] sm:$0xff] }
 0x410   :  { %10135 = vst [vmem:[#allocation76_spill] sm:$0xff] %v8550_v22  ;;  %v8553_v15 = vpop.f32.mrb[61].mxu0  ;;  %v10068_v22 = vmax.f32 %v8191_v25, 0.0  ;;  %v6404_v10 = vpack.c.bf16 %v2703_v49, %v2701_v43  ;;  %v2711_v43 = vld [vmem:[#allocation12 + $0x98] sm:$0xff] }
 0x411   :  { %10136 = vst [vmem:[#allocation77_spill] sm:$0xff] %v8553_v15  ;;  %3114 = vmatprep.mubr.f32.mxu1 %v10065_v44  ;;  %v6400_v15 = vpack.c.bf16 %v2699_v21, %v2697_v41  ;;  %v2705_v41 = vld [vmem:[#allocation12 + $0x68] sm:$0xff]  ;;  %v2707_v21 = vld [vmem:[#allocation12 + $0x78] sm:$0xff] }
 0x412   :  { %3115 = vmatmul.mubr.f32.gmra.mrb[86].mxu1 %v10066_v8  ;;  %v6402_v8 = vpack.c.bf16 %v2698_v36, %v2696_v39  ;;  %v6408_v36 = vpack.c.bf16 %v2707_v21, %v2705_v41  ;;  %v2704_v39 = vld [vmem:[#allocation12 + $0x60] sm:$0xff]  ;;  %v2715_v41 = vld [vmem:[#allocation12 + $0xb8] sm:$0xff] }
 0x413   :  { %v8559_v30 = vpop.f32.mrb[62].mxu0  ;;  %3185 = vmatprep.mubr.f32.mxu1 %v10138_v12 }
 0x414   :  { %10137 = vst [vmem:[#allocation78_spill] sm:$0xff] %v8559_v30  ;;  %v8563_v61 = vpop.f32.mrb[63].mxu0 }
 0x415   :  { %10139 = vst [vmem:[#allocation79_spill] sm:$0xff] %v8563_v61  ;;  %v2702_v61 = vld [vmem:[#allocation12 + $0x50] sm:$0xff] }
 0x416   :  { %3186 = vmatmul.mubr.f32.vlgmr.msra.gmra.mrb[32].mxu1 %v10068_v22 }
 0x417   :  { %6399 = vmatpush1.bf16.msra.mxu1 %v6398_v47  ;;  %v8567_v44 = vpop.f32.mrb[64].mxu0  ;;  %3191 = vmatprep.mubr.f32.mxu1 %v10138_v12  ;;  %v6406_v47 = vpack.c.bf16 %v2702_v61, %v2700_v57  ;;  %v2710_v57 = vld [vmem:[#allocation12 + $0x90] sm:$0xff] }
 0x418   :  { %10140 = vst [vmem:[#allocation80_spill] sm:$0xff] %v8567_v44  ;;  %v8570_v30 = vpop.f32.mrb[65].mxu0  ;;  %6401 = vmatprep.subr.bf16.mxu1 %v6400_v15  ;;  %v2709_v15 = vld [vmem:[#allocation12 + $0x88] sm:$0xff] }
 0x419   :  { %10141 = vst [vmem:[#allocation81_spill] sm:$0xff] %v8570_v30  ;;  %v2706_v30 = vld [vmem:[#allocation12 + $0x70] sm:$0xff]  ;;  %v6412_v61 = vpack.c.bf16 %v2711_v43, %v2709_v15  ;;  %v2719_v15 = vld [vmem:[#allocation12 + $0xd8] sm:$0xff] }
 0x41a   :  { %3192 = vmatmul.mubr.f32.gmra.mrb[34].mxu1 %v8197_v54 }
 0x41b   :  { %v8573_v27 = vpop.f32.mrb[66].mxu0  ;;  %3197 = vmatprep.mubr.f32.mxu1 %v10138_v12  ;;  %6403 = vmatpush1.bf16.msra.mxu1 %v6402_v8  ;;  %v2708_v8 = vld [vmem:[#allocation12 + $0x80] sm:$0xff] }
 0x41c   :  { %10142 = vst [vmem:[#allocation82_spill] sm:$0xff] %v8573_v27  ;;  %v8576_v22 = vpop.f32.mrb[67].mxu0  ;;  %6405 = vmatprep.subr.bf16.mxu1 %v6404_v10  ;;  %v6410_v27 = vpack.c.bf16 %v2706_v30, %v2704_v39  ;;  %v2713_v10 = vld [vmem:[#allocation12 + $0xa8] sm:$0xff]  ;;  %v2714_v39 = vld [vmem:[#allocation12 + $0xb0] sm:$0xff] }
 0x41d   :  { %10143 = vst [vmem:[#allocation83_spill] sm:$0xff] %v8576_v22  ;;  %v6416_v30 = vpack.c.bf16 %v2715_v41, %v2713_v10  ;;  %v2723_v10 = vld [vmem:[#allocation12 + $0xf8] sm:$0xff] }
 0x41e   :  { %3198 = vmatmul.mubr.f32.gmra.mrb[36].mxu1 %v8203_v3 }
 0x41f   :  { %v8579_v49 = vpop.f32.mrb[68].mxu0  ;;  %3203 = vmatprep.mubr.f32.mxu1 %v10138_v12  ;;  %6407 = vmatpush1.bf16.msra.mxu1 %v6406_v47  ;;  %v2712_v47 = vld [vmem:[#allocation12 + $0xa0] sm:$0xff] }
 0x420   :  { %10144 = vst [vmem:[#allocation84_spill] sm:$0xff] %v8579_v49  ;;  %v8582_v44 = vpop.f32.mrb[69].mxu0  ;;  %6409 = vmatprep.subr.bf16.mxu1 %v6408_v36  ;;  %v6414_v49 = vpack.c.bf16 %v2710_v57, %v2708_v8  ;;  %v2717_v36 = vld [vmem:[#allocation12 + $0xc8] sm:$0xff]  ;;  %v2716_v8 = vld [vmem:[#allocation12 + $0xc0] sm:$0xff]  ;;  %v2718_v57 = vld [vmem:[#allocation12 + $0xd0] sm:$0xff] }
 0x421   :  { %10145 = vst [vmem:[#allocation85_spill] sm:$0xff] %v8582_v44 }
 0x422   :  { %3204 = vmatmul.mubr.f32.gmra.mrb[38].mxu1 %v8209_v4 }
 0x423   :  { %v8585_v21 = vpop.f32.mrb[70].mxu0  ;;  %3209 = vmatprep.mubr.f32.mxu1 %v10138_v12  ;;  %6411 = vmatpush1.bf16.msra.mxu1 %v6410_v27  ;;  %v6420_v27 = vpack.c.bf16 %v2719_v15, %v2717_v36  ;;  %v2727_v36 = vld [vmem:[#allocation12 + $0x118] sm:$0xff] }
 0x424   :  { %10146 = vst [vmem:[#allocation86_spill] sm:$0xff] %v8585_v21  ;;  %v8588_v22 = vpop.f32.mrb[71].mxu0  ;;  %6413 = vmatprep.subr.bf16.mxu1 %v6412_v61  ;;  %v6418_v21 = vpack.c.bf16 %v2714_v39, %v2712_v47  ;;  %v2721_v61 = vld [vmem:[#allocation12 + $0xe8] sm:$0xff]  ;;  %v2720_v47 = vld [vmem:[#allocation12 + $0xe0] sm:$0xff]  ;;  %v2722_v39 = vld [vmem:[#allocation12 + $0xf0] sm:$0xff] }
 0x425   :  { %10147 = vst [vmem:[#allocation87_spill] sm:$0xff] %v8588_v22 }
 0x426   :  { %3210 = vmatmul.mubr.f32.gmra.mrb[40].mxu1 %v8215_v31 }
 0x427   :  { %v8591_v43 = vpop.f32.mrb[72].mxu0  ;;  %3215 = vmatprep.mubr.f32.mxu1 %v10138_v12  ;;  %6415 = vmatpush1.bf16.msra.mxu1 %v6414_v49  ;;  %v6424_v49 = vpack.c.bf16 %v2723_v10, %v2721_v61  ;;  %v2731_v61 = vld [vmem:[#allocation12 + $0x138] sm:$0xff] }
 0x428   :  { %10148 = vst [vmem:[#allocation88_spill] sm:$0xff] %v8591_v43  ;;  %v8594_v44 = vpop.f32.mrb[73].mxu0  ;;  %6417 = vmatprep.subr.bf16.mxu1 %v6416_v30  ;;  %v6422_v43 = vpack.c.bf16 %v2718_v57, %v2716_v8  ;;  %v2725_v30 = vld [vmem:[#allocation12 + $0x108] sm:$0xff]  ;;  %v2724_v8 = vld [vmem:[#allocation12 + $0x100] sm:$0xff]  ;;  %v2726_v57 = vld [vmem:[#allocation12 + $0x110] sm:$0xff] }
 0x429   :  { %10149 = vst [vmem:[#allocation89_spill] sm:$0xff] %v8594_v44 }
 0x42a   :  { %3216 = vmatmul.mubr.f32.gmra.mrb[42].mxu1 %v8221_v59 }
 0x42b   :  { %v8597_v41 = vpop.f32.mrb[74].mxu0  ;;  %3221 = vmatprep.mubr.f32.mxu1 %v10138_v12  ;;  %6419 = vmatpush1.bf16.msra.mxu1 %v6418_v21  ;;  %v6428_v21 = vpack.c.bf16 %v2727_v36, %v2725_v30  ;;  %v2735_v30 = vld [vmem:[#allocation12 + $0x158] sm:$0xff] }
 0x42c   :  { %10150 = vst [vmem:[#allocation90_spill] sm:$0xff] %v8597_v41  ;;  %v8600_v22 = vpop.f32.mrb[75].mxu0  ;;  %6421 = vmatprep.subr.bf16.mxu1 %v6420_v27  ;;  %v6426_v41 = vpack.c.bf16 %v2722_v39, %v2720_v47  ;;  %v2729_v27 = vld [vmem:[#allocation12 + $0x128] sm:$0xff]  ;;  %v2728_v47 = vld [vmem:[#allocation12 + $0x120] sm:$0xff]  ;;  %v2730_v39 = vld [vmem:[#allocation12 + $0x130] sm:$0xff] }
 0x42d   :  { %10151 = vst [vmem:[#allocation91_spill] sm:$0xff] %v8600_v22 }
 0x42e   :  { %3222 = vmatmul.mubr.f32.gmra.mrb[44].mxu1 %v8227_v19 }
 0x42f   :  { %v8603_v15 = vpop.f32.mrb[76].mxu0  ;;  %3227 = vmatprep.mubr.f32.mxu1 %v10138_v12  ;;  %6423 = vmatpush1.bf16.msra.mxu1 %v6422_v43  ;;  %v6432_v43 = vpack.c.bf16 %v2731_v61, %v2729_v27  ;;  %v2739_v27 = vld [vmem:[#allocation12 + $0x178] sm:$0xff] }
 0x430   :  { %10152 = vst [vmem:[#allocation92_spill] sm:$0xff] %v8603_v15  ;;  %v8606_v44 = vpop.f32.mrb[77].mxu0  ;;  %6425 = vmatprep.subr.bf16.mxu1 %v6424_v49  ;;  %v6430_v15 = vpack.c.bf16 %v2726_v57, %v2724_v8  ;;  %v2733_v49 = vld [vmem:[#allocation12 + $0x148] sm:$0xff]  ;;  %v2732_v8 = vld [vmem:[#allocation12 + $0x140] sm:$0xff]  ;;  %v2734_v57 = vld [vmem:[#allocation12 + $0x150] sm:$0xff] }
 0x431   :  { %10153 = vst [vmem:[#allocation93_spill] sm:$0xff] %v8606_v44 }
 0x432   :  { %3228 = vmatmul.mubr.f32.gmra.mrb[46].mxu1 %v8233_v46 }
 0x433   :  { %v8609_v10 = vpop.f32.mrb[78].mxu0  ;;  %3233 = vmatprep.mubr.f32.mxu1 %v10138_v12  ;;  %6427 = vmatpush1.bf16.msra.mxu1 %v6426_v41  ;;  %v6436_v41 = vpack.c.bf16 %v2735_v30, %v2733_v49  ;;  %v2743_v49 = vld [vmem:[#allocation12 + $0x198] sm:$0xff] }
 0x434   :  { %10154 = vst [vmem:[#allocation94_spill] sm:$0xff] %v8609_v10  ;;  %v8612_v22 = vpop.f32.mrb[79].mxu0  ;;  %6429 = vmatprep.subr.bf16.mxu1 %v6428_v21  ;;  %v6434_v10 = vpack.c.bf16 %v2730_v39, %v2728_v47  ;;  %v2737_v21 = vld [vmem:[#allocation12 + $0x168] sm:$0xff]  ;;  %v2736_v47 = vld [vmem:[#allocation12 + $0x160] sm:$0xff]  ;;  %v2738_v39 = vld [vmem:[#allocation12 + $0x170] sm:$0xff] }
 0x435   :  { %10155 = vst [vmem:[#allocation95_spill] sm:$0xff] %v8612_v22 }
 0x436   :  { %3234 = vmatmul.mubr.f32.gmra.mrb[48].mxu1 %v8239_v24 }
 0x437   :  { %v8615_v36 = vpop.f32.mrb[80].mxu0  ;;  %3239 = vmatprep.mubr.f32.mxu1 %v10138_v12  ;;  %6431 = vmatpush1.bf16.msra.mxu1 %v6430_v15  ;;  %v6440_v15 = vpack.c.bf16 %v2739_v27, %v2737_v21  ;;  %v2747_v21 = vld [vmem:[#allocation12 + $0x1b8] sm:$0xff] }
 0x438   :  { %10156 = vst [vmem:[#allocation96_spill] sm:$0xff] %v8615_v36  ;;  %v8618_v44 = vpop.f32.mrb[81].mxu0  ;;  %6433 = vmatprep.subr.bf16.mxu1 %v6432_v43  ;;  %v6438_v36 = vpack.c.bf16 %v2734_v57, %v2732_v8  ;;  %v2741_v43 = vld [vmem:[#allocation12 + $0x188] sm:$0xff]  ;;  %v2740_v8 = vld [vmem:[#allocation12 + $0x180] sm:$0xff]  ;;  %v2742_v57 = vld [vmem:[#allocation12 + $0x190] sm:$0xff] }
 0x439   :  { %10157 = vst [vmem:[#allocation97_spill] sm:$0xff] %v8618_v44 }
 0x43a   :  { %3240 = vmatmul.mubr.f32.gmra.mrb[50].mxu1 %v8245_v26 }
 0x43b   :  { %v8621_v61 = vpop.f32.mrb[82].mxu0  ;;  %3245 = vmatprep.mubr.f32.mxu1 %v10138_v12  ;;  %6435 = vmatpush1.bf16.msra.mxu1 %v6434_v10  ;;  %v6444_v10 = vpack.c.bf16 %v2743_v49, %v2741_v43  ;;  %v2751_v43 = vld [vmem:[#allocation12 + $0x1d8] sm:$0xff] }
 0x43c   :  { %10158 = vst [vmem:[#allocation98_spill] sm:$0xff] %v8621_v61  ;;  %v8624_v22 = vpop.f32.mrb[83].mxu0  ;;  %6437 = vmatprep.subr.bf16.mxu1 %v6436_v41  ;;  %v6442_v61 = vpack.c.bf16 %v2738_v39, %v2736_v47  ;;  %v2745_v41 = vld [vmem:[#allocation12 + $0x1a8] sm:$0xff]  ;;  %v2744_v47 = vld [vmem:[#allocation12 + $0x1a0] sm:$0xff]  ;;  %v2746_v39 = vld [vmem:[#allocation12 + $0x1b0] sm:$0xff] }
 0x43d   :  { %10159 = vst [vmem:[#allocation99_spill] sm:$0xff] %v8624_v22 }
 0x43e   :  { %3246 = vmatmul.mubr.f32.gmra.mrb[52].mxu1 %v8251_v6 }
 0x43f   :  { %v8627_v30 = vpop.f32.mrb[84].mxu0  ;;  %3251 = vmatprep.mubr.f32.mxu1 %v10138_v12  ;;  %6439 = vmatpush1.bf16.msra.mxu1 %v6438_v36  ;;  %v6448_v36 = vpack.c.bf16 %v2747_v21, %v2745_v41  ;;  %v2755_v41 = vld [vmem:[#allocation12 + $0x1f8] sm:$0xff] }
 0x440   :  { %10160 = vst [vmem:[#allocation100_spill] sm:$0xff] %v8627_v30  ;;  %v8630_v44 = vpop.f32.mrb[85].mxu0  ;;  %6441 = vmatprep.subr.bf16.mxu1 %v6440_v15  ;;  %v6446_v30 = vpack.c.bf16 %v2742_v57, %v2740_v8  ;;  %v2749_v15 = vld [vmem:[#allocation12 + $0x1c8] sm:$0xff]  ;;  %v2748_v8 = vld [vmem:[#allocation12 + $0x1c0] sm:$0xff]  ;;  %v2750_v57 = vld [vmem:[#allocation12 + $0x1d0] sm:$0xff] }
 0x441   :  { %10161 = vst [vmem:[#allocation101_spill] sm:$0xff] %v8630_v44 }
 0x442   :  { %3252 = vmatmul.mubr.f32.gmra.mrb[54].mxu1 %v8259_v29 }
 0x443   :  { %v8633_v27 = vpop.f32.mrb[86].mxu0  ;;  %3257 = vmatprep.mubr.f32.mxu1 %v10138_v12  ;;  %6443 = vmatpush1.bf16.msra.mxu1 %v6442_v61  ;;  %v6452_v61 = vpack.c.bf16 %v2751_v43, %v2749_v15  ;;  %v2759_v15 = vld [vmem:[#allocation12 + $0x218] sm:$0xff] }
 0x444   :  { %10162 = vst [vmem:[#allocation102_spill] sm:$0xff] %v8633_v27  ;;  %v8636_v22 = vpop.f32.mrb[87].mxu0  ;;  %6445 = vmatprep.subr.bf16.mxu1 %v6444_v10  ;;  %v6450_v27 = vpack.c.bf16 %v2746_v39, %v2744_v47  ;;  %v2753_v10 = vld [vmem:[#allocation12 + $0x1e8] sm:$0xff]  ;;  %v2752_v47 = vld [vmem:[#allocation12 + $0x1e0] sm:$0xff]  ;;  %v2754_v39 = vld [vmem:[#allocation12 + $0x1f0] sm:$0xff] }
 0x445   :  { %10163 = vst [vmem:[#allocation103_spill] sm:$0xff] %v8636_v22 }
 0x446   :  { %3258 = vmatmul.mubr.f32.gmra.mrb[56].mxu1 %v8267_v37 }
 0x447   :  { %v8639_v49 = vpop.f32.mrb[88].mxu0  ;;  %3263 = vmatprep.mubr.f32.mxu1 %v10138_v12  ;;  %6447 = vmatpush1.bf16.msra.mxu1 %v6446_v30  ;;  %v6456_v30 = vpack.c.bf16 %v2755_v41, %v2753_v10 }
 0x448   :  { %10164 = vst [vmem:[#allocation104_spill] sm:$0xff] %v8639_v49  ;;  %v8642_v44 = vpop.f32.mrb[89].mxu0  ;;  %6449 = vmatprep.subr.bf16.mxu1 %v6448_v36  ;;  %v6454_v49 = vpack.c.bf16 %v2750_v57, %v2748_v8  ;;  %v2757_v36 = vld [vmem:[#allocation12 + $0x208] sm:$0xff] }
 0x449   :  { %10165 = vst [vmem:[#allocation105_spill] sm:$0xff] %v8642_v44 }
 0x44a   :  { %3264 = vmatmul.mubr.f32.gmra.mrb[58].mxu1 %v8277_v63 }
 0x44b   :  { %v8645_v21 = vpop.f32.mrb[90].mxu0  ;;  %3269 = vmatprep.mubr.f32.mxu1 %v10138_v12  ;;  %6451 = vmatpush1.bf16.msra.mxu1 %v6450_v27  ;;  %v6460_v27 = vpack.c.bf16 %v2759_v15, %v2757_v36  ;;  %v8693_v36 = vmax.f32 %v8256_v28, 0.0  ;;  %v8698_v15 = vmax.f32 %v8270_v16, 0.0  ;;  %v8708_v28 = vmax.f32 %v8280_v9, 0.0  ;;  %v2762_v9 = vld [vmem:[#allocation12 + $0x230] sm:$0xff] }
 0x44c   :  { %10166 = vst [vmem:[#allocation106_spill] sm:$0xff] %v8645_v21  ;;  %v8648_v22 = vpop.f32.mrb[91].mxu0  ;;  %6453 = vmatprep.subr.bf16.mxu1 %v6452_v61  ;;  %v6458_v21 = vpack.c.bf16 %v2754_v39, %v2752_v47  ;;  %v10069_v16 = vmax.f32 %v8274_v34, 0.0  ;;  %v2771_v34 = vld [vmem:[#allocation12 + $0x278] sm:$0xff] }
 0x44d   :  { %10167 = vst [vmem:[#allocation107_spill] sm:$0xff] %v8648_v22  ;;  %v2766_v22 = vld [vmem:[#allocation12 + $0x250] sm:$0xff] }
 0x44e   :  { %3270 = vmatmul.mubr.f32.gmra.mrb[60].mxu1 %v8284_v38 }
 0x44f   :  { %v8651_v43 = vpop.f32.mrb[92].mxu0  ;;  %3275 = vmatprep.mubr.f32.mxu1 %v10138_v12  ;;  %6455 = vmatpush1.bf16.msra.mxu1 %v6454_v49 }
 0x450   :  { %10168 = vst [vmem:[#allocation108_spill] sm:$0xff] %v8651_v43  ;;  %v8654_v44 = vpop.f32.mrb[93].mxu0  ;;  %6457 = vmatprep.subr.bf16.mxu1 %v6456_v30  ;;  %v2764_v43 = vld [vmem:[#allocation12 + $0x240] sm:$0xff] }
 0x451   :  { %10169 = vst [vmem:[#allocation109_spill] sm:$0xff] %v8654_v44 }
 0x452   :  { %3276 = vmatmul.mubr.f32.gmra.mrb[62].mxu1 %v8288_v23 }
 0x453   :  { %v8657_v61 = vpop.f32.mrb[94].mxu0  ;;  %3281 = vmatprep.mubr.f32.mxu1 %v10138_v12  ;;  %6459 = vmatpush1.bf16.msra.mxu1 %v6458_v21 }
 0x454   :  { %10170 = vst [vmem:[#allocation110_spill] sm:$0xff] %v8657_v61  ;;  %v8660_v8 = vpop.f32.mrb[95].mxu0  ;;  %6461 = vmatprep.subr.bf16.mxu1 %v6460_v27  ;;  %v8703_v27 = vmax.f32 %v8264_v5, 0.0 }
 0x455   :  { %10171 = vst [vmem:[#allocation111_spill] sm:$0xff] %v8660_v8  ;;  %v10180_v8 = vmax.f32 %v8327_v7, 0.0  ;;  %v2773_v7 = vld [vmem:[#allocation12 + $0x288] sm:$0xff] }
 0x456   :  { %3282 = vmatmul.mubr.f32.gmra.mrb[64].mxu1 %v8292_v56 }
 0x457   :  { %v8663_v57 = vpop.f32.mrb[96].mxu0  ;;  %3287 = vmatprep.mubr.f32.mxu1 %v10138_v12 }
 0x458   :  { %10172 = vst [vmem:[#allocation112_spill] sm:$0xff] %v8663_v57  ;;  %v8666_v49 = vpop.f32.mrb[97].mxu0  ;;  %v2767_v57 = vld [vmem:[#allocation12 + $0x258] sm:$0xff] }
 0x459   :  { %10173 = vst [vmem:[#allocation113_spill] sm:$0xff] %v8666_v49  ;;  %v2765_v49 = vld [vmem:[#allocation12 + $0x248] sm:$0xff] }
 0x45a   :  { %3288 = vmatmul.mubr.f32.gmra.mrb[66].mxu1 %v8296_v18  ;;  %v6468_v44 = vpack.c.bf16 %v2767_v57, %v2765_v49 }
 0x45b   :  { %v8669_v10 = vpop.f32.mrb[98].mxu0  ;;  %3293 = vmatprep.mubr.f32.mxu1 %v10138_v12 }
 0x45c   :  { %10174 = vst [vmem:[#allocation114_spill] sm:$0xff] %v8669_v10  ;;  %v8672_v41 = vpop.f32.mrb[99].mxu0  ;;  %v2760_v10 = vld [vmem:[#allocation12 + $0x220] sm:$0xff] }
 0x45d   :  { %10175 = vst [vmem:[#allocation115_spill] sm:$0xff] %v8672_v41  ;;  %v6466_v61 = vpack.c.bf16 %v2762_v9, %v2760_v10  ;;  %v2774_v10 = vld [vmem:[#allocation12 + $0x290] sm:$0xff]  ;;  %v2779_v9 = vld [vmem:[#allocation12 + $0x2b8] sm:$0xff] }
 0x45e   :  { %3294 = vmatmul.mubr.f32.gmra.mrb[68].mxu1 %v8300_v20 }
 0x45f   :  { %v8675_v21 = vpop.f32.mrb[100].mxu0  ;;  %3299 = vmatprep.mubr.f32.mxu1 %v10138_v12 }
 0x460   :  { %10176 = vst [vmem:[#allocation116_spill] sm:$0xff] %v8675_v21  ;;  %v8678_v30 = vpop.f32.mrb[101].mxu0  ;;  %v2763_v21 = vld [vmem:[#allocation12 + $0x238] sm:$0xff] }
 0x461   :  { %10177 = vst [vmem:[#allocation117_spill] sm:$0xff] %v8678_v30  ;;  %v2761_v30 = vld [vmem:[#allocation12 + $0x228] sm:$0xff] }
 0x462   :  { %3300 = vmatmul.mubr.f32.gmra.mrb[70].mxu1 %v8304_v42  ;;  %v6464_v41 = vpack.c.bf16 %v2763_v21, %v2761_v30  ;;  %v6470_v21 = vpack.c.bf16 %v2766_v22, %v2764_v43  ;;  %v2776_v22 = vld [vmem:[#allocation12 + $0x2a0] sm:$0xff]  ;;  %v2778_v43 = vld [vmem:[#allocation12 + $0x2b0] sm:$0xff] }
 0x463   :  { %v8681_v47 = vpop.f32.mrb[102].mxu0  ;;  %3305 = vmatprep.mubr.f32.mxu1 %v10138_v12 }
 0x464   :  { %10178 = vst [vmem:[#allocation118_spill] sm:$0xff] %v8681_v47  ;;  %v8684_v39 = vpop.f32.mrb[103].mxu0  ;;  %v2758_v47 = vld [vmem:[#allocation12 + $0x210] sm:$0xff] }
 0x465   :  { %10179 = vst [vmem:[#allocation119_spill] sm:$0xff] %v8684_v39  ;;  %v2756_v39 = vld [vmem:[#allocation12 + $0x200] sm:$0xff] }
 0x466   :  { %3306 = vmatmul.mubr.f32.gmra.mrb[72].mxu1 %v8308_v51  ;;  %v6462_v5 = vpack.c.bf16 %v2758_v47, %v2756_v39  ;;  %v10181_v47 = vmax.f32 %v8324_v1, 0.0  ;;  %v2768_v39 = vld [vmem:[#allocation12 + $0x260] sm:$0xff] }
 0x467   :  { %3311 = vmatprep.mubr.f32.mxu1 %v10138_v12  ;;  %v2772_v1 = vld [vmem:[#allocation12 + $0x280] sm:$0xff] }
 0x46a   :  { %3312 = vmatmul.mubr.f32.gmra.mrb[74].mxu1 %v8312_v50 }
 0x46b   :  { %3317 = vmatprep.mubr.f32.mxu1 %v10138_v12 }
 0x46e   :  { %3318 = vmatmul.mubr.f32.gmra.mrb[76].mxu1 %v8316_v11 }
 0x46f   :  { %3323 = vmatprep.mubr.f32.mxu1 %v10138_v12 }
 0x472   :  { %3324 = vmatmul.mubr.f32.gmra.mrb[78].mxu1 %v8693_v36 }
 0x473   :  { %3329 = vmatprep.mubr.f32.mxu1 %v10138_v12 }
 0x476   :  { %3330 = vmatmul.mubr.f32.gmra.mrb[80].mxu1 %v8698_v15 }
 0x477   :  { %3335 = vmatprep.mubr.f32.mxu1 %v10138_v12 }
 0x47a   :  { %3336 = vmatmul.mubr.f32.gmra.mrb[82].mxu1 %v8703_v27 }
 0x47b   :  { %3341 = vmatprep.mubr.f32.mxu1 %v10138_v12 }
 0x47e   :  { %3342 = vmatmul.mubr.f32.gmra.mrb[84].mxu1 %v8708_v28 }
 0x47f   :  { %3347 = vmatprep.mubr.f32.mxu1 %v10138_v12 }
 0x482   :  { %3348 = vmatmul.mubr.f32.gmra.mrb[86].mxu1 %v10069_v16  ;;  %v2769_v16 = vld [vmem:[#allocation12 + $0x268] sm:$0xff] }
 0x483   :  { %3418 = vmatprep.mubr.f32.mxu1 %v10138_v12  ;;  %v6472_v30 = vpack.c.bf16 %v2771_v34, %v2769_v16  ;;  %v6478_v34 = vpack.c.bf16 %v2774_v10, %v2772_v1  ;;  %v2783_v16 = vld [vmem:[#allocation12 + $0x2d8] sm:$0xff]  ;;  %v2786_v1 = vld [vmem:[#allocation12 + $0x2f0] sm:$0xff]  ;;  %v3906_v10 = vld [vmem:[#allocation12 + $0x608] sm:$0xff] }
 0x486   :  { %3419 = vmatmul.mubr.f32.vlgmr.msra.gmra.mrb[32].mxu1 %v10138_v12 }
 0x487   :  { %6463 = vmatpush1.bf16.msra.mxu1 %v6462_v5  ;;  %3424 = vmatprep.mubr.f32.mxu1 %v10180_v8  ;;  %v2770_v5 = vld [vmem:[#allocation12 + $0x270] sm:$0xff]  ;;  %v2775_v8 = vld [vmem:[#allocation12 + $0x298] sm:$0xff] }
 0x488   :  { %6465 = vmatprep.subr.bf16.mxu1 %v6464_v41  ;;  %v6474_v57 = vpack.c.bf16 %v2770_v5, %v2768_v39  ;;  %v6476_v49 = vpack.c.bf16 %v2775_v8, %v2773_v7  ;;  %v2777_v41 = vld [vmem:[#allocation12 + $0x2a8] sm:$0xff]  ;;  %v2782_v39 = vld [vmem:[#allocation12 + $0x2d0] sm:$0xff]  ;;  %v2787_v7 = vld [vmem:[#allocation12 + $0x2f8] sm:$0xff] }
 0x489   :  { %v2785_v5 = vld [vmem:[#allocation12 + $0x2e8] sm:$0xff] }
 0x48a   :  { %3425 = vmatmul.mubr.f32.gmra.mrb[34].mxu1 %v10181_v47  ;;  %v6482_v47 = vpack.c.bf16 %v2778_v43, %v2776_v22  ;;  %v10183_v22 = vld [vmem:[#allocation40_spill] sm:$0xff]  ;;  %v10184_v43 = vld [vmem:[#allocation41_spill] sm:$0xff] }
 0x48b   :  { %3430 = vmatprep.mubr.f32.mxu1 %v8337_v2  ;;  %6467 = vmatpush1.bf16.msra.mxu1 %v6466_v61  ;;  %v2781_v61 = vld [vmem:[#allocation12 + $0x2c8] sm:$0xff] }
 0x48c   :  { %6469 = vmatprep.subr.bf16.mxu1 %v6468_v44  ;;  %v6480_v44 = vpack.c.bf16 %v2779_v9, %v2777_v41  ;;  %v3908_v41 = vld [vmem:[#allocation12 + $0x618] sm:$0xff] }
 0x48e   :  { %3431 = vmatmul.mubr.f32.gmra.mrb[36].mxu1 %v8340_v58 }
 0x48f   :  { %3436 = vmatprep.mubr.f32.mxu1 %v8345_v35  ;;  %6471 = vmatpush1.bf16.msra.mxu1 %v6470_v21  ;;  %v6484_v21 = vpack.c.bf16 %v2783_v16, %v2781_v61  ;;  %v10185_v61 = vld [vmem:[#allocation42_spill] sm:$0xff]  ;;  %v10186_v16 = vld [vmem:[#allocation43_spill] sm:$0xff] }
 0x490   :  { %6473 = vmatprep.subr.bf16.mxu1 %v6472_v30  ;;  %v2780_v30 = vld [vmem:[#allocation12 + $0x2c0] sm:$0xff] }
 0x491   :  { %v6486_v8 = vpack.c.bf16 %v2782_v39, %v2780_v30  ;;  %v10189_v30 = vld [vmem:[#allocation46_spill] sm:$0xff]  ;;  %v10190_v39 = vld [vmem:[#allocation47_spill] sm:$0xff] }
 0x492   :  { %3437 = vmatmul.mubr.f32.gmra.mrb[38].mxu1 %v8348_v45 }
 0x493   :  { %3442 = vmatprep.mubr.f32.mxu1 %v8353_v53  ;;  %6475 = vmatpush1.bf16.msra.mxu1 %v6474_v57  ;;  %v6488_v57 = vpack.c.bf16 %v2787_v7, %v2785_v5  ;;  %v10191_v5 = vld [vmem:[#allocation48_spill] sm:$0xff]  ;;  %v10192_v7 = vld [vmem:[#allocation49_spill] sm:$0xff] }
 0x494   :  { %6477 = vmatprep.subr.bf16.mxu1 %v6476_v49  ;;  %v2784_v49 = vld [vmem:[#allocation12 + $0x2e0] sm:$0xff] }
 0x495   :  { %v6490_v9 = vpack.c.bf16 %v2786_v1, %v2784_v49  ;;  %v10195_v49 = vld [vmem:[#allocation52_spill] sm:$0xff]  ;;  %v10196_v1 = vld [vmem:[#allocation53_spill] sm:$0xff] }
 0x496   :  { %3443 = vmatmul.mubr.f32.gmra.mrb[40].mxu1 %v8356_v40 }
 0x497   :  { %3448 = vmatprep.mubr.f32.mxu1 %v8361_v0  ;;  %6479 = vmatpush1.bf16.msra.mxu1 %v6478_v34  ;;  %v6492_v34 = vpack.c.bf16 %v3908_v41, %v3906_v10  ;;  %v10197_v10 = vld [vmem:[#allocation54_spill] sm:$0xff]  ;;  %v10198_v41 = vld [vmem:[#allocation55_spill] sm:$0xff] }
 0x498   :  { %6481 = vmatprep.subr.bf16.mxu1 %v6480_v44  ;;  %v10182_v44 = vld [vmem:[#allocation39_spill] sm:$0xff] }
 0x49a   :  { %3449 = vmatmul.mubr.f32.gmra.mrb[42].mxu1 %v8364_v32 }
 0x49b   :  { %3454 = vmatprep.mubr.f32.mxu1 %v8369_v52  ;;  %6483 = vmatpush1.bf16.msra.mxu1 %v6482_v47  ;;  %v10187_v47 = vld [vmem:[#allocation44_spill] sm:$0xff] }
 0x49c   :  { %6485 = vmatprep.subr.bf16.mxu1 %v6484_v21  ;;  %v10188_v21 = vld [vmem:[#allocation45_spill] sm:$0xff] }
 0x49e   :  { %3455 = vmatmul.mubr.f32.gmra.mrb[44].mxu1 %v8372_v55 }
 0x49f   :  { %3460 = vmatprep.mubr.f32.mxu1 %v8377_v14  ;;  %6487 = vmatpush1.bf16.msra.mxu1 %v6486_v8  ;;  %v10193_v8 = vld [vmem:[#allocation50_spill] sm:$0xff] }
 0x4a0   :  { %6489 = vmatprep.subr.bf16.mxu1 %v6488_v57  ;;  %v10194_v57 = vld [vmem:[#allocation51_spill] sm:$0xff] }
 0x4a2   :  { %3461 = vmatmul.mubr.f32.gmra.mrb[46].mxu1 %v8379_v33 }
 0x4a3   :  { %3466 = vmatprep.mubr.f32.mxu1 %v8385_v60  ;;  %6491 = vmatpush1.bf16.msra.mxu1 %v6490_v9  ;;  %v10199_v9 = vld [vmem:[#allocation56_spill] sm:$0xff] }
 0x4a4   :  { %6493 = vmatprep.subr.bf16.mxu1 %v6492_v34  ;;  %v10200_v34 = vld [vmem:[#allocation57_spill] sm:$0xff] }
 0x4a6   :  { %3467 = vmatmul.mubr.f32.gmra.mrb[48].mxu1 %v8387_v48 }
 0x4a7   :  { %3472 = vmatprep.mubr.f32.mxu1 %v8393_v13 }
 0x4aa   :  { %3473 = vmatmul.mubr.f32.gmra.mrb[50].mxu1 %v8395_v17 }
 0x4ab   :  { %3478 = vmatprep.mubr.f32.mxu1 %v8401_v62 }
 0x4ae   :  { %3479 = vmatmul.mubr.f32.gmra.mrb[52].mxu1 %v10182_v44 }
 0x4af   :  { %3484 = vmatprep.mubr.f32.mxu1 %v10183_v22  ;;  %v3924_v22 = vld [vmem:[#allocation12 + $0x698] sm:$0xff] }
 0x4b2   :  { %3485 = vmatmul.mubr.f32.gmra.mrb[54].mxu1 %v10184_v43  ;;  %v10217_v43 = vmax.f32 %v8191_v25, 0.0  ;;  %v3921_v25 = vld [vmem:[#allocation12 + $0x680] sm:$0xff] }
 0x4b3   :  { %3490 = vmatprep.mubr.f32.mxu1 %v10185_v61  ;;  %v3918_v61 = vld [vmem:[#allocation12 + $0x668] sm:$0xff] }
 0x4b6   :  { %3491 = vmatmul.mubr.f32.gmra.mrb[56].mxu1 %v10186_v16  ;;  %v3915_v16 = vld [vmem:[#allocation12 + $0x650] sm:$0xff] }
 0x4b7   :  { %3496 = vmatprep.mubr.f32.mxu1 %v10187_v47  ;;  %v3914_v47 = vld [vmem:[#allocation12 + $0x648] sm:$0xff] }
 0x4ba   :  { %3497 = vmatmul.mubr.f32.gmra.mrb[58].mxu1 %v10188_v21  ;;  %v10216_v21 = vld [vmem:[#allocation73_spill] sm:$0xff] }
 0x4bb   :  { %3502 = vmatprep.mubr.f32.mxu1 %v10189_v30  ;;  %v3910_v30 = vld [vmem:[#allocation12 + $0x628] sm:$0xff] }
 0x4be   :  { %3503 = vmatmul.mubr.f32.gmra.mrb[60].mxu1 %v10190_v39  ;;  %v10201_v39 = vld [vmem:[#allocation58_spill] sm:$0xff] }
 0x4bf   :  { %3508 = vmatprep.mubr.f32.mxu1 %v10191_v5  ;;  %v10202_v5 = vld [vmem:[#allocation59_spill] sm:$0xff] }
 0x4c2   :  { %3509 = vmatmul.mubr.f32.gmra.mrb[62].mxu1 %v10192_v7  ;;  %v10203_v7 = vld [vmem:[#allocation60_spill] sm:$0xff] }
 0x4c3   :  { %3514 = vmatprep.mubr.f32.mxu1 %v10193_v8  ;;  %v10204_v8 = vld [vmem:[#allocation61_spill] sm:$0xff] }
 0x4c6   :  { %3515 = vmatmul.mubr.f32.gmra.mrb[64].mxu1 %v10194_v57  ;;  %v10205_v57 = vld [vmem:[#allocation62_spill] sm:$0xff] }
 0x4c7   :  { %3520 = vmatprep.mubr.f32.mxu1 %v10195_v49  ;;  %v10206_v49 = vld [vmem:[#allocation63_spill] sm:$0xff] }
 0x4ca   :  { %3521 = vmatmul.mubr.f32.gmra.mrb[66].mxu1 %v10196_v1  ;;  %v10207_v1 = vld [vmem:[#allocation64_spill] sm:$0xff] }
 0x4cb   :  { %3526 = vmatprep.mubr.f32.mxu1 %v10197_v10  ;;  %v10208_v10 = vld [vmem:[#allocation65_spill] sm:$0xff] }
 0x4ce   :  { %3527 = vmatmul.mubr.f32.gmra.mrb[68].mxu1 %v10198_v41  ;;  %v10209_v41 = vld [vmem:[#allocation66_spill] sm:$0xff] }
 0x4cf   :  { %3532 = vmatprep.mubr.f32.mxu1 %v10199_v9  ;;  %v10210_v9 = vld [vmem:[#allocation67_spill] sm:$0xff] }
 0x4d2   :  { %3533 = vmatmul.mubr.f32.gmra.mrb[70].mxu1 %v10200_v34  ;;  %v10211_v34 = vld [vmem:[#allocation68_spill] sm:$0xff] }
 0x4d3   :  { %3538 = vmatprep.mubr.f32.mxu1 %v10201_v39  ;;  %v10212_v39 = vld [vmem:[#allocation69_spill] sm:$0xff] }
 0x4d6   :  { %3539 = vmatmul.mubr.f32.gmra.mrb[72].mxu1 %v10202_v5  ;;  %v10213_v5 = vld [vmem:[#allocation70_spill] sm:$0xff] }
 0x4d7   :  { %3544 = vmatprep.mubr.f32.mxu1 %v10203_v7  ;;  %v10214_v7 = vld [vmem:[#allocation71_spill] sm:$0xff] }
 0x4da   :  { %3545 = vmatmul.mubr.f32.gmra.mrb[74].mxu1 %v10204_v8  ;;  %v10215_v8 = vld [vmem:[#allocation72_spill] sm:$0xff] }
 0x4db   :  { %3550 = vmatprep.mubr.f32.mxu1 %v10205_v57  ;;  %v3905_v57 = vld [vmem:[#allocation12 + $0x600] sm:$0xff] }
 0x4de   :  { %3551 = vmatmul.mubr.f32.gmra.mrb[76].mxu1 %v10206_v49  ;;  %v3907_v49 = vld [vmem:[#allocation12 + $0x610] sm:$0xff] }
 0x4df   :  { %3556 = vmatprep.mubr.f32.mxu1 %v10207_v1  ;;  %v3912_v1 = vld [vmem:[#allocation12 + $0x638] sm:$0xff] }
 0x4e2   :  { %3557 = vmatmul.mubr.f32.gmra.mrb[78].mxu1 %v10208_v10  ;;  %v3909_v10 = vld [vmem:[#allocation12 + $0x620] sm:$0xff] }
 0x4e3   :  { %3562 = vmatprep.mubr.f32.mxu1 %v10209_v41  ;;  %v6494_v41 = vpack.c.bf16 %v3907_v49, %v3905_v57  ;;  %v3917_v49 = vld [vmem:[#allocation12 + $0x660] sm:$0xff] }
 0x4e6   :  { %3563 = vmatmul.mubr.f32.gmra.mrb[80].mxu1 %v10210_v9  ;;  %v6496_v9 = vpack.c.bf16 %v3912_v1, %v3910_v30  ;;  %v3919_v1 = vld [vmem:[#allocation12 + $0x670] sm:$0xff] }
 0x4e7   :  { %3568 = vmatprep.mubr.f32.mxu1 %v10211_v34  ;;  %v3911_v34 = vld [vmem:[#allocation12 + $0x630] sm:$0xff] }
 0x4ea   :  { %3569 = vmatmul.mubr.f32.gmra.mrb[82].mxu1 %v10212_v39  ;;  %v3916_v39 = vld [vmem:[#allocation12 + $0x658] sm:$0xff] }
 0x4eb   :  { %3574 = vmatprep.mubr.f32.mxu1 %v10213_v5  ;;  %v3913_v5 = vld [vmem:[#allocation12 + $0x640] sm:$0xff] }
 0x4ec   :  { %v6502_v30 = vpack.c.bf16 %v3915_v16, %v3913_v5  ;;  %v3930_v5 = vld [vmem:[#allocation12 + $0x6c8] sm:$0xff] }
 0x4ee   :  { %3575 = vmatmul.mubr.f32.gmra.mrb[84].mxu1 %v10214_v7  ;;  %v6500_v7 = vpack.c.bf16 %v3916_v39, %v3914_v47  ;;  %v6506_v47 = vpack.c.bf16 %v3919_v1, %v3917_v49 }
 0x4ef   :  { %3580 = vmatprep.mubr.f32.mxu1 %v10215_v8  ;;  %v6498_v8 = vpack.c.bf16 %v3911_v34, %v3909_v10  ;;  %v3926_v10 = vld [vmem:[#allocation12 + $0x6a8] sm:$0xff]  ;;  %v3929_v34 = vld [vmem:[#allocation12 + $0x6c0] sm:$0xff] }
 0x4f2   :  { %3581 = vmatmul.mubr.f32.gmra.mrb[86].mxu1 %v10216_v21  ;;  %v3920_v21 = vld [vmem:[#allocation12 + $0x678] sm:$0xff] }
 0x4f3   :  { %3651 = vmatprep.mubr.f32.mxu1 %v10138_v12  ;;  %v6504_v57 = vpack.c.bf16 %v3920_v21, %v3918_v61  ;;  %v3925_v21 = vld [vmem:[#allocation12 + $0x6a0] sm:$0xff] }
 0x4f6   :  { %3652 = vmatmul.mubr.f32.vlgmr.msra.gmra.mrb[32].mxu1 %v10138_v12 }
 0x4f7   :  { %6495 = vmatpush1.bf16.msra.mxu1 %v6494_v41  ;;  %3657 = vmatprep.mubr.f32.mxu1 %v10138_v12  ;;  %v3922_v41 = vld [vmem:[#allocation12 + $0x688] sm:$0xff] }
 0x4f8   :  { %6497 = vmatprep.subr.bf16.mxu1 %v6496_v9  ;;  %v6508_v39 = vpack.c.bf16 %v3924_v22, %v3922_v41  ;;  %v3928_v9 = vld [vmem:[#allocation12 + $0x6b8] sm:$0xff]  ;;  %v3933_v41 = vld [vmem:[#allocation12 + $0x6e0] sm:$0xff] }
 0x4f9   :  { %v6512_v16 = vpack.c.bf16 %v3928_v9, %v3926_v10  ;;  %v3937_v10 = vld [vmem:[#allocation12 + $0x700] sm:$0xff]  ;;  %v3942_v9 = vld [vmem:[#allocation12 + $0x728] sm:$0xff] }
 0x4fa   :  { %3658 = vmatmul.mubr.f32.gmra.mrb[34].mxu1 %v10217_v43  ;;  %v3923_v43 = vld [vmem:[#allocation12 + $0x690] sm:$0xff] }
 0x4fb   :  { %3663 = vmatprep.mubr.f32.mxu1 %v10138_v12  ;;  %6499 = vmatpush1.bf16.msra.mxu1 %v6498_v8  ;;  %v6510_v61 = vpack.c.bf16 %v3923_v43, %v3921_v25 }
 0x4fc   :  { %6501 = vmatprep.subr.bf16.mxu1 %v6500_v7  ;;  %v3932_v7 = vld [vmem:[#allocation12 + $0x6d8] sm:$0xff] }
 0x4fd   :  { %v6516_v8 = vpack.c.bf16 %v3932_v7, %v3930_v5  ;;  %v3946_v5 = vld [vmem:[#allocation12 + $0x748] sm:$0xff]  ;;  %v3948_v7 = vld [vmem:[#allocation12 + $0x758] sm:$0xff] }
 0x4fe   :  { %3664 = vmatmul.mubr.f32.gmra.mrb[36].mxu1 %v8197_v54  ;;  %v3927_v54 = vld [vmem:[#allocation12 + $0x6b0] sm:$0xff] }
 0x4ff   :  { %3669 = vmatprep.mubr.f32.mxu1 %v10138_v12  ;;  %6503 = vmatpush1.bf16.msra.mxu1 %v6502_v30  ;;  %v6514_v22 = vpack.c.bf16 %v3927_v54, %v3925_v21  ;;  %v3934_v30 = vld [vmem:[#allocation12 + $0x6e8] sm:$0xff]  ;;  %v3941_v54 = vld [vmem:[#allocation12 + $0x720] sm:$0xff] }
 0x500   :  { %6505 = vmatprep.subr.bf16.mxu1 %v6504_v57  ;;  %v3936_v57 = vld [vmem:[#allocation12 + $0x6f8] sm:$0xff] }
 0x501   :  { %v6520_v1 = vpack.c.bf16 %v3936_v57, %v3934_v30  ;;  %v3952_v30 = vld [vmem:[#allocation12 + $0x778] sm:$0xff] }
 0x502   :  { %3670 = vmatmul.mubr.f32.gmra.mrb[38].mxu1 %v8203_v3  ;;  %v3931_v3 = vld [vmem:[#allocation12 + $0x6d0] sm:$0xff] }
 0x503   :  { %3675 = vmatprep.mubr.f32.mxu1 %v10138_v12  ;;  %6507 = vmatpush1.bf16.msra.mxu1 %v6506_v47  ;;  %v6518_v49 = vpack.c.bf16 %v3931_v3, %v3929_v34  ;;  %v3938_v47 = vld [vmem:[#allocation12 + $0x708] sm:$0xff]  ;;  %v3945_v34 = vld [vmem:[#allocation12 + $0x740] sm:$0xff] }
 0x504   :  { %6509 = vmatprep.subr.bf16.mxu1 %v6508_v39  ;;  %v3940_v39 = vld [vmem:[#allocation12 + $0x718] sm:$0xff]  ;;  %v3950_v3 = vld [vmem:[#allocation12 + $0x768] sm:$0xff] }
 0x505   :  { %v6524_v43 = vpack.c.bf16 %v3940_v39, %v3938_v47 }
 0x506   :  { %3676 = vmatmul.mubr.f32.gmra.mrb[40].mxu1 %v8209_v4  ;;  %v3935_v4 = vld [vmem:[#allocation12 + $0x6f0] sm:$0xff] }
 0x507   :  { %3681 = vmatprep.mubr.f32.mxu1 %v10138_v12  ;;  %6511 = vmatpush1.bf16.msra.mxu1 %v6510_v61  ;;  %v6522_v25 = vpack.c.bf16 %v3935_v4, %v3933_v41  ;;  %v3944_v61 = vld [vmem:[#allocation12 + $0x738] sm:$0xff]  ;;  %v3954_v41 = vld [vmem:[#allocation12 + $0x788] sm:$0xff] }
 0x508   :  { %6513 = vmatprep.subr.bf16.mxu1 %v6512_v16  ;;  %v6528_v21 = vpack.c.bf16 %v3944_v61, %v3942_v9  ;;  %v3956_v4 = vld [vmem:[#allocation12 + $0x798] sm:$0xff]  ;;  %v3957_v61 = vld [vmem:[#allocation12 + $0x7a0] sm:$0xff] }
 0x509   :  { %v6540_v39 = vpack.c.bf16 %v3956_v4, %v3954_v41  ;;  %v10229_v41 = vld [vmem:[#allocation32_spill] sm:$0xff] }
 0x50a   :  { %3682 = vmatmul.mubr.f32.gmra.mrb[42].mxu1 %v8215_v31  ;;  %v3939_v31 = vld [vmem:[#allocation12 + $0x710] sm:$0xff] }
 0x50b   :  { %3687 = vmatprep.mubr.f32.mxu1 %v10138_v12  ;;  %6515 = vmatpush1.bf16.msra.mxu1 %v6514_v22  ;;  %v6526_v16 = vpack.c.bf16 %v3939_v31, %v3937_v10  ;;  %v3960_v10 = vld [vmem:[#allocation12 + $0x7b8] sm:$0xff] }
 0x50c   :  { %6517 = vmatprep.subr.bf16.mxu1 %v6516_v8  ;;  %v6532_v8 = vpack.c.bf16 %v3948_v7, %v3946_v5  ;;  %v3961_v5 = vld [vmem:[#allocation12 + $0x7c0] sm:$0xff]  ;;  %v3966_v7 = vld [vmem:[#allocation12 + $0x7e8] sm:$0xff] }
 0x50e   :  { %3688 = vmatmul.mubr.f32.gmra.mrb[44].mxu1 %v8221_v59  ;;  %v3943_v59 = vld [vmem:[#allocation12 + $0x730] sm:$0xff] }
 0x50f   :  { %3693 = vmatprep.mubr.f32.mxu1 %v10138_v12  ;;  %6519 = vmatpush1.bf16.msra.mxu1 %v6518_v49  ;;  %v6530_v22 = vpack.c.bf16 %v3943_v59, %v3941_v54  ;;  %v6536_v49 = vpack.c.bf16 %v3952_v30, %v3950_v3 }
 0x510   :  { %6521 = vmatprep.subr.bf16.mxu1 %v6520_v1  ;;  %v3949_v1 = vld [vmem:[#allocation12 + $0x760] sm:$0xff] }
 0x512   :  { %3694 = vmatmul.mubr.f32.gmra.mrb[46].mxu1 %v8227_v19  ;;  %v3947_v19 = vld [vmem:[#allocation12 + $0x750] sm:$0xff] }
 0x513   :  { %3699 = vmatprep.mubr.f32.mxu1 %v10138_v12  ;;  %6523 = vmatpush1.bf16.msra.mxu1 %v6522_v25  ;;  %v6534_v57 = vpack.c.bf16 %v3947_v19, %v3945_v34  ;;  %v3953_v25 = vld [vmem:[#allocation12 + $0x780] sm:$0xff] }
 0x514   :  { %6525 = vmatprep.subr.bf16.mxu1 %v6524_v43  ;;  %v3958_v43 = vld [vmem:[#allocation12 + $0x7a8] sm:$0xff]  ;;  %v3965_v19 = vld [vmem:[#allocation12 + $0x7e0] sm:$0xff] }
 0x515   :  { %v6544_v9 = vpack.c.bf16 %v3960_v10, %v3958_v43  ;;  %v10233_v43 = vld [vmem:[#allocation36_spill] sm:$0xff] }
 0x516   :  { %3700 = vmatmul.mubr.f32.gmra.mrb[48].mxu1 %v8233_v46  ;;  %v3951_v46 = vld [vmem:[#allocation12 + $0x770] sm:$0xff] }
 0x517   :  { %3705 = vmatprep.mubr.f32.mxu1 %v10138_v12  ;;  %6527 = vmatpush1.bf16.msra.mxu1 %v6526_v16  ;;  %v6538_v47 = vpack.c.bf16 %v3951_v46, %v3949_v1  ;;  %v3962_v16 = vld [vmem:[#allocation12 + $0x7c8] sm:$0xff]  ;;  %v5817_v46 = vld [vmem:[%s9967_s7 + $0x148] sm:$0xff] }
 0x518   :  { %6529 = vmatprep.subr.bf16.mxu1 %v6528_v21  ;;  %v3964_v21 = vld [vmem:[#allocation12 + $0x7d8] sm:$0xff] }
 0x519   :  { %v6548_v59 = vpack.c.bf16 %v3964_v21, %v3962_v16  ;;  %v10236_v16 = vld [vmem:[#allocation41_spill] sm:$0xff]  ;;  %v5827_v21 = vld [vmem:[%s9967_s7 + $0x198] sm:$0xff] }
 0x51a   :  { %3706 = vmatmul.mubr.f32.gmra.mrb[50].mxu1 %v8239_v24  ;;  %v3955_v24 = vld [vmem:[#allocation12 + $0x790] sm:$0xff] }
 0x51b   :  { %3711 = vmatprep.mubr.f32.mxu1 %v10138_v12  ;;  %6531 = vmatpush1.bf16.msra.mxu1 %v6530_v22  ;;  %v6542_v31 = vpack.c.bf16 %v3955_v24, %v3953_v25  ;;  %v3968_v22 = vld [vmem:[#allocation12 + $0x7f8] sm:$0xff] }
 0x51c   :  { %6533 = vmatprep.subr.bf16.mxu1 %v6532_v8  ;;  %v6552_v34 = vpack.c.bf16 %v3968_v22, %v3966_v7  ;;  %v5821_v24 = vld [vmem:[%s9967_s7 + $0x168] sm:$0xff]  ;;  %v10239_v22 = vld [vmem:[#allocation44_spill] sm:$0xff] }
 0x51d   :  { %v5829_v7 = vld [vmem:[%s9967_s7 + $0x1a8] sm:$0xff] }
 0x51e   :  { %3712 = vmatmul.mubr.f32.gmra.mrb[52].mxu1 %v8245_v26  ;;  %v3959_v26 = vld [vmem:[#allocation12 + $0x7b0] sm:$0xff] }
 0x51f   :  { %3717 = vmatprep.mubr.f32.mxu1 %v10138_v12  ;;  %6535 = vmatpush1.bf16.msra.mxu1 %v6534_v57  ;;  %v6546_v54 = vpack.c.bf16 %v3959_v26, %v3957_v61  ;;  %v5815_v57 = vld [vmem:[%s9967_s7 + $0x138] sm:$0xff]  ;;  %v5825_v61 = vld [vmem:[%s9967_s7 + $0x188] sm:$0xff] }
 0x520   :  { %6537 = vmatprep.subr.bf16.mxu1 %v6536_v49  ;;  %v10227_v49 = vld [vmem:[#allocation30_spill] sm:$0xff]  ;;  %v10235_v26 = vld [vmem:[#allocation40_spill] sm:$0xff] }
 0x522   :  { %3718 = vmatmul.mubr.f32.gmra.mrb[54].mxu1 %v8251_v6  ;;  %v3963_v6 = vld [vmem:[#allocation12 + $0x7d0] sm:$0xff] }
 0x523   :  { %3723 = vmatprep.mubr.f32.mxu1 %v10138_v12  ;;  %6539 = vmatpush1.bf16.msra.mxu1 %v6538_v47  ;;  %v6550_v8 = vpack.c.bf16 %v3963_v6, %v3961_v5  ;;  %v5819_v47 = vld [vmem:[%s9967_s7 + $0x158] sm:$0xff]  ;;  %v10238_v5 = vld [vmem:[#allocation43_spill] sm:$0xff]  ;;  %v5828_v6 = vld [vmem:[%s9967_s7 + $0x1a0] sm:$0xff] }
 0x524   :  { %6541 = vmatprep.subr.bf16.mxu1 %v6540_v39  ;;  %v10231_v39 = vld [vmem:[#allocation34_spill] sm:$0xff] }
 0x526   :  { %3724 = vmatmul.mubr.f32.gmra.mrb[56].mxu1 %v8259_v29  ;;  %v3967_v29 = vld [vmem:[#allocation12 + $0x7f0] sm:$0xff] }
 0x527   :  { %3729 = vmatprep.mubr.f32.mxu1 %v10138_v12  ;;  %6543 = vmatpush1.bf16.msra.mxu1 %v6542_v31  ;;  %v6554_v3 = vpack.c.bf16 %v3967_v29, %v3965_v19  ;;  %v5823_v31 = vld [vmem:[%s9967_s7 + $0x178] sm:$0xff]  ;;  %v5830_v19 = vld [vmem:[%s9967_s7 + $0x1b0] sm:$0xff] }
 0x528   :  { %6545 = vmatprep.subr.bf16.mxu1 %v6544_v9  ;;  %v5831_v29 = vld [vmem:[%s9967_s7 + $0x1b8] sm:$0xff] }
 0x52a   :  { %3730 = vmatmul.mubr.f32.gmra.mrb[58].mxu1 %v8267_v37  ;;  %v10218_v37 = vld [vmem:[#allocation22_spill] sm:$0xff] }
 0x52b   :  { %3735 = vmatprep.mubr.f32.mxu1 %v10138_v12  ;;  %6547 = vmatpush1.bf16.msra.mxu1 %v6546_v54  ;;  %v10237_v54 = vld [vmem:[#allocation42_spill] sm:$0xff] }
 0x52c   :  { %6549 = vmatprep.subr.bf16.mxu1 %v6548_v59 }
 0x52e   :  { %3736 = vmatmul.mubr.f32.gmra.mrb[60].mxu1 %v8277_v63  ;;  %v10219_v63 = vld [vmem:[#allocation23_spill] sm:$0xff] }
 0x52f   :  { %3741 = vmatprep.mubr.f32.mxu1 %v10138_v12  ;;  %6551 = vmatpush1.bf16.msra.mxu1 %v6550_v8  ;;  %v6619_v8 = vpack.c.bf16 %v5829_v7, %v5828_v6  ;;  %v10278_v7 = vld [vmem:[#allocation77_spill] sm:$0xff] }
 0x530   :  { %6553 = vmatprep.subr.bf16.mxu1 %v6552_v34  ;;  %v10240_v34 = vld [vmem:[#allocation45_spill] sm:$0xff] }
 0x532   :  { %3742 = vmatmul.mubr.f32.gmra.mrb[62].mxu1 %v8284_v38  ;;  %v10220_v38 = vld [vmem:[#allocation24_spill] sm:$0xff] }
 0x533   :  { %3747 = vmatprep.mubr.f32.mxu1 %v10138_v12  ;;  %6555 = vmatpush1.bf16.msra.mxu1 %v6554_v3  ;;  %v10241_v3 = vld [vmem:[#allocation46_spill] sm:$0xff] }
 0x534   :  { %6732 = vmatprep.subr.bf16.mxu1 %v10218_v37  ;;  %v6622_v37 = vpack.c.bf16 %v5831_v29, %v5830_v19  ;;  %v4760_v19 = vld [vmem:[%s9967_s7 + $0x8] sm:$0xff] }
 0x536   :  { %3748 = vmatmul.mubr.f32.gmra.mrb[64].mxu1 %v8288_v23  ;;  %v5808_v23 = vld [vmem:[%s9967_s7 + $0x100] sm:$0xff] }
 0x537   :  { %3753 = vmatprep.mubr.f32.mxu1 %v10138_v12 }
 0x53a   :  { %3754 = vmatmul.mubr.f32.gmra.mrb[66].mxu1 %v8292_v56  ;;  %v5809_v56 = vld [vmem:[%s9967_s7 + $0x108] sm:$0xff] }
 0x53b   :  { %3759 = vmatprep.mubr.f32.mxu1 %v10138_v12 }
 0x53e   :  { %3760 = vmatmul.mubr.f32.gmra.mrb[68].mxu1 %v8296_v18  ;;  %v5810_v18 = vld [vmem:[%s9967_s7 + $0x110] sm:$0xff] }
 0x53f   :  { %3765 = vmatprep.mubr.f32.mxu1 %v10138_v12 }
 0x542   :  { %3766 = vmatmul.mubr.f32.gmra.mrb[70].mxu1 %v8300_v20  ;;  %v10221_v20 = vld [vmem:[#allocation25_spill] sm:$0xff] }
 0x543   :  { %3771 = vmatprep.mubr.f32.mxu1 %v10138_v12 }
 0x546   :  { %3772 = vmatmul.mubr.f32.gmra.mrb[72].mxu1 %v8304_v42  ;;  %v6589_v42 = vpack.c.bf16 %v5809_v56, %v5808_v23  ;;  %v5833_v23 = vld [vmem:[%s9967_s7 + $0x1c8] sm:$0xff]  ;;  %v10243_v56 = vld [vmem:[#allocation48_spill] sm:$0xff] }
 0x547   :  { %3777 = vmatprep.mubr.f32.mxu1 %v10138_v12 }
 0x548   :  { %6590 = vmatpush1.bf16.msra.mxu0 %v6589_v42  ;;  %v5834_v42 = vld [vmem:[%s9967_s7 + $0x1d0] sm:$0xff] }
 0x54a   :  { %3778 = vmatmul.mubr.f32.gmra.mrb[74].mxu1 %v8308_v51  ;;  %v5811_v51 = vld [vmem:[%s9967_s7 + $0x118] sm:$0xff] }
 0x54b   :  { %3783 = vmatprep.mubr.f32.mxu1 %v10138_v12 }
 0x54e   :  { %3784 = vmatmul.mubr.f32.gmra.mrb[76].mxu1 %v8312_v50  ;;  %v10222_v50 = vld [vmem:[#allocation26_spill] sm:$0xff] }
 0x54f   :  { %3789 = vmatprep.mubr.f32.mxu1 %v10138_v12 }
 0x552   :  { %3790 = vmatmul.mubr.f32.gmra.mrb[78].mxu1 %v8316_v11  ;;  %v6592_v11 = vpack.c.bf16 %v5811_v51, %v5810_v18  ;;  %v5835_v51 = vld [vmem:[%s9967_s7 + $0x1d8] sm:$0xff] }
 0x553   :  { %3795 = vmatprep.mubr.f32.mxu1 %v10138_v12 }
 0x556   :  { %3796 = vmatmul.mubr.f32.gmra.mrb[80].mxu1 %v8693_v36 }
 0x557   :  { %3801 = vmatprep.mubr.f32.mxu1 %v10138_v12 }
 0x55a   :  { %3802 = vmatmul.mubr.f32.gmra.mrb[82].mxu1 %v8698_v15 }
 0x55b   :  { %3807 = vmatprep.mubr.f32.mxu1 %v10138_v12 }
 0x55e   :  { %3808 = vmatmul.mubr.f32.gmra.mrb[84].mxu1 %v8703_v27 }
 0x55f   :  { %3813 = vmatprep.mubr.f32.mxu1 %v10138_v12 }
 0x562   :  { %3814 = vmatmul.mubr.f32.gmra.mrb[86].mxu1 %v8708_v28 }
 0x563   :  { %4065 = vmatprep.mubr.f32.mxu1 %v8337_v2  ;;  %v10223_v2 = vmov 0.0|0.0  }
 0x564   :  { %6591 = vmatprep.subr.bf16.mxu0 %v10223_v2 }
 0x565   :  { %6593 = vmatpush1.bf16.msra.mxu0 %v6592_v11  ;;  %v6628_v11 = vpack.c.bf16 %v5835_v51, %v5834_v42 }
 0x566   :  { %4066 = vmatmul.mubr.f32.vlgmr.msra.gmra.mrb[32].mxu1 %v8340_v58  ;;  %v5812_v58 = vld [vmem:[%s9967_s7 + $0x120] sm:$0xff]  ;;  %6594 = vmatprep.subr.bf16.mxu0 %v10223_v2 }
 0x567   :  { %6740 = vmatpush1.bf16.msra.mxu1 %v10219_v63  ;;  %4071 = vmatprep.mubr.f32.mxu1 %v8345_v35  ;;  %v5813_v35 = vld [vmem:[%s9967_s7 + $0x128] sm:$0xff]  ;;  %v10242_v63 = vld [vmem:[#allocation47_spill] sm:$0xff] }
 0x568   :  { %6733 = vmatprep.subr.bf16.mxu1 %v10220_v38  ;;  %v6595_v30 = vpack.c.bf16 %v5813_v35, %v5812_v58  ;;  %v5832_v38 = vld [vmem:[%s9967_s7 + $0x1c0] sm:$0xff]  ;;  %v10246_v58 = vld [vmem:[#allocation51_spill] sm:$0xff]  ;;  %v10247_v35 = vld [vmem:[#allocation52_spill] sm:$0xff] }
 0x569   :  { %v6625_v18 = vpack.c.bf16 %v5833_v23, %v5832_v38 }
 0x56a   :  { %4072 = vmatmul.mubr.f32.gmra.mrb[34].mxu1 %v8348_v45  ;;  %v10224_v45 = vld [vmem:[#allocation27_spill] sm:$0xff]  ;;  %6596 = vmatpush1.bf16.msra.mxu0 %v6595_v30 }
 0x56b   :  { %4077 = vmatprep.mubr.f32.mxu1 %v8353_v53  ;;  %6741 = vmatpush1.bf16.msra.mxu1 %v10221_v20  ;;  %v10225_v53 = vld [vmem:[#allocation28_spill] sm:$0xff]  ;;  %v10244_v20 = vld [vmem:[#allocation49_spill] sm:$0xff]  ;;  %v10250_v30 = vld [vmem:[#allocation55_spill] sm:$0xff] }
 0x56c   :  { %6734 = vmatprep.subr.bf16.mxu1 %v10222_v50  ;;  %6597 = vmatprep.subr.bf16.mxu0 %v10223_v2  ;;  %v10245_v50 = vld [vmem:[#allocation50_spill] sm:$0xff] }
 0x56e   :  { %4078 = vmatmul.mubr.f32.gmra.mrb[36].mxu1 %v8356_v40  ;;  %v5814_v40 = vld [vmem:[%s9967_s7 + $0x130] sm:$0xff] }
 0x56f   :  { %4083 = vmatprep.mubr.f32.mxu1 %v8361_v0  ;;  %6742 = vmatpush1.bf16.msra.mxu1 %v10224_v45  ;;  %v10226_v0 = vld [vmem:[#allocation29_spill] sm:$0xff]  ;;  %v6598_v1 = vpack.c.bf16 %v5815_v57, %v5814_v40  ;;  %v10251_v40 = vld [vmem:[#allocation56_spill] sm:$0xff] }
 0x570   :  { %6735 = vmatprep.subr.bf16.mxu1 %v10225_v53  ;;  %v10248_v45 = vld [vmem:[#allocation53_spill] sm:$0xff]  ;;  %v10249_v53 = vld [vmem:[#allocation54_spill] sm:$0xff] }
 0x571   :  { %6599 = vmatpush1.bf16.msra.mxu0 %v6598_v1  ;;  %v10252_v57 = vld [vmem:[#allocation57_spill] sm:$0xff]  ;;  %v10255_v1 = vld [vmem:[#allocation60_spill] sm:$0xff] }
 0x572   :  { %4084 = vmatmul.mubr.f32.gmra.mrb[38].mxu1 %v8364_v32  ;;  %v5816_v32 = vld [vmem:[%s9967_s7 + $0x140] sm:$0xff]  ;;  %6600 = vmatprep.subr.bf16.mxu0 %v10223_v2 }
 0x573   :  { %4089 = vmatprep.mubr.f32.mxu1 %v8369_v52  ;;  %6743 = vmatpush1.bf16.msra.mxu1 %v10226_v0  ;;  %v10228_v52 = vld [vmem:[#allocation31_spill] sm:$0xff]  ;;  %v6601_v4 = vpack.c.bf16 %v5817_v46, %v5816_v32  ;;  %v10253_v0 = vld [vmem:[#allocation58_spill] sm:$0xff]  ;;  %v10256_v32 = vld [vmem:[#allocation61_spill] sm:$0xff] }
 0x574   :  { %6736 = vmatprep.subr.bf16.mxu1 %v10227_v49  ;;  %v10254_v49 = vld [vmem:[#allocation59_spill] sm:$0xff]  ;;  %v10257_v46 = vld [vmem:[#allocation62_spill] sm:$0xff] }
 0x575   :  { %6602 = vmatpush1.bf16.msra.mxu0 %v6601_v4  ;;  %v5836_v4 = vld [vmem:[%s9967_s7 + $0x1e0] sm:$0xff] }
 0x576   :  { %4090 = vmatmul.mubr.f32.gmra.mrb[40].mxu1 %v8372_v55  ;;  %v5818_v55 = vld [vmem:[%s9967_s7 + $0x150] sm:$0xff]  ;;  %6603 = vmatprep.subr.bf16.mxu0 %v10223_v2 }
 0x577   :  { %4095 = vmatprep.mubr.f32.mxu1 %v8377_v14  ;;  %6744 = vmatpush1.bf16.msra.mxu1 %v10228_v52  ;;  %v10230_v14 = vld [vmem:[#allocation33_spill] sm:$0xff]  ;;  %v6604_v25 = vpack.c.bf16 %v5819_v47, %v5818_v55  ;;  %v10258_v52 = vld [vmem:[#allocation63_spill] sm:$0xff]  ;;  %v5837_v55 = vld [vmem:[%s9967_s7 + $0x1e8] sm:$0xff] }
 0x578   :  { %6737 = vmatprep.subr.bf16.mxu1 %v10229_v41  ;;  %v10259_v41 = vld [vmem:[#allocation64_spill] sm:$0xff]  ;;  %v10260_v47 = vld [vmem:[#allocation65_spill] sm:$0xff] }
 0x579   :  { %6605 = vmatpush1.bf16.msra.mxu0 %v6604_v25  ;;  %v5838_v25 = vld [vmem:[%s9967_s7 + $0x1f0] sm:$0xff] }
 0x57a   :  { %4096 = vmatmul.mubr.f32.gmra.mrb[42].mxu1 %v8379_v33  ;;  %v5820_v33 = vld [vmem:[%s9967_s7 + $0x160] sm:$0xff]  ;;  %6606 = vmatprep.subr.bf16.mxu0 %v10223_v2 }
 0x57b   :  { %4101 = vmatprep.mubr.f32.mxu1 %v8385_v60  ;;  %6745 = vmatpush1.bf16.msra.mxu1 %v10230_v14  ;;  %v10232_v60 = vld [vmem:[#allocation35_spill] sm:$0xff]  ;;  %v6607_v10 = vpack.c.bf16 %v5821_v24, %v5820_v33  ;;  %v6631_v14 = vpack.c.bf16 %v5837_v55, %v5836_v4  ;;  %v5839_v33 = vld [vmem:[%s9967_s7 + $0x1f8] sm:$0xff]  ;;  %v10283_v55 = vld [vmem:[#allocation82_spill] sm:$0xff] }
 0x57c   :  { %6738 = vmatprep.subr.bf16.mxu1 %v10231_v39  ;;  %v10261_v39 = vld [vmem:[#allocation66_spill] sm:$0xff]  ;;  %v10262_v24 = vld [vmem:[#allocation67_spill] sm:$0xff] }
 0x57d   :  { %6608 = vmatpush1.bf16.msra.mxu0 %v6607_v10  ;;  %v10264_v10 = vld [vmem:[#allocation69_spill] sm:$0xff] }
 0x57e   :  { %4102 = vmatmul.mubr.f32.gmra.mrb[44].mxu1 %v8387_v48  ;;  %v5822_v48 = vld [vmem:[%s9967_s7 + $0x170] sm:$0xff]  ;;  %6609 = vmatprep.subr.bf16.mxu0 %v10223_v2 }
 0x57f   :  { %4107 = vmatprep.mubr.f32.mxu1 %v8393_v13  ;;  %6746 = vmatpush1.bf16.msra.mxu1 %v10232_v60  ;;  %v10234_v13 = vld [vmem:[#allocation37_spill] sm:$0xff]  ;;  %v6610_v9 = vpack.c.bf16 %v5823_v31, %v5822_v48  ;;  %v6634_v60 = vpack.c.bf16 %v5839_v33, %v5838_v25  ;;  %v10265_v48 = vld [vmem:[#allocation70_spill] sm:$0xff]  ;;  %v10266_v31 = vld [vmem:[#allocation71_spill] sm:$0xff] }
 0x580   :  { %6739 = vmatprep.subr.bf16.mxu1 %v10233_v43  ;;  %v10263_v43 = vld [vmem:[#allocation68_spill] sm:$0xff]  ;;  %v10284_v25 = vld [vmem:[#allocation83_spill] sm:$0xff] }
 0x581   :  { %6611 = vmatpush1.bf16.msra.mxu0 %v6610_v9  ;;  %v10268_v9 = vld [vmem:[#allocation73_spill] sm:$0xff] }
 0x582   :  { %4108 = vmatmul.mubr.f32.gmra.mrb[46].mxu1 %v8395_v17  ;;  %v5824_v17 = vld [vmem:[%s9967_s7 + $0x180] sm:$0xff]  ;;  %6612 = vmatprep.subr.bf16.mxu0 %v10223_v2 }
 0x583   :  { %4113 = vmatprep.mubr.f32.mxu1 %v8401_v62  ;;  %6747 = vmatpush1.bf16.msra.mxu1 %v10234_v13  ;;  %v6613_v62 = vpack.c.bf16 %v5825_v61, %v5824_v17  ;;  %v10267_v13 = vld [vmem:[#allocation72_spill] sm:$0xff]  ;;  %v10269_v17 = vld [vmem:[#allocation75_spill] sm:$0xff] }
 0x584   :  { %v10270_v61 = vmax.f32 %v10269_v17, 0.0 }
 0x585   :  { %6614 = vmatpush1.bf16.msra.mxu0 %v6613_v62 }
 0x586   :  { %4114 = vmatmul.mubr.f32.gmra.mrb[48].mxu1 %v10182_v44  ;;  %v5826_v44 = vld [vmem:[%s9967_s7 + $0x190] sm:$0xff]  ;;  %6615 = vmatprep.subr.bf16.mxu0 %v10223_v2 }
 0x587   :  { %4119 = vmatprep.mubr.f32.mxu1 %v10235_v26  ;;  %v6616_v59 = vpack.c.bf16 %v5827_v21, %v5826_v44  ;;  %v10271_v26 = vld [vmem:[#allocation74_spill] sm:$0xff]  ;;  %v10275_v21 = vld [vmem:[#allocation21_spill] sm:$0xff] }
 0x588   :  { %v10272_v62 = vmax.f32 %v10271_v26, 0.0 }
 0x589   :  { %6617 = vmatpush1.bf16.msra.mxu0 %v6616_v59 }
 0x58a   :  { %4120 = vmatmul.mubr.f32.gmra.mrb[50].mxu1 %v10236_v16  ;;  %6618 = vmatprep.subr.bf16.mxu0 %v10223_v2  ;;  %v10273_v16 = vld [vmem:[#allocation38_spill] sm:$0xff] }
 0x58b   :  { %4125 = vmatprep.mubr.f32.mxu1 %v10237_v54  ;;  %v10274_v44 = vmax.f32 %v10273_v16, 0.0  ;;  %v10276_v54 = vld [vmem:[#allocation20_spill] sm:$0xff] }
 0x58d   :  { %6620 = vmatpush1.bf16.msra.mxu0 %v6619_v8 }
 0x58e   :  { %4126 = vmatmul.mubr.f32.gmra.mrb[52].mxu1 %v10238_v5  ;;  %6621 = vmatprep.subr.bf16.mxu0 %v10223_v2  ;;  %v10277_v5 = vld [vmem:[#allocation76_spill] sm:$0xff] }
 0x58f   :  { %4131 = vmatprep.mubr.f32.mxu1 %v10239_v22 }
 0x591   :  { %6623 = vmatpush1.bf16.msra.mxu0 %v6622_v37  ;;  %v10279_v37 = vld [vmem:[#allocation78_spill] sm:$0xff] }
 0x592   :  { %4132 = vmatmul.mubr.f32.gmra.mrb[54].mxu1 %v10240_v34  ;;  %6624 = vmatprep.subr.bf16.mxu0 %v10223_v2  ;;  %v4759_v34 = vld [vmem:[%s9967_s7] sm:$0xff] }
 0x593   :  { %4137 = vmatprep.mubr.f32.mxu1 %v10241_v3 }
 0x595   :  { %6626 = vmatpush1.bf16.msra.mxu0 %v6625_v18 }
 0x596   :  { %4138 = vmatmul.mubr.f32.gmra.mrb[56].mxu1 %v10242_v63  ;;  %6627 = vmatprep.subr.bf16.mxu0 %v10223_v2 }
 0x597   :  { %4143 = vmatprep.mubr.f32.mxu1 %v10243_v56  ;;  %v10280_v56 = vld [vmem:[#allocation79_spill] sm:$0xff] }
 0x599   :  { %6629 = vmatpush1.bf16.msra.mxu0 %v6628_v11  ;;  %v4762_v11 = vld [vmem:[%s9967_s7 + $0x18] sm:$0xff] }
 0x59a   :  { %4144 = vmatmul.mubr.f32.gmra.mrb[58].mxu1 %v10244_v20  ;;  %6630 = vmatprep.subr.bf16.mxu0 %v10223_v2  ;;  %v6637_v20 = vpack.c.bf16 %v4760_v19, %v4759_v34  ;;  %v10288_v19 = vld [vmem:[#allocation87_spill] sm:$0xff] }
 0x59b   :  { %4149 = vmatprep.mubr.f32.mxu1 %v10245_v50  ;;  %v4761_v50 = vld [vmem:[%s9967_s7 + $0x10] sm:$0xff] }
 0x59d   :  { %6632 = vmatpush1.bf16.msra.mxu0 %v6631_v14 }
 0x59e   :  { %4150 = vmatmul.mubr.f32.gmra.mrb[60].mxu1 %v10246_v58  ;;  %6633 = vmatprep.subr.bf16.mxu0 %v10223_v2 }
 0x59f   :  { %4155 = vmatprep.mubr.f32.mxu1 %v10247_v35 }
 0x5a1   :  { %6635 = vmatpush1.bf16.msra.mxu0 %v6634_v60 }
 0x5a2   :  { %4156 = vmatmul.mubr.f32.gmra.mrb[62].mxu1 %v10248_v45  ;;  %6636 = vmatprep.subr.bf16.mxu0 %v10223_v2  ;;  %v10281_v45 = vld [vmem:[#allocation80_spill] sm:$0xff] }
 0x5a3   :  { %4161 = vmatprep.mubr.f32.mxu1 %v10249_v53 }
 0x5a6   :  { %4162 = vmatmul.mubr.f32.gmra.mrb[64].mxu1 %v10250_v30 }
 0x5a7   :  { %4167 = vmatprep.mubr.f32.mxu1 %v10251_v40 }
 0x5aa   :  { %4168 = vmatmul.mubr.f32.gmra.mrb[66].mxu1 %v10252_v57  ;;  %v10282_v57 = vld [vmem:[#allocation81_spill] sm:$0xff] }
 0x5ab   :  { %4173 = vmatprep.mubr.f32.mxu1 %v10253_v0 }
 0x5ae   :  { %4174 = vmatmul.mubr.f32.gmra.mrb[68].mxu1 %v10254_v49  ;;  %v6640_v49 = vpack.c.bf16 %v4762_v11, %v4761_v50  ;;  %v10289_v50 = vld [vmem:[#allocation88_spill] sm:$0xff] }
 0x5af   :  { %4179 = vmatprep.mubr.f32.mxu1 %v10255_v1 }
 0x5b2   :  { %4180 = vmatmul.mubr.f32.gmra.mrb[70].mxu1 %v10256_v32 }
 0x5b3   :  { %4185 = vmatprep.mubr.f32.mxu1 %v10257_v46  ;;  %v4763_v46 = vld [vmem:[%s9967_s7 + $0x20] sm:$0xff] }
 0x5b6   :  { %4186 = vmatmul.mubr.f32.gmra.mrb[72].mxu1 %v10258_v52  ;;  %v4764_v52 = vld [vmem:[%s9967_s7 + $0x28] sm:$0xff] }
 0x5b7   :  { %4191 = vmatprep.mubr.f32.mxu1 %v10259_v41 }
 0x5ba   :  { %4192 = vmatmul.mubr.f32.gmra.mrb[74].mxu1 %v10260_v47 }
 0x5bb   :  { %4197 = vmatprep.mubr.f32.mxu1 %v10261_v39 }
 0x5be   :  { %4198 = vmatmul.mubr.f32.gmra.mrb[76].mxu1 %v10262_v24  ;;  %v6643_v24 = vpack.c.bf16 %v4764_v52, %v4763_v46 }
 0x5bf   :  { %4203 = vmatprep.mubr.f32.mxu1 %v10263_v43 }
 0x5c2   :  { %4204 = vmatmul.mubr.f32.gmra.mrb[78].mxu1 %v10264_v10  ;;  %v4765_v10 = vld [vmem:[%s9967_s7 + $0x30] sm:$0xff] }
 0x5c3   :  { %4209 = vmatprep.mubr.f32.mxu1 %v10265_v48  ;;  %v4766_v48 = vld [vmem:[%s9967_s7 + $0x38] sm:$0xff] }
 0x5c6   :  { %4210 = vmatmul.mubr.f32.gmra.mrb[80].mxu1 %v10266_v31 }
 0x5c7   :  { %4215 = vmatprep.mubr.f32.mxu1 %v10267_v13 }
 0x5ca   :  { %4216 = vmatmul.mubr.f32.gmra.mrb[82].mxu1 %v10268_v9  ;;  %v10285_v9 = vld [vmem:[#allocation84_spill] sm:$0xff] }
 0x5cb   :  { %4221 = vmatprep.mubr.f32.mxu1 %v10270_v61 }
 0x5ce   :  { %4222 = vmatmul.mubr.f32.gmra.mrb[84].mxu1 %v10272_v62  ;;  %v10286_v62 = vld [vmem:[#allocation85_spill] sm:$0xff] }
 0x5cf   :  { %4227 = vmatprep.mubr.f32.mxu1 %v10138_v12 }
 0x5d2   :  { %4228 = vmatmul.mubr.f32.gmra.mrb[86].mxu1 %v10138_v12 }
 0x5d3   :  { %4430 = vmatprep.mubr.f32.mxu1 %v10138_v12 }
 0x5d6   :  { %4431 = vmatmul.mubr.f32.vlgmr.msra.gmra.mrb[76].mxu1 %v8693_v36  ;;  %v4523_v36 = vld [vmem:[#allocation13] sm:$0x3] }
 0x5d7   :  { %4436 = vmatprep.mubr.f32.mxu1 %v10138_v12  ;;  %v9033_v59 = vrot.slane %v4523_v36, %v10276_v54  ;;  %v4767_v54 = vld [vmem:[%s9967_s7 + $0x40] sm:$0xff] }
 0x5da   :  { %4437 = vmatmul.mubr.f32.gmra.mrb[78].mxu1 %v8698_v15  ;;  %v9030_v15 = vrot.slane %v4523_v36, %v10275_v21 }
 0x5db   :  { %4442 = vmatprep.mubr.f32.mxu1 %v10138_v12 }
 0x5de   :  { %4443 = vmatmul.mubr.f32.gmra.mrb[80].mxu1 %v8703_v27 }
 0x5df   :  { %4448 = vmatprep.mubr.f32.mxu1 %v10138_v12 }
 0x5e2   :  { %4449 = vmatmul.mubr.f32.gmra.mrb[82].mxu1 %v8708_v28 }
 0x5e3   :  { %4454 = vmatprep.mubr.f32.mxu1 %v10138_v12 }
 0x5e6   :  { %4455 = vmatmul.mubr.f32.gmra.mrb[84].mxu1 %v10274_v44  ;;  %v6646_v44 = vpack.c.bf16 %v4766_v48, %v4765_v10  ;;  %v4773_v10 = vld [vmem:[%s9967_s7 + $0x70] sm:$0xff]  ;;  %v4774_v48 = vld [vmem:[%s9967_s7 + $0x78] sm:$0xff] }
 0x5e7   :  { %4460 = vmatprep.mubr.f32.mxu1 %v10138_v12 }
 0x5ea   :  { %4461 = vmatmul.mubr.f32.gmra.mrb[86].mxu1 %v10138_v12 }
 0x639   :  { %v4067_v27 = vpop.f32.mrb[32].mxu1 }
 0x63a   :  { %v4301_v6 = vadd.f32 %v10277_v5, %v4067_v27  ;;  %v4069_v28 = vpop.f32.mrb[33].mxu1  ;;  %v4768_v27 = vld [vmem:[%s9967_s7 + $0x48] sm:$0xff] }
 0x63b   :  { %v4303_v22 = vadd.f32 %v10278_v7, %v4069_v28  ;;  %v10287_v28 = vld [vmem:[#allocation86_spill] sm:$0xff] }
 0x63c   :  { %v9038_v8 = vadd.f32 %v9030_v15, %v4301_v6 }
 0x63d   :  { %v9047_v29 = vadd.f32 %v9033_v59, %v4303_v22  ;;  %v4073_v3 = vpop.f32.mrb[34].mxu1 }
 0x63e   :  { %v4307_v63 = vadd.f32 %v10279_v37, %v4073_v3  ;;  %v4075_v38 = vpop.f32.mrb[35].mxu1  ;;  %v10071_v42 = vmax.f32 %v9038_v8, 0.0  ;;  %v6649_v37 = vpack.c.bf16 %v4768_v27, %v4767_v54 }
 0x63f   :  { %v10072_v23 = vmax.f32 %v9047_v29, 0.0  ;;  %v4309_v18 = vadd.f32 %v10280_v56, %v4075_v38  ;;  %v4769_v56 = vld [vmem:[%s9967_s7 + $0x50] sm:$0xff] }
 0x640   :  { %v4537_v51 = vadd.f32 %v9030_v15, %v4307_v63 }
 0x641   :  { %v4538_v58 = vadd.f32 %v9033_v59, %v4309_v18  ;;  %v4079_v35 = vpop.f32.mrb[36].mxu1  ;;  %4890 = vmatprep.mubr.f32.mxu0 %v10072_v23  ;;  %v4770_v18 = vld [vmem:[%s9967_s7 + $0x58] sm:$0xff] }
 0x642   :  { %v4313_v53 = vadd.f32 %v10281_v45, %v4079_v35  ;;  %v4081_v30 = vpop.f32.mrb[37].mxu1  ;;  %4891 = vmatmul.mubr.f32.vlgmr.msra.gmra.mrb[104].mxu0 %v10071_v42  ;;  %v9069_v1 = vmax.f32 %v4537_v51, 0.0  ;;  %v10290_v45 = vld [vmem:[#allocation89_spill] sm:$0xff] }
 0x643   :  { %v9066_v40 = vmax.f32 %v4538_v58, 0.0  ;;  %v4315_v0 = vadd.f32 %v10282_v57, %v4081_v30  ;;  %6638 = vmatpush1.bf16.msra.mxu0 %v6637_v20  ;;  %v6652_v30 = vpack.c.bf16 %v4770_v18, %v4769_v56 }
 0x644   :  { %v4539_v32 = vadd.f32 %v9030_v15, %v4313_v53  ;;  %6639 = vmatprep.subr.bf16.mxu0 %v10223_v2 }
 0x645   :  { %v4540_v41 = vadd.f32 %v9033_v59, %v4315_v0  ;;  %v4085_v4 = vpop.f32.mrb[38].mxu1  ;;  %4895 = vmatprep.mubr.f32.mxu0 %v9066_v40 }
 0x646   :  { %v4319_v47 = vadd.f32 %v10283_v55, %v4085_v4  ;;  %v4087_v14 = vpop.f32.mrb[39].mxu1  ;;  %4896 = vmatmul.mubr.f32.gmra.mrb[106].mxu0 %v9069_v1  ;;  %v9086_v60 = vmax.f32 %v4539_v32, 0.0  ;;  %v4772_v32 = vld [vmem:[%s9967_s7 + $0x68] sm:$0xff] }
 0x647   :  { %v9083_v39 = vmax.f32 %v4540_v41, 0.0  ;;  %v4321_v33 = vadd.f32 %v10284_v25, %v4087_v14  ;;  %6641 = vmatpush1.bf16.msra.mxu0 %v6640_v49  ;;  %v4771_v49 = vld [vmem:[%s9967_s7 + $0x60] sm:$0xff]  ;;  %v10291_v41 = vld [vmem:[#allocation90_spill] sm:$0xff]  ;;  %v10292_v14 = vld [vmem:[#allocation91_spill] sm:$0xff] }
 0x648   :  { %v4541_v43 = vadd.f32 %v9030_v15, %v4319_v47  ;;  %6642 = vmatprep.subr.bf16.mxu0 %v10223_v2 }
 0x649   :  { %v4542_v31 = vadd.f32 %v9033_v59, %v4321_v33  ;;  %v4091_v13 = vpop.f32.mrb[40].mxu1  ;;  %4900 = vmatprep.mubr.f32.mxu0 %v9083_v39  ;;  %v6655_v33 = vpack.c.bf16 %v4772_v32, %v4771_v49  ;;  %v10298_v32 = vld [vmem:[#allocation97_spill] sm:$0xff] }
 0x64a   :  { %v4325_v17 = vadd.f32 %v10285_v9, %v4091_v13  ;;  %v4093_v61 = vpop.f32.mrb[41].mxu1  ;;  %4901 = vmatmul.mubr.f32.gmra.mrb[108].mxu0 %v9086_v60  ;;  %v9103_v36 = vmax.f32 %v4541_v43, 0.0  ;;  %v10293_v9 = vld [vmem:[#allocation92_spill] sm:$0xff] }
 0x64b   :  { %v9100_v26 = vmax.f32 %v4542_v31, 0.0  ;;  %v4327_v16 = vadd.f32 %v10286_v62, %v4093_v61  ;;  %6644 = vmatpush1.bf16.msra.mxu0 %v6643_v24 }
 0x64c   :  { %v4543_v21 = vadd.f32 %v9030_v15, %v4325_v17  ;;  %6645 = vmatprep.subr.bf16.mxu0 %v10223_v2 }
 0x64d   :  { %v4544_v5 = vadd.f32 %v9033_v59, %v4327_v16  ;;  %v4097_v6 = vpop.f32.mrb[42].mxu1  ;;  %4905 = vmatprep.mubr.f32.mxu0 %v9100_v26  ;;  %v10294_v16 = vld [vmem:[#allocation93_spill] sm:$0xff] }
 0x64e   :  { %v4331_v7 = vadd.f32 %v10287_v28, %v4097_v6  ;;  %v4099_v22 = vpop.f32.mrb[43].mxu1  ;;  %4906 = vmatmul.mubr.f32.gmra.mrb[110].mxu0 %v9103_v36  ;;  %v9120_v63 = vmax.f32 %v4543_v21, 0.0  ;;  %v6658_v21 = vpack.c.bf16 %v4774_v48, %v4773_v10  ;;  %v4776_v6 = vld [vmem:[%s9967_s7 + $0x88] sm:$0xff] }
 0x64f   :  { %v9117_v34 = vmax.f32 %v4544_v5, 0.0  ;;  %v4333_v3 = vadd.f32 %v10288_v19, %v4099_v22  ;;  %6647 = vmatpush1.bf16.msra.mxu0 %v6646_v44  ;;  %v4775_v5 = vld [vmem:[%s9967_s7 + $0x80] sm:$0xff]  ;;  %v10295_v22 = vld [vmem:[#allocation94_spill] sm:$0xff] }
 0x650   :  { %v4545_v38 = vadd.f32 %v9030_v15, %v4331_v7  ;;  %6648 = vmatprep.subr.bf16.mxu0 %v10223_v2  ;;  %v6661_v18 = vpack.c.bf16 %v4776_v6, %v4775_v5  ;;  %v10301_v6 = vld [vmem:[#allocation100_spill] sm:$0xff] }
 0x651   :  { %v4546_v20 = vadd.f32 %v9033_v59, %v4333_v3  ;;  %v4103_v51 = vpop.f32.mrb[44].mxu1  ;;  %4910 = vmatprep.mubr.f32.mxu0 %v9117_v34 }
 0x652   :  { %v4337_v11 = vadd.f32 %v10289_v50, %v4103_v51  ;;  %v4105_v58 = vpop.f32.mrb[45].mxu1  ;;  %4911 = vmatmul.mubr.f32.gmra.mrb[112].mxu0 %v9120_v63  ;;  %v9137_v57 = vmax.f32 %v4545_v38, 0.0  ;;  %v10296_v38 = vld [vmem:[#allocation95_spill] sm:$0xff] }
 0x653   :  { %v9134_v35 = vmax.f32 %v4546_v20, 0.0  ;;  %v4339_v53 = vadd.f32 %v10290_v45, %v4105_v58  ;;  %6650 = vmatpush1.bf16.msra.mxu0 %v6649_v37  ;;  %v4777_v50 = vld [vmem:[%s9967_s7 + $0x90] sm:$0xff] }
 0x654   :  { %v4547_v0 = vadd.f32 %v9030_v15, %v4337_v11  ;;  %6651 = vmatprep.subr.bf16.mxu0 %v10223_v2  ;;  %v4778_v11 = vld [vmem:[%s9967_s7 + $0x98] sm:$0xff] }
 0x655   :  { %v4548_v46 = vadd.f32 %v9033_v59, %v4339_v53  ;;  %v4109_v52 = vpop.f32.mrb[46].mxu1  ;;  %4915 = vmatprep.mubr.f32.mxu0 %v9134_v35  ;;  %v10297_v53 = vld [vmem:[#allocation96_spill] sm:$0xff] }
 0x656   :  { %v4343_v4 = vadd.f32 %v10291_v41, %v4109_v52  ;;  %v4111_v55 = vpop.f32.mrb[47].mxu1  ;;  %4916 = vmatmul.mubr.f32.gmra.mrb[114].mxu0 %v9137_v57  ;;  %v9154_v24 = vmax.f32 %v4547_v0, 0.0  ;;  %v6664_v52 = vpack.c.bf16 %v4778_v11, %v4777_v50  ;;  %v4784_v50 = vld [vmem:[%s9967_s7 + $0xc8] sm:$0xff] }
 0x657   :  { %v9151_v47 = vmax.f32 %v4548_v46, 0.0  ;;  %v4345_v25 = vadd.f32 %v10292_v14, %v4111_v55  ;;  %6653 = vmatpush1.bf16.msra.mxu0 %v6652_v30  ;;  %v4779_v55 = vld [vmem:[%s9967_s7 + $0xa0] sm:$0xff]  ;;  %v4780_v14 = vld [vmem:[%s9967_s7 + $0xa8] sm:$0xff] }
 0x658   :  { %v4549_v43 = vadd.f32 %v9030_v15, %v4343_v4  ;;  %6654 = vmatprep.subr.bf16.mxu0 %v10223_v2 }
 0x659   :  { %v4550_v31 = vadd.f32 %v9033_v59, %v4345_v25  ;;  %v4115_v13 = vpop.f32.mrb[48].mxu1  ;;  %4920 = vmatprep.mubr.f32.mxu0 %v9151_v47 }
 0x65a   :  { %v4349_v17 = vadd.f32 %v10293_v9, %v4115_v13  ;;  %v4117_v61 = vpop.f32.mrb[49].mxu1  ;;  %4921 = vmatmul.mubr.f32.gmra.mrb[116].mxu0 %v9154_v24  ;;  %v9171_v54 = vmax.f32 %v4549_v43, 0.0  ;;  %v10299_v43 = vld [vmem:[#allocation98_spill] sm:$0xff]  ;;  %v10300_v13 = vld [vmem:[#allocation99_spill] sm:$0xff] }
 0x65b   :  { %v9168_v62 = vmax.f32 %v4550_v31, 0.0  ;;  %v4351_v44 = vadd.f32 %v10294_v16, %v4117_v61  ;;  %6656 = vmatpush1.bf16.msra.mxu0 %v6655_v33 }
 0x65c   :  { %v4551_v27 = vadd.f32 %v9030_v15, %v4349_v17  ;;  %6657 = vmatprep.subr.bf16.mxu0 %v10223_v2  ;;  %v6667_v17 = vpack.c.bf16 %v4780_v14, %v4779_v55  ;;  %v4785_v14 = vld [vmem:[%s9967_s7 + $0xd0] sm:$0xff] }
 0x65d   :  { %v4552_v28 = vadd.f32 %v9033_v59, %v4351_v44  ;;  %v4121_v7 = vpop.f32.mrb[50].mxu1  ;;  %4925 = vmatprep.mubr.f32.mxu0 %v9168_v62  ;;  %v4781_v44 = vld [vmem:[%s9967_s7 + $0xb0] sm:$0xff] }
 0x65e   :  { %v4355_v19 = vadd.f32 %v10295_v22, %v4121_v7  ;;  %v4123_v3 = vpop.f32.mrb[51].mxu1  ;;  %4926 = vmatmul.mubr.f32.gmra.mrb[118].mxu0 %v9171_v54  ;;  %v9188_v20 = vmax.f32 %v4551_v27, 0.0 }
 0x65f   :  { %v9185_v37 = vmax.f32 %v4552_v28, 0.0  ;;  %v4357_v56 = vadd.f32 %v10296_v38, %v4123_v3  ;;  %6659 = vmatpush1.bf16.msra.mxu0 %v6658_v21  ;;  %v4782_v21 = vld [vmem:[%s9967_s7 + $0xb8] sm:$0xff] }
 0x660   :  { %v4553_v51 = vadd.f32 %v9030_v15, %v4355_v19  ;;  %6660 = vmatprep.subr.bf16.mxu0 %v10223_v2  ;;  %v10302_v19 = vld [vmem:[#allocation101_spill] sm:$0xff]  ;;  %v6670_v38 = vpack.c.bf16 %v4782_v21, %v4781_v44 }
 0x661   :  { %v4554_v58 = vadd.f32 %v9033_v59, %v4357_v56  ;;  %v4127_v45 = vpop.f32.mrb[52].mxu1  ;;  %4930 = vmatprep.mubr.f32.mxu0 %v9185_v37 }
 0x662   :  { %v4361_v30 = vadd.f32 %v10297_v53, %v4127_v45  ;;  %v4129_v0 = vpop.f32.mrb[53].mxu1  ;;  %4931 = vmatmul.mubr.f32.gmra.mrb[120].mxu0 %v9188_v20  ;;  %v9205_v41 = vmax.f32 %v4553_v51, 0.0  ;;  %v4783_v51 = vld [vmem:[%s9967_s7 + $0xc0] sm:$0xff]  ;;  %v10303_v45 = vld [vmem:[#allocation102_spill] sm:$0xff] }
 0x663   :  { %v9202_v49 = vmax.f32 %v4554_v58, 0.0  ;;  %v4363_v46 = vadd.f32 %v10298_v32, %v4129_v0  ;;  %6662 = vmatpush1.bf16.msra.mxu0 %v6661_v18  ;;  %v10304_v32 = vld [vmem:[#allocation103_spill] sm:$0xff] }
 0x664   :  { %v4555_v4 = vadd.f32 %v9030_v15, %v4361_v30  ;;  %6663 = vmatprep.subr.bf16.mxu0 %v10223_v2 }
 0x665   :  { %v4556_v25 = vadd.f32 %v9033_v59, %v4363_v46  ;;  %v4133_v33 = vpop.f32.mrb[54].mxu1  ;;  %4935 = vmatprep.mubr.f32.mxu0 %v9202_v49 }
 0x666   :  { %v4367_v10 = vadd.f32 %v10299_v43, %v4133_v33  ;;  %v4135_v48 = vpop.f32.mrb[55].mxu1  ;;  %4936 = vmatmul.mubr.f32.gmra.mrb[122].mxu0 %v9205_v41  ;;  %v9222_v61 = vmax.f32 %v4555_v4, 0.0 }
 0x667   :  { %v9219_v31 = vmax.f32 %v4556_v25, 0.0  ;;  %v4369_v9 = vadd.f32 %v10300_v13, %v4135_v48  ;;  %6665 = vmatpush1.bf16.msra.mxu0 %v6664_v52  ;;  %v6673_v52 = vpack.c.bf16 %v4784_v50, %v4783_v51  ;;  %v4786_v25 = vld [vmem:[%s9967_s7 + $0xd8] sm:$0xff]  ;;  %v10308_v51 = vld [vmem:[#allocation107_spill] sm:$0xff] }
 0x668   :  { %v4557_v16 = vadd.f32 %v9030_v15, %v4367_v10  ;;  %6666 = vmatprep.subr.bf16.mxu0 %v10223_v2  ;;  %v10305_v10 = vld [vmem:[#allocation104_spill] sm:$0xff]  ;;  %v6676_v44 = vpack.c.bf16 %v4786_v25, %v4785_v14 }
 0x669   :  { %v4558_v27 = vadd.f32 %v9033_v59, %v4369_v9  ;;  %v4139_v5 = vpop.f32.mrb[56].mxu1  ;;  %4940 = vmatprep.mubr.f32.mxu0 %v9219_v31 }
 0x66a   :  { %v4373_v28 = vadd.f32 %v10301_v6, %v4139_v5  ;;  %v4141_v7 = vpop.f32.mrb[57].mxu1  ;;  %4941 = vmatmul.mubr.f32.gmra.mrb[124].mxu0 %v9222_v61  ;;  %v9239_v56 = vmax.f32 %v4557_v16, 0.0  ;;  %v4787_v5 = vld [vmem:[%s9967_s7 + $0xe0] sm:$0xff]  ;;  %v4788_v6 = vld [vmem:[%s9967_s7 + $0xe8] sm:$0xff] }
 0x66b   :  { %v9236_v22 = vmax.f32 %v4558_v27, 0.0  ;;  %v4375_v3 = vadd.f32 %v10302_v19, %v4141_v7  ;;  %6668 = vmatpush1.bf16.msra.mxu0 %v6667_v17  ;;  %v10306_v17 = vld [vmem:[#allocation105_spill] sm:$0xff]  ;;  %v10307_v19 = vld [vmem:[#allocation106_spill] sm:$0xff] }
 0x66c   :  { %v4559_v18 = vadd.f32 %v9030_v15, %v4373_v28  ;;  %6669 = vmatprep.subr.bf16.mxu0 %v10223_v2 }
 0x66d   :  { %v4560_v11 = vadd.f32 %v9033_v59, %v4375_v3  ;;  %v4145_v58 = vpop.f32.mrb[58].mxu1  ;;  %4945 = vmatprep.mubr.f32.mxu0 %v9236_v22 }
 0x66e   :  { %v4379_v53 = vadd.f32 %v10303_v45, %v4145_v58  ;;  %v4147_v30 = vpop.f32.mrb[59].mxu1  ;;  %4946 = vmatmul.mubr.f32.gmra.mrb[126].mxu0 %v9239_v56  ;;  %v9256_v4 = vmax.f32 %v4559_v18, 0.0 }
 0x66f   :  { %v9253_v0 = vmax.f32 %v4560_v11, 0.0  ;;  %v4381_v46 = vadd.f32 %v10304_v32, %v4147_v30  ;;  %6671 = vmatpush1.bf16.msra.mxu0 %v6670_v38  ;;  %v6679_v11 = vpack.c.bf16 %v4788_v6, %v4787_v5  ;;  %v4790_v30 = vld [vmem:[%s9967_s7 + $0xf8] sm:$0xff] }
 0x670   :  { %v4561_v55 = vadd.f32 %v9030_v15, %v4379_v53  ;;  %6672 = vmatprep.subr.bf16.mxu0 %v10223_v2  ;;  %v4789_v53 = vld [vmem:[%s9967_s7 + $0xf0] sm:$0xff] }
 0x671   :  { %v4562_v33 = vadd.f32 %v9033_v59, %v4381_v46  ;;  %v4151_v43 = vpop.f32.mrb[60].mxu1  ;;  %4950 = vmatprep.mubr.f32.mxu0 %v9253_v0 }
 0x672   :  { %v4385_v48 = vadd.f32 %v10305_v10, %v4151_v43  ;;  %v4153_v13 = vpop.f32.mrb[61].mxu1  ;;  %4951 = vmatmul.mubr.f32.gmra.mrb[128].mxu0 %v9256_v4  ;;  %v9273_v21 = vmax.f32 %v4561_v55, 0.0  ;;  %v6682_v10 = vpack.c.bf16 %v4790_v30, %v4789_v53  ;;  %v10314_v30 = vld [vmem:[#allocation113_spill] sm:$0xff] }
 0x673   :  { %v9270_v9 = vmax.f32 %v4562_v33, 0.0  ;;  %v4387_v16 = vadd.f32 %v10306_v17, %v4153_v13  ;;  %6674 = vmatpush1.bf16.msra.mxu0 %v6673_v52  ;;  %v10309_v52 = vld [vmem:[#allocation108_spill] sm:$0xff]  ;;  %v10310_v33 = vld [vmem:[#allocation109_spill] sm:$0xff] }
 0x674   :  { %v4563_v27 = vadd.f32 %v9030_v15, %v4385_v48  ;;  %6675 = vmatprep.subr.bf16.mxu0 %v10223_v2 }
 0x675   :  { %v4564_v28 = vadd.f32 %v9033_v59, %v4387_v16  ;;  %v4157_v7 = vpop.f32.mrb[62].mxu1  ;;  %4955 = vmatprep.mubr.f32.mxu0 %v9270_v9 }
 0x676   :  { %v4391_v3 = vadd.f32 %v10307_v19, %v4157_v7  ;;  %v4159_v38 = vpop.f32.mrb[63].mxu1  ;;  %4956 = vmatmul.mubr.f32.gmra.mrb[130].mxu0 %v9273_v21  ;;  %v9290_v58 = vmax.f32 %v4563_v27, 0.0 }
 0x677   :  { %v9287_v18 = vmax.f32 %v4564_v28, 0.0  ;;  %v4393_v50 = vadd.f32 %v10308_v51, %v4159_v38  ;;  %6677 = vmatpush1.bf16.msra.mxu0 %v6676_v44  ;;  %v10311_v44 = vld [vmem:[#allocation110_spill] sm:$0xff]  ;;  %v10312_v28 = vld [vmem:[#allocation111_spill] sm:$0xff] }
 0x678   :  { %v4565_v45 = vadd.f32 %v9030_v15, %v4391_v3  ;;  %6678 = vmatprep.subr.bf16.mxu0 %v10223_v2 }
 0x679   :  { %v4566_v32 = vadd.f32 %v9033_v59, %v4393_v50  ;;  %v4163_v46 = vpop.f32.mrb[64].mxu1  ;;  %4960 = vmatprep.mubr.f32.mxu0 %v9287_v18  ;;  %v10313_v50 = vld [vmem:[#allocation112_spill] sm:$0xff] }
 0x67a   :  { %v4397_v55 = vadd.f32 %v10309_v52, %v4163_v46  ;;  %v4165_v14 = vpop.f32.mrb[65].mxu1  ;;  %4961 = vmatmul.mubr.f32.gmra.mrb[132].mxu0 %v9290_v58  ;;  %v9307_v48 = vmax.f32 %v4565_v45, 0.0 }
 0x67b   :  { %v9304_v25 = vmax.f32 %v4566_v32, 0.0  ;;  %v4399_v43 = vadd.f32 %v10310_v33, %v4165_v14  ;;  %6680 = vmatpush1.bf16.msra.mxu0 %v6679_v11  ;;  %v10315_v33 = vld [vmem:[#allocation114_spill] sm:$0xff] }
 0x67c   :  { %v4567_v13 = vadd.f32 %v9030_v15, %v4397_v55  ;;  %6681 = vmatprep.subr.bf16.mxu0 %v10223_v2 }
 0x67d   :  { %v4568_v17 = vadd.f32 %v9033_v59, %v4399_v43  ;;  %v4169_v16 = vpop.f32.mrb[66].mxu1  ;;  %4965 = vmatprep.mubr.f32.mxu0 %v9304_v25 }
 0x67e   :  { %v4403_v27 = vadd.f32 %v10311_v44, %v4169_v16  ;;  %v4171_v5 = vpop.f32.mrb[67].mxu1  ;;  %4966 = vmatmul.mubr.f32.gmra.mrb[134].mxu0 %v9307_v48  ;;  %v9318_v19 = vmax.f32 %v4567_v13, 0.0 }
 0x67f   :  { %v9315_v6 = vmax.f32 %v4568_v17, 0.0  ;;  %v4405_v7 = vadd.f32 %v10312_v28, %v4171_v5  ;;  %6683 = vmatpush1.bf16.msra.mxu0 %v6682_v10  ;;  %v10316_v17 = vld [vmem:[#allocation115_spill] sm:$0xff] }
 0x680   :  { %v4569_v3 = vadd.f32 %v9030_v15, %v4403_v27  ;;  %6684 = vmatprep.subr.bf16.mxu0 %v10223_v2 }
 0x681   :  { %v4570_v38 = vadd.f32 %v9033_v59, %v4405_v7  ;;  %v4175_v51 = vpop.f32.mrb[68].mxu1  ;;  %4970 = vmatprep.mubr.f32.mxu0 %v9315_v6  ;;  %v10317_v7 = vld [vmem:[#allocation116_spill] sm:$0xff] }
 0x682   :  { %v4409_v11 = vadd.f32 %v10313_v50, %v4175_v51  ;;  %v4177_v45 = vpop.f32.mrb[69].mxu1  ;;  %4971 = vmatmul.mubr.f32.gmra.mrb[136].mxu0 %v9318_v19  ;;  %v9329_v46 = vmax.f32 %v4569_v3, 0.0  ;;  %v10318_v50 = vld [vmem:[#allocation117_spill] sm:$0xff] }
 0x683   :  { %v9326_v53 = vmax.f32 %v4570_v38, 0.0  ;;  %v4411_v32 = vadd.f32 %v10314_v30, %v4177_v45 }
 0x684   :  { %v4571_v52 = vadd.f32 %v9030_v15, %v4409_v11 }
 0x685   :  { %v4572_v55 = vadd.f32 %v9033_v59, %v4411_v32  ;;  %v4181_v14 = vpop.f32.mrb[70].mxu1  ;;  %4975 = vmatprep.mubr.f32.mxu0 %v9326_v53 }
 0x686   :  { %v4415_v43 = vadd.f32 %v10315_v33, %v4181_v14  ;;  %v4183_v10 = vpop.f32.mrb[71].mxu1  ;;  %4976 = vmatmul.mubr.f32.gmra.mrb[138].mxu0 %v9329_v46  ;;  %v9339_v44 = vmax.f32 %v4571_v52, 0.0 }
 0x687   :  { %v9336_v13 = vmax.f32 %v4572_v55, 0.0  ;;  %v4417_v16 = vadd.f32 %v10316_v17, %v4183_v10  ;;  %v10319_v55 = vld [vmem:[#allocation118_spill] sm:$0xff]  ;;  %v10320_v10 = vld [vmem:[#allocation119_spill] sm:$0xff] }
 0x688   :  { %v4573_v27 = vadd.f32 %v9030_v15, %v4415_v43 }
 0x689   :  { %v4574_v5 = vadd.f32 %v9033_v59, %v4417_v16  ;;  %v4187_v28 = vpop.f32.mrb[72].mxu1  ;;  %4980 = vmatprep.mubr.f32.mxu0 %v9336_v13 }
 0x68a   :  { %v4421_v3 = vadd.f32 %v10317_v7, %v4187_v28  ;;  %v4189_v38 = vpop.f32.mrb[73].mxu1  ;;  %4981 = vmatmul.mubr.f32.gmra.mrb[140].mxu0 %v9339_v44  ;;  %v9349_v45 = vmax.f32 %v4573_v27, 0.0 }
 0x68b   :  { %v9346_v51 = vmax.f32 %v4574_v5, 0.0  ;;  %v4423_v11 = vadd.f32 %v10318_v50, %v4189_v38 }
 0x68c   :  { %v4575_v30 = vadd.f32 %v9030_v15, %v4421_v3 }
 0x68d   :  { %v4576_v32 = vadd.f32 %v9033_v59, %v4423_v11  ;;  %v4193_v52 = vpop.f32.mrb[74].mxu1  ;;  %4985 = vmatprep.mubr.f32.mxu0 %v9346_v51 }
 0x68e   :  { %v4427_v14 = vadd.f32 %v10319_v55, %v4193_v52  ;;  %v4195_v33 = vpop.f32.mrb[75].mxu1  ;;  %4986 = vmatmul.mubr.f32.gmra.mrb[142].mxu0 %v9349_v45  ;;  %v9359_v16 = vmax.f32 %v4575_v30, 0.0 }
 0x68f   :  { %v9356_v43 = vmax.f32 %v4576_v32, 0.0  ;;  %v4429_v17 = vadd.f32 %v10320_v10, %v4195_v33 }
 0x690   :  { %v4577_v27 = vadd.f32 %v9030_v15, %v4427_v14 }
 0x691   :  { %v4578_v5 = vadd.f32 %v9033_v59, %v4429_v17  ;;  %4990 = vmatprep.mubr.f32.mxu0 %v9356_v43 }
 0x692   :  { %4991 = vmatmul.mubr.f32.gmra.mrb[144].mxu0 %v9359_v16  ;;  %v9367_v7 = vmax.f32 %v4577_v27, 0.0 }
 0x693   :  { %v9365_v28 = vmax.f32 %v4578_v5, 0.0 }
 0x695   :  { %4995 = vmatprep.mubr.f32.mxu0 %v9365_v28 }
 0x696   :  { %4996 = vmatmul.mubr.f32.gmra.mrb[146].mxu0 %v9367_v7 }
 0x6a9   :  { %v4432_v3 = vpop.f32.mrb[76].mxu1 }
 0x6aa   :  { %v4579_v38 = vadd.f32 %v9030_v15, %v4432_v3  ;;  %v4434_v50 = vpop.f32.mrb[77].mxu1 }
 0x6ab   :  { %v4580_v11 = vadd.f32 %v9033_v59, %v4434_v50 }
 0x6ac   :  { %v9375_v52 = vmax.f32 %v4579_v38, 0.0 }
 0x6ad   :  { %v9373_v30 = vmax.f32 %v4580_v11, 0.0  ;;  %v4438_v32 = vpop.f32.mrb[78].mxu1 }
 0x6ae   :  { %v4581_v55 = vadd.f32 %v9030_v15, %v4438_v32  ;;  %v4440_v14 = vpop.f32.mrb[79].mxu1 }
 0x6af   :  { %v4582_v33 = vadd.f32 %v9033_v59, %v4440_v14  ;;  %5000 = vmatprep.mubr.f32.mxu0 %v9373_v30 }
 0x6b0   :  { %5001 = vmatmul.mubr.f32.gmra.mrb[148].mxu0 %v9375_v52  ;;  %v9383_v27 = vmax.f32 %v4581_v55, 0.0 }
 0x6b1   :  { %v9381_v10 = vmax.f32 %v4582_v33, 0.0  ;;  %v4444_v17 = vpop.f32.mrb[80].mxu1 }
 0x6b2   :  { %v4583_v5 = vadd.f32 %v9030_v15, %v4444_v17  ;;  %v4446_v3 = vpop.f32.mrb[81].mxu1 }
 0x6b3   :  { %v4584_v38 = vadd.f32 %v9033_v59, %v4446_v3  ;;  %5005 = vmatprep.mubr.f32.mxu0 %v9381_v10 }
 0x6b4   :  { %5006 = vmatmul.mubr.f32.gmra.mrb[150].mxu0 %v9383_v27  ;;  %v9391_v32 = vmax.f32 %v4583_v5, 0.0 }
 0x6b5   :  { %v9389_v50 = vmax.f32 %v4584_v38, 0.0  ;;  %v4450_v11 = vpop.f32.mrb[82].mxu1 }
 0x6b6   :  { %10322 = vst [vmem:[#allocation22_spill] sm:$0xff] %v9391_v32  ;;  %v4585_v14 = vadd.f32 %v9030_v15, %v4450_v11  ;;  %v4452_v33 = vpop.f32.mrb[83].mxu1 }
 0x6b7   :  { %10321 = vst [vmem:[#allocation39_spill] sm:$0xff] %v9389_v50  ;;  %v4586_v55 = vadd.f32 %v9033_v59, %v4452_v33  ;;  %5010 = vmatprep.mubr.f32.mxu0 %v9389_v50 }
 0x6b8   :  { %5011 = vmatmul.mubr.f32.gmra.mrb[152].mxu0 %v9391_v32  ;;  %v9399_v42 = vmax.f32 %v4585_v14, 0.0 }
 0x6b9   :  { %v9397_v17 = vmax.f32 %v4586_v55, 0.0  ;;  %v4456_v3 = vpop.f32.mrb[84].mxu1 }
 0x6ba   :  { %v4587_v38 = vadd.f32 %v9030_v15, %v4456_v3  ;;  %v4458_v23 = vpop.f32.mrb[85].mxu1 }
 0x6bb   :  { %v4588_v5 = vadd.f32 %v9033_v59, %v4458_v23  ;;  %5015 = vmatprep.mubr.f32.mxu0 %v9397_v17 }
 0x6bc   :  { %5016 = vmatmul.mubr.f32.gmra.mrb[154].mxu0 %v9399_v42  ;;  %v9407_v50 = vmax.f32 %v4587_v38, 0.0  ;;  %v5840_v38 = vld [vmem:[%s9967_s7 + $0x200] sm:$0xff] }
 0x6bd   :  { %v9405_v11 = vmax.f32 %v4588_v5, 0.0  ;;  %v4462_v33 = vpop.f32.mrb[86].mxu1  ;;  %v5843_v5 = vld [vmem:[%s9967_s7 + $0x218] sm:$0xff] }
 0x6be   :  { %v9410_v55 = vadd.f32 %v9030_v15, %v4462_v33  ;;  %v4464_v32 = vpop.f32.mrb[87].mxu1  ;;  %v5841_v15 = vld [vmem:[%s9967_s7 + $0x208] sm:$0xff]  ;;  %v10323_v33 = vmax.f32 %v9047_v29, 0.0  ;;  %v5846_v29 = vld [vmem:[%s9967_s7 + $0x230] sm:$0xff] }
 0x6bf   :  { %v9413_v14 = vadd.f32 %v9033_v59, %v4464_v32  ;;  %5020 = vmatprep.mubr.f32.mxu0 %v9405_v11  ;;  %v6685_v59 = vpack.c.bf16 %v5841_v15, %v5840_v38  ;;  %v5842_v32 = vld [vmem:[%s9967_s7 + $0x210] sm:$0xff]  ;;  %v5844_v38 = vld [vmem:[%s9967_s7 + $0x220] sm:$0xff]  ;;  %v5845_v15 = vld [vmem:[%s9967_s7 + $0x228] sm:$0xff] }
 0x6c0   :  { %5021 = vmatmul.mubr.f32.gmra.mrb[156].mxu0 %v9407_v50  ;;  %v10078_v3 = vmax.f32 %v9410_v55, 0.0 }
 0x6c1   :  { %v10077_v23 = vmax.f32 %v9413_v14, 0.0 }
 0x6c3   :  { %5025 = vmatprep.mubr.f32.mxu0 %v10077_v23  ;;  %v6688_v23 = vpack.c.bf16 %v5843_v5, %v5842_v32  ;;  %v5847_v32 = vld [vmem:[%s9967_s7 + $0x238] sm:$0xff] }
 0x6c4   :  { %5026 = vmatmul.mubr.f32.gmra.mrb[158].mxu0 %v10078_v3  ;;  %v10324_v3 = vmax.f32 %v9038_v8, 0.0  ;;  %v6694_v8 = vpack.c.bf16 %v5847_v32, %v5846_v29  ;;  %v5853_v29 = vld [vmem:[%s9967_s7 + $0x268] sm:$0xff] }
 0x6c5   :  { %5095 = vmatprep.mubr.f32.mxu0 %v10138_v12 }
 0x6c8   :  { %5096 = vmatmul.mubr.f32.vlgmr.msra.gmra.mrb[160].mxu0 %v10138_v12 }
 0x6c9   :  { %6686 = vmatpush1.bf16.msra.mxu0 %v6685_v59  ;;  %5100 = vmatprep.mubr.f32.mxu0 %v10323_v33  ;;  %v6691_v59 = vpack.c.bf16 %v5845_v15, %v5844_v38  ;;  %v5850_v33 = vld [vmem:[%s9967_s7 + $0x250] sm:$0xff]  ;;  %v5851_v38 = vld [vmem:[%s9967_s7 + $0x258] sm:$0xff] }
 0x6ca   :  { %6687 = vmatprep.subr.bf16.mxu0 %v10223_v2  ;;  %v6700_v15 = vpack.c.bf16 %v5851_v38, %v5850_v33  ;;  %v5857_v33 = vld [vmem:[%s9967_s7 + $0x288] sm:$0xff] }
 0x6cc   :  { %5101 = vmatmul.mubr.f32.gmra.mrb[162].mxu0 %v10324_v3  ;;  %v5849_v3 = vld [vmem:[%s9967_s7 + $0x248] sm:$0xff] }
 0x6cd   :  { %5105 = vmatprep.mubr.f32.mxu0 %v9066_v40  ;;  %6689 = vmatpush1.bf16.msra.mxu0 %v6688_v23  ;;  %v5848_v23 = vld [vmem:[%s9967_s7 + $0x240] sm:$0xff] }
 0x6ce   :  { %6690 = vmatprep.subr.bf16.mxu0 %v10223_v2  ;;  %v6697_v5 = vpack.c.bf16 %v5849_v3, %v5848_v23  ;;  %v5855_v23 = vld [vmem:[%s9967_s7 + $0x278] sm:$0xff] }
 0x6d0   :  { %5106 = vmatmul.mubr.f32.gmra.mrb[164].mxu0 %v9069_v1 }
 0x6d1   :  { %5110 = vmatprep.mubr.f32.mxu0 %v9083_v39  ;;  %6692 = vmatpush1.bf16.msra.mxu0 %v6691_v59  ;;  %v5852_v59 = vld [vmem:[%s9967_s7 + $0x260] sm:$0xff] }
 0x6d2   :  { %6693 = vmatprep.subr.bf16.mxu0 %v10223_v2  ;;  %v6703_v32 = vpack.c.bf16 %v5853_v29, %v5852_v59  ;;  %v5859_v59 = vld [vmem:[%s9967_s7 + $0x298] sm:$0xff] }
 0x6d4   :  { %5111 = vmatmul.mubr.f32.gmra.mrb[166].mxu0 %v9086_v60 }
 0x6d5   :  { %5115 = vmatprep.mubr.f32.mxu0 %v9100_v26  ;;  %6695 = vmatpush1.bf16.msra.mxu0 %v6694_v8  ;;  %v5854_v8 = vld [vmem:[%s9967_s7 + $0x270] sm:$0xff] }
 0x6d6   :  { %6696 = vmatprep.subr.bf16.mxu0 %v10223_v2  ;;  %v6706_v3 = vpack.c.bf16 %v5855_v23, %v5854_v8  ;;  %v5861_v8 = vld [vmem:[%s9967_s7 + $0x2a8] sm:$0xff] }
 0x6d8   :  { %5116 = vmatmul.mubr.f32.gmra.mrb[168].mxu0 %v9103_v36 }
 0x6d9   :  { %5120 = vmatprep.mubr.f32.mxu0 %v9117_v34  ;;  %6698 = vmatpush1.bf16.msra.mxu0 %v6697_v5  ;;  %v5856_v5 = vld [vmem:[%s9967_s7 + $0x280] sm:$0xff] }
 0x6da   :  { %6699 = vmatprep.subr.bf16.mxu0 %v10223_v2  ;;  %v6709_v38 = vpack.c.bf16 %v5857_v33, %v5856_v5  ;;  %v5863_v5 = vld [vmem:[%s9967_s7 + $0x2b8] sm:$0xff] }
 0x6dc   :  { %5121 = vmatmul.mubr.f32.gmra.mrb[170].mxu0 %v9120_v63 }
 0x6dd   :  { %5125 = vmatprep.mubr.f32.mxu0 %v9134_v35  ;;  %6701 = vmatpush1.bf16.msra.mxu0 %v6700_v15  ;;  %v5858_v15 = vld [vmem:[%s9967_s7 + $0x290] sm:$0xff] }
 0x6de   :  { %6702 = vmatprep.subr.bf16.mxu0 %v10223_v2  ;;  %v6712_v29 = vpack.c.bf16 %v5859_v59, %v5858_v15  ;;  %v5865_v15 = vld [vmem:[%s9967_s7 + $0x2c8] sm:$0xff] }
 0x6e0   :  { %5126 = vmatmul.mubr.f32.gmra.mrb[172].mxu0 %v9137_v57 }
 0x6e1   :  { %5130 = vmatprep.mubr.f32.mxu0 %v9151_v47  ;;  %6704 = vmatpush1.bf16.msra.mxu0 %v6703_v32  ;;  %v5860_v32 = vld [vmem:[%s9967_s7 + $0x2a0] sm:$0xff] }
 0x6e2   :  { %6705 = vmatprep.subr.bf16.mxu0 %v10223_v2  ;;  %v6715_v23 = vpack.c.bf16 %v5861_v8, %v5860_v32  ;;  %v5867_v32 = vld [vmem:[%s9967_s7 + $0x2d8] sm:$0xff] }
 0x6e4   :  { %5131 = vmatmul.mubr.f32.gmra.mrb[174].mxu0 %v9154_v24 }
 0x6e5   :  { %5135 = vmatprep.mubr.f32.mxu0 %v9168_v62  ;;  %6707 = vmatpush1.bf16.msra.mxu0 %v6706_v3  ;;  %v5862_v3 = vld [vmem:[%s9967_s7 + $0x2b0] sm:$0xff] }
 0x6e6   :  { %6708 = vmatprep.subr.bf16.mxu0 %v10223_v2  ;;  %v6718_v33 = vpack.c.bf16 %v5863_v5, %v5862_v3  ;;  %v5869_v3 = vld [vmem:[%s9967_s7 + $0x2e8] sm:$0xff] }
 0x6e8   :  { %5136 = vmatmul.mubr.f32.gmra.mrb[176].mxu0 %v9171_v54 }
 0x6e9   :  { %5140 = vmatprep.mubr.f32.mxu0 %v9185_v37  ;;  %6710 = vmatpush1.bf16.msra.mxu0 %v6709_v38  ;;  %v5864_v38 = vld [vmem:[%s9967_s7 + $0x2c0] sm:$0xff] }
 0x6ea   :  { %6711 = vmatprep.subr.bf16.mxu0 %v10223_v2  ;;  %v6721_v59 = vpack.c.bf16 %v5865_v15, %v5864_v38  ;;  %v5871_v38 = vld [vmem:[%s9967_s7 + $0x2f8] sm:$0xff] }
 0x6ec   :  { %5141 = vmatmul.mubr.f32.gmra.mrb[178].mxu0 %v9188_v20 }
 0x6ed   :  { %5145 = vmatprep.mubr.f32.mxu0 %v9202_v49  ;;  %6713 = vmatpush1.bf16.msra.mxu0 %v6712_v29  ;;  %v5866_v29 = vld [vmem:[%s9967_s7 + $0x2d0] sm:$0xff] }
 0x6ee   :  { %6714 = vmatprep.subr.bf16.mxu0 %v10223_v2  ;;  %v6724_v8 = vpack.c.bf16 %v5867_v32, %v5866_v29 }
 0x6f0   :  { %5146 = vmatmul.mubr.f32.gmra.mrb[180].mxu0 %v9205_v41 }
 0x6f1   :  { %5150 = vmatprep.mubr.f32.mxu0 %v9219_v31  ;;  %6716 = vmatpush1.bf16.msra.mxu0 %v6715_v23  ;;  %v5868_v23 = vld [vmem:[%s9967_s7 + $0x2e0] sm:$0xff] }
 0x6f2   :  { %6717 = vmatprep.subr.bf16.mxu0 %v10223_v2  ;;  %v6727_v5 = vpack.c.bf16 %v5869_v3, %v5868_v23 }
 0x6f4   :  { %5151 = vmatmul.mubr.f32.gmra.mrb[182].mxu0 %v9222_v61 }
 0x6f5   :  { %5155 = vmatprep.mubr.f32.mxu0 %v9236_v22  ;;  %6719 = vmatpush1.bf16.msra.mxu0 %v6718_v33  ;;  %v5870_v33 = vld [vmem:[%s9967_s7 + $0x2f0] sm:$0xff] }
 0x6f6   :  { %6720 = vmatprep.subr.bf16.mxu0 %v10223_v2  ;;  %v6730_v15 = vpack.c.bf16 %v5871_v38, %v5870_v33 }
 0x6f8   :  { %5156 = vmatmul.mubr.f32.gmra.mrb[184].mxu0 %v9239_v56 }
 0x6f9   :  { %5160 = vmatprep.mubr.f32.mxu0 %v9253_v0  ;;  %6722 = vmatpush1.bf16.msra.mxu0 %v6721_v59 }
 0x6fa   :  { %6723 = vmatprep.subr.bf16.mxu0 %v10223_v2 }
 0x6fc   :  { %5161 = vmatmul.mubr.f32.gmra.mrb[186].mxu0 %v9256_v4 }
 0x6fd   :  { %5165 = vmatprep.mubr.f32.mxu0 %v9270_v9  ;;  %6725 = vmatpush1.bf16.msra.mxu0 %v6724_v8 }
 0x6fe   :  { %6726 = vmatprep.subr.bf16.mxu0 %v10223_v2 }
 0x700   :  { %5166 = vmatmul.mubr.f32.gmra.mrb[188].mxu0 %v9273_v21 }
 0x701   :  { %5170 = vmatprep.mubr.f32.mxu0 %v9287_v18  ;;  %6728 = vmatpush1.bf16.msra.mxu0 %v6727_v5 }
 0x702   :  { %6729 = vmatprep.subr.bf16.mxu0 %v10223_v2 }
 0x704   :  { %5171 = vmatmul.mubr.f32.gmra.mrb[190].mxu0 %v9290_v58 }
 0x705   :  { %5175 = vmatprep.mubr.f32.mxu0 %v9304_v25  ;;  %6731 = vmatpush1.bf16.msra.mxu0 %v6730_v15 }
 0x708   :  { %5176 = vmatmul.mubr.f32.gmra.mrb[192].mxu0 %v9307_v48 }
 0x709   :  { %5180 = vmatprep.mubr.f32.mxu0 %v9315_v6 }
 0x70c   :  { %5181 = vmatmul.mubr.f32.gmra.mrb[194].mxu0 %v9318_v19 }
 0x70d   :  { %5185 = vmatprep.mubr.f32.mxu0 %v9326_v53 }
 0x710   :  { %5186 = vmatmul.mubr.f32.gmra.mrb[196].mxu0 %v9329_v46 }
 0x711   :  { %5190 = vmatprep.mubr.f32.mxu0 %v9336_v13 }
 0x714   :  { %5191 = vmatmul.mubr.f32.gmra.mrb[198].mxu0 %v9339_v44 }
 0x715   :  { %v9576_v2 = vpop.f32.mrb[104].mxu0  ;;  %5195 = vmatprep.mubr.f32.mxu0 %v9346_v51 }
 0x716   :  { %v4894_v59 = vpop.f32.mrb[105].mxu0 }
 0x717   :  { %v10328_v59 = vld [vmem:[#allocation39_spill] sm:$0xff] }
 0x718   :  { %5196 = vmatmul.mubr.f32.gmra.mrb[200].mxu0 %v9349_v45 }
 0x719   :  { %v9580_v29 = vpop.f32.mrb[106].mxu0  ;;  %5200 = vmatprep.mubr.f32.mxu0 %v9356_v43 }
 0x71a   :  { %v4899_v32 = vpop.f32.mrb[107].mxu0 }
 0x71c   :  { %5201 = vmatmul.mubr.f32.gmra.mrb[202].mxu0 %v9359_v16 }
 0x71d   :  { %v9584_v8 = vpop.f32.mrb[108].mxu0  ;;  %5205 = vmatprep.mubr.f32.mxu0 %v9365_v28 }
 0x71e   :  { %v4904_v23 = vpop.f32.mrb[109].mxu0 }
 0x71f   :  { %v10329_v23 = vld [vmem:[#allocation22_spill] sm:$0xff] }
 0x720   :  { %5206 = vmatmul.mubr.f32.gmra.mrb[204].mxu0 %v9367_v7 }
 0x721   :  { %v9588_v3 = vpop.f32.mrb[110].mxu0  ;;  %5210 = vmatprep.mubr.f32.mxu0 %v9373_v30 }
 0x722   :  { %10325 = vst [vmem:[#allocation23_spill] sm:$0xff] %v9588_v3  ;;  %v4909_v5 = vpop.f32.mrb[111].mxu0 }
 0x724   :  { %5211 = vmatmul.mubr.f32.gmra.mrb[206].mxu0 %v9375_v52 }
 0x725   :  { %v9592_v33 = vpop.f32.mrb[112].mxu0  ;;  %5215 = vmatprep.mubr.f32.mxu0 %v9381_v10 }
 0x726   :  { %10326 = vst [vmem:[#allocation24_spill] sm:$0xff] %v9592_v33  ;;  %v4914_v38 = vpop.f32.mrb[113].mxu0 }
 0x728   :  { %5216 = vmatmul.mubr.f32.gmra.mrb[208].mxu0 %v9383_v27 }
 0x729   :  { %v9596_v15 = vpop.f32.mrb[114].mxu0  ;;  %5220 = vmatprep.mubr.f32.mxu0 %v10328_v59 }
 0x72a   :  { %10327 = vst [vmem:[#allocation25_spill] sm:$0xff] %v9596_v15  ;;  %v4919_v32 = vpop.f32.mrb[115].mxu0 }
 0x72c   :  { %5221 = vmatmul.mubr.f32.gmra.mrb[210].mxu0 %v10329_v23 }
 0x72d   :  { %v9600_v3 = vpop.f32.mrb[116].mxu0  ;;  %5225 = vmatprep.mubr.f32.mxu0 %v9397_v17 }
 0x72e   :  { %10330 = vst [vmem:[#allocation26_spill] sm:$0xff] %v9600_v3  ;;  %v4924_v5 = vpop.f32.mrb[117].mxu0 }
 0x730   :  { %5226 = vmatmul.mubr.f32.gmra.mrb[212].mxu0 %v9399_v42 }
 0x731   :  { %v9604_v33 = vpop.f32.mrb[118].mxu0  ;;  %5230 = vmatprep.mubr.f32.mxu0 %v9405_v11 }
 0x732   :  { %10331 = vst [vmem:[#allocation27_spill] sm:$0xff] %v9604_v33  ;;  %v4929_v38 = vpop.f32.mrb[119].mxu0 }
 0x734   :  { %5231 = vmatmul.mubr.f32.gmra.mrb[214].mxu0 %v9407_v50 }
 0x735   :  { %v9608_v15 = vpop.f32.mrb[120].mxu0  ;;  %5389 = vmatprep.mubr.f32.mxu0 %v9066_v40 }
 0x736   :  { %10332 = vst [vmem:[#allocation28_spill] sm:$0xff] %v9608_v15  ;;  %v4934_v32 = vpop.f32.mrb[121].mxu0 }
 0x737   :  { %v10338_v32 = vld [vmem:[#allocation26_spill] sm:$0xff] }
 0x738   :  { %5390 = vmatmul.mubr.f32.vlgmr.msra.gmra.mrb[216].mxu0 %v9069_v1 }
 0x739   :  { %v9612_v3 = vpop.f32.mrb[122].mxu0  ;;  %5394 = vmatprep.mubr.f32.mxu0 %v9083_v39 }
 0x73a   :  { %v4939_v5 = vpop.f32.mrb[123].mxu0 }
 0x73c   :  { %5395 = vmatmul.mubr.f32.gmra.mrb[218].mxu0 %v9086_v60 }
 0x73d   :  { %v9616_v33 = vpop.f32.mrb[124].mxu0  ;;  %5399 = vmatprep.mubr.f32.mxu0 %v9100_v26 }
 0x73e   :  { %v4944_v38 = vpop.f32.mrb[125].mxu0 }
 0x740   :  { %5400 = vmatmul.mubr.f32.gmra.mrb[220].mxu0 %v9103_v36 }
 0x741   :  { %v9620_v15 = vpop.f32.mrb[126].mxu0  ;;  %5404 = vmatprep.mubr.f32.mxu0 %v9117_v34 }
 0x742   :  { %v4949_v40 = vpop.f32.mrb[127].mxu0 }
 0x743   :  { %v10339_v40 = vld [vmem:[#allocation27_spill] sm:$0xff] }
 0x744   :  { %5405 = vmatmul.mubr.f32.gmra.mrb[222].mxu0 %v9120_v63 }
 0x745   :  { %v9624_v1 = vpop.f32.mrb[128].mxu0  ;;  %5409 = vmatprep.mubr.f32.mxu0 %v9134_v35 }
 0x746   :  { %v4954_v39 = vpop.f32.mrb[129].mxu0 }
 0x748   :  { %5410 = vmatmul.mubr.f32.gmra.mrb[224].mxu0 %v9137_v57 }
 0x749   :  { %v9628_v60 = vpop.f32.mrb[130].mxu0  ;;  %5414 = vmatprep.mubr.f32.mxu0 %v9151_v47 }
 0x74a   :  { %v4959_v26 = vpop.f32.mrb[131].mxu0 }
 0x74c   :  { %5415 = vmatmul.mubr.f32.gmra.mrb[226].mxu0 %v9154_v24 }
 0x74d   :  { %v9632_v36 = vpop.f32.mrb[132].mxu0  ;;  %5419 = vmatprep.mubr.f32.mxu0 %v9168_v62 }
 0x74e   :  { %v4964_v34 = vpop.f32.mrb[133].mxu0 }
 0x750   :  { %5420 = vmatmul.mubr.f32.gmra.mrb[228].mxu0 %v9171_v54 }
 0x751   :  { %v9636_v63 = vpop.f32.mrb[134].mxu0  ;;  %5424 = vmatprep.mubr.f32.mxu0 %v9185_v37 }
 0x752   :  { %v4969_v35 = vpop.f32.mrb[135].mxu0 }
 0x753   :  { %v10340_v35 = vld [vmem:[#allocation28_spill] sm:$0xff] }
 0x754   :  { %5425 = vmatmul.mubr.f32.gmra.mrb[230].mxu0 %v9188_v20 }
 0x755   :  { %v9640_v57 = vpop.f32.mrb[136].mxu0  ;;  %5429 = vmatprep.mubr.f32.mxu0 %v9202_v49 }
 0x756   :  { %v4974_v47 = vpop.f32.mrb[137].mxu0 }
 0x758   :  { %5430 = vmatmul.mubr.f32.gmra.mrb[232].mxu0 %v9205_v41 }
 0x759   :  { %v9644_v24 = vpop.f32.mrb[138].mxu0  ;;  %5434 = vmatprep.mubr.f32.mxu0 %v9219_v31 }
 0x75a   :  { %v4979_v62 = vpop.f32.mrb[139].mxu0 }
 0x75c   :  { %5435 = vmatmul.mubr.f32.gmra.mrb[234].mxu0 %v9222_v61 }
 0x75d   :  { %v9648_v54 = vpop.f32.mrb[140].mxu0  ;;  %5439 = vmatprep.mubr.f32.mxu0 %v9236_v22 }
 0x75e   :  { %v4984_v37 = vpop.f32.mrb[141].mxu0 }
 0x760   :  { %5440 = vmatmul.mubr.f32.gmra.mrb[236].mxu0 %v9239_v56 }
 0x761   :  { %v9652_v20 = vpop.f32.mrb[142].mxu0  ;;  %5444 = vmatprep.mubr.f32.mxu0 %v9253_v0 }
 0x762   :  { %v4989_v49 = vpop.f32.mrb[143].mxu0 }
 0x764   :  { %5445 = vmatmul.mubr.f32.gmra.mrb[238].mxu0 %v9256_v4 }
 0x765   :  { %v9656_v41 = vpop.f32.mrb[144].mxu0  ;;  %5449 = vmatprep.mubr.f32.mxu0 %v9270_v9 }
 0x766   :  { %v4994_v31 = vpop.f32.mrb[145].mxu0 }
 0x768   :  { %5450 = vmatmul.mubr.f32.gmra.mrb[240].mxu0 %v9273_v21 }
 0x769   :  { %v9660_v61 = vpop.f32.mrb[146].mxu0  ;;  %5454 = vmatprep.mubr.f32.mxu0 %v9287_v18 }
 0x76a   :  { %v4999_v22 = vpop.f32.mrb[147].mxu0 }
 0x76c   :  { %5455 = vmatmul.mubr.f32.gmra.mrb[242].mxu0 %v9290_v58 }
 0x76d   :  { %5459 = vmatprep.mubr.f32.mxu0 %v9304_v25 }
 0x770   :  { %5460 = vmatmul.mubr.f32.gmra.mrb[244].mxu0 %v9307_v48 }
 0x771   :  { %5464 = vmatprep.mubr.f32.mxu0 %v9315_v6 }
 0x774   :  { %5465 = vmatmul.mubr.f32.gmra.mrb[246].mxu0 %v9318_v19 }
 0x775   :  { %5469 = vmatprep.mubr.f32.mxu0 %v9326_v53 }
 0x778   :  { %5470 = vmatmul.mubr.f32.gmra.mrb[248].mxu0 %v9329_v46 }
 0x779   :  { %5474 = vmatprep.mubr.f32.mxu0 %v9336_v13 }
 0x77c   :  { %5475 = vmatmul.mubr.f32.gmra.mrb[250].mxu0 %v9339_v44 }
 0x77d   :  { %5479 = vmatprep.mubr.f32.mxu0 %v9346_v51  ;;  %v10333_v51 = vmax.f32 %v9413_v14, 0.0 }
 0x780   :  { %5480 = vmatmul.mubr.f32.gmra.mrb[252].mxu0 %v9349_v45 }
 0x781   :  { %5484 = vmatprep.mubr.f32.mxu0 %v9356_v43 }
 0x783   :  { %v9675_v56 = vpop.f32.mrb[148].mxu0 }
 0x784   :  { %v5004_v0 = vpop.f32.mrb[149].mxu0  ;;  %5485 = vmatmul.mubr.f32.gmra.mrb[254].mxu0 %v9359_v16 }
 0x785   :  { %5489 = vmatprep.mubr.f32.mxu0 %v9365_v28  ;;  %v10334_v28 = vmax.f32 %v9410_v55, 0.0 }
 0x787   :  { %v9679_v4 = vpop.f32.mrb[150].mxu0 }
 0x788   :  { %v5009_v9 = vpop.f32.mrb[151].mxu0  ;;  %5490 = vmatmul.mubr.f32.gmra.mrb[0].mxu0 %v9367_v7 }
 0x789   :  { %5494 = vmatprep.mubr.f32.mxu0 %v9373_v30 }
 0x78b   :  { %v9683_v21 = vpop.f32.mrb[152].mxu0 }
 0x78c   :  { %v5014_v18 = vpop.f32.mrb[153].mxu0  ;;  %5495 = vmatmul.mubr.f32.gmra.mrb[2].mxu0 %v9375_v52 }
 0x78d   :  { %5499 = vmatprep.mubr.f32.mxu0 %v9381_v10  ;;  %v10335_v10 = vld [vmem:[#allocation23_spill] sm:$0xff] }
 0x78f   :  { %v9687_v58 = vpop.f32.mrb[154].mxu0 }
 0x790   :  { %v5019_v25 = vpop.f32.mrb[155].mxu0  ;;  %5500 = vmatmul.mubr.f32.gmra.mrb[4].mxu0 %v9383_v27 }
 0x791   :  { %5504 = vmatprep.mubr.f32.mxu0 %v10328_v59 }
 0x793   :  { %v9691_v48 = vpop.f32.mrb[156].mxu0 }
 0x794   :  { %v5024_v6 = vpop.f32.mrb[157].mxu0  ;;  %5505 = vmatmul.mubr.f32.gmra.mrb[6].mxu0 %v10329_v23 }
 0x795   :  { %5509 = vmatprep.mubr.f32.mxu0 %v9397_v17 }
 0x797   :  { %v9695_v19 = vpop.f32.mrb[158].mxu0 }
 0x798   :  { %v5029_v53 = vpop.f32.mrb[159].mxu0  ;;  %5510 = vmatmul.mubr.f32.gmra.mrb[8].mxu0 %v9399_v42 }
 0x799   :  { %5514 = vmatprep.mubr.f32.mxu0 %v9405_v11  ;;  %v10336_v11 = vld [vmem:[#allocation24_spill] sm:$0xff] }
 0x79b   :  { %v5097_v46 = vpop.f32.mrb[160].mxu0 }
 0x79c   :  { %v9700_v13 = vadd.f32 %v5097_v46, %v9576_v2  ;;  %v5099_v44 = vpop.f32.mrb[161].mxu0  ;;  %5515 = vmatmul.mubr.f32.gmra.mrb[10].mxu0 %v9407_v50 }
 0x79d   :  { %5519 = vmatprep.mubr.f32.mxu0 %v10333_v51 }
 0x79f   :  { %v5102_v45 = vpop.f32.mrb[162].mxu0 }
 0x7a0   :  { %v9706_v43 = vadd.f32 %v5102_v45, %v9580_v29  ;;  %v5104_v16 = vpop.f32.mrb[163].mxu0  ;;  %5520 = vmatmul.mubr.f32.gmra.mrb[12].mxu0 %v10334_v28  ;;  %v10337_v29 = vld [vmem:[#allocation25_spill] sm:$0xff] }
 0x7a1   :  { %5524 = vmatprep.mubr.f32.mxu0 %v10138_v12 }
 0x7a3   :  { %v5107_v42 = vpop.f32.mrb[164].mxu0 }
 0x7a4   :  { %v9712_v7 = vadd.f32 %v5107_v42, %v9584_v8  ;;  %v5109_v30 = vpop.f32.mrb[165].mxu0  ;;  %5525 = vmatmul.mubr.f32.gmra.mrb[14].mxu0 %v10138_v12 }
 0x7a7   :  { %v5112_v52 = vpop.f32.mrb[166].mxu0 }
 0x7a8   :  { %v9716_v27 = vadd.f32 %v5112_v52, %v10335_v10  ;;  %v5114_v50 = vpop.f32.mrb[167].mxu0 }
 0x7ab   :  { %v5117_v17 = vpop.f32.mrb[168].mxu0 }
 0x7ac   :  { %v9719_v14 = vadd.f32 %v5117_v17, %v10336_v11  ;;  %v5119_v55 = vpop.f32.mrb[169].mxu0 }
 0x7af   :  { %v5122_v2 = vpop.f32.mrb[170].mxu0 }
 0x7b0   :  { %v9722_v59 = vadd.f32 %v5122_v2, %v10337_v29  ;;  %v5124_v23 = vpop.f32.mrb[171].mxu0 }
 0x7b3   :  { %v5127_v8 = vpop.f32.mrb[172].mxu0 }
 0x7b4   :  { %v9725_v5 = vadd.f32 %v5127_v8, %v10338_v32  ;;  %v5129_v12 = vpop.f32.mrb[173].mxu0 }
 0x7b7   :  { %v5132_v38 = vpop.f32.mrb[174].mxu0 }
 0x7b8   :  { %v9728_v39 = vadd.f32 %v5132_v38, %v10339_v40  ;;  %v5134_v26 = vpop.f32.mrb[175].mxu0 }
 0x7bb   :  { %v5137_v34 = vpop.f32.mrb[176].mxu0 }
 0x7bc   :  { %v9731_v47 = vadd.f32 %v5137_v34, %v10340_v35  ;;  %v5139_v62 = vpop.f32.mrb[177].mxu0 }
 0x7bf   :  { %v5142_v37 = vpop.f32.mrb[178].mxu0 }
 0x7c0   :  { %v9734_v49 = vadd.f32 %v5142_v37, %v9612_v3  ;;  %v5144_v31 = vpop.f32.mrb[179].mxu0 }
 0x7c3   :  { %v5147_v22 = vpop.f32.mrb[180].mxu0 }
 0x7c4   :  { %v9737_v0 = vadd.f32 %v5147_v22, %v9616_v33  ;;  %v5149_v9 = vpop.f32.mrb[181].mxu0 }
 0x7c7   :  { %v5152_v18 = vpop.f32.mrb[182].mxu0 }
 0x7c8   :  { %v9740_v25 = vadd.f32 %v5152_v18, %v9620_v15  ;;  %v5154_v6 = vpop.f32.mrb[183].mxu0 }
 0x7cb   :  { %v5157_v53 = vpop.f32.mrb[184].mxu0 }
 0x7cc   :  { %v9743_v46 = vadd.f32 %v5157_v53, %v9624_v1  ;;  %v5159_v44 = vpop.f32.mrb[185].mxu0 }
 0x7cd   :  { %v9790_v44 = vld [vmem:[#allocation15] ss:$0 sm:$0xff] }
 0x7cf   :  { %v5162_v51 = vpop.f32.mrb[186].mxu0 }
 0x7d0   :  { %v9746_v3 = vadd.f32 %v5162_v51, %v9628_v60  ;;  %v5164_v45 = vpop.f32.mrb[187].mxu0 }
 0x7d3   :  { %v5167_v16 = vpop.f32.mrb[188].mxu0 }
 0x7d4   :  { %v9749_v33 = vadd.f32 %v5167_v16, %v9632_v36  ;;  %v5169_v28 = vpop.f32.mrb[189].mxu0 }
 0x7d7   :  { %v5172_v42 = vpop.f32.mrb[190].mxu0 }
 0x7d8   :  { %v9752_v15 = vadd.f32 %v5172_v42, %v9636_v63  ;;  %v5174_v30 = vpop.f32.mrb[191].mxu0 }
 0x7db   :  { %v5177_v52 = vpop.f32.mrb[192].mxu0 }
 0x7dc   :  { %v9755_v1 = vadd.f32 %v5177_v52, %v9640_v57  ;;  %v5179_v10 = vpop.f32.mrb[193].mxu0 }
 0x7df   :  { %v5182_v50 = vpop.f32.mrb[194].mxu0 }
 0x7e0   :  { %v9758_v60 = vadd.f32 %v5182_v50, %v9644_v24  ;;  %v5184_v17 = vpop.f32.mrb[195].mxu0 }
 0x7e3   :  { %v5187_v11 = vpop.f32.mrb[196].mxu0 }
 0x7e4   :  { %v9761_v36 = vadd.f32 %v5187_v11, %v9648_v54  ;;  %v5189_v55 = vpop.f32.mrb[197].mxu0 }
 0x7e7   :  { %v5192_v2 = vpop.f32.mrb[198].mxu0 }
 0x7e8   :  { %v9764_v63 = vadd.f32 %v5192_v2, %v9652_v20  ;;  %v5194_v29 = vpop.f32.mrb[199].mxu0 }
 0x7eb   :  { %v5197_v23 = vpop.f32.mrb[200].mxu0 }
 0x7ec   :  { %v9767_v57 = vadd.f32 %v5197_v23, %v9656_v41  ;;  %v5199_v8 = vpop.f32.mrb[201].mxu0 }
 0x7ef   :  { %v5202_v32 = vpop.f32.mrb[202].mxu0 }
 0x7f0   :  { %v9770_v24 = vadd.f32 %v5202_v32, %v9660_v61  ;;  %v5204_v12 = vpop.f32.mrb[203].mxu0 }
 0x7f3   :  { %v5207_v38 = vpop.f32.mrb[204].mxu0 }
 0x7f4   :  { %v9773_v54 = vadd.f32 %v5207_v38, %v9675_v56  ;;  %v5209_v40 = vpop.f32.mrb[205].mxu0 }
 0x7f7   :  { %v5212_v26 = vpop.f32.mrb[206].mxu0 }
 0x7f8   :  { %v9776_v20 = vadd.f32 %v5212_v26, %v9679_v4  ;;  %v5214_v34 = vpop.f32.mrb[207].mxu0 }
 0x7fb   :  { %v5217_v35 = vpop.f32.mrb[208].mxu0 }
 0x7fc   :  { %v9779_v41 = vadd.f32 %v5217_v35, %v9683_v21  ;;  %v5219_v62 = vpop.f32.mrb[209].mxu0 }
 0x7ff   :  { %v5222_v37 = vpop.f32.mrb[210].mxu0 }
 0x800   :  { %v9782_v61 = vadd.f32 %v5222_v37, %v9687_v58  ;;  %v5224_v31 = vpop.f32.mrb[211].mxu0 }
 0x803   :  { %v5227_v22 = vpop.f32.mrb[212].mxu0 }
 0x804   :  { %v9785_v56 = vadd.f32 %v5227_v22, %v9691_v48  ;;  %v5229_v9 = vpop.f32.mrb[213].mxu0 }
 0x807   :  { %v5232_v18 = vpop.f32.mrb[214].mxu0 }
 0x808   :  { %v9788_v4 = vadd.f32 %v5232_v18, %v9695_v19  ;;  %v5234_v6 = vpop.f32.mrb[215].mxu0 }
 0x80b   :  { %v5391_v53 = vpop.f32.mrb[216].mxu0 }
 0x80c   :  { %v5530_v21 = vadd.f32 %v5391_v53, %v9700_v13  ;;  %v5393_v51 = vpop.f32.mrb[217].mxu0 }
 0x80e   :  { %v5565_v58 = vadd.f32 %v9790_v44, %v5530_v21 }
 0x80f   :  { %v5396_v45 = vpop.f32.mrb[218].mxu0 }
 0x810   :  { %5593 = vst.msk [vmem:[%s9969_s9] sm:$0xff] %vm119_vm0, %v5565_v58  ;;  %v5531_v48 = vadd.f32 %v5396_v45, %v9706_v43  ;;  %v5398_v16 = vpop.f32.mrb[219].mxu0 }
 0x812   :  { %v5566_v19 = vadd.f32 %v9790_v44, %v5531_v48 }
 0x813   :  { %v5401_v28 = vpop.f32.mrb[220].mxu0 }
 0x814   :  { %5594 = vst.msk [vmem:[%s9969_s9 + $0x8] sm:$0xff] %vm119_vm0, %v5566_v19  ;;  %v5532_v13 = vadd.f32 %v5401_v28, %v9712_v7  ;;  %v5403_v42 = vpop.f32.mrb[221].mxu0 }
 0x816   :  { %v5567_v30 = vadd.f32 %v9790_v44, %v5532_v13 }
 0x817   :  { %v5406_v52 = vpop.f32.mrb[222].mxu0 }
 0x818   :  { %5595 = vst.msk [vmem:[%s9969_s9 + $0x10] sm:$0xff] %vm119_vm0, %v5567_v30  ;;  %v5533_v43 = vadd.f32 %v5406_v52, %v9716_v27  ;;  %v5408_v10 = vpop.f32.mrb[223].mxu0 }
 0x81a   :  { %v5568_v50 = vadd.f32 %v9790_v44, %v5533_v43 }
 0x81b   :  { %v5411_v17 = vpop.f32.mrb[224].mxu0 }
 0x81c   :  { %5596 = vst.msk [vmem:[%s9969_s9 + $0x18] sm:$0xff] %vm119_vm0, %v5568_v50  ;;  %v5534_v7 = vadd.f32 %v5411_v17, %v9719_v14  ;;  %v5413_v11 = vpop.f32.mrb[225].mxu0 }
 0x81e   :  { %v5569_v55 = vadd.f32 %v9790_v44, %v5534_v7 }
 0x81f   :  { %v5416_v2 = vpop.f32.mrb[226].mxu0 }
 0x820   :  { %5597 = vst.msk [vmem:[%s9969_s9 + $0x20] sm:$0xff] %vm119_vm0, %v5569_v55  ;;  %v5535_v27 = vadd.f32 %v5416_v2, %v9722_v59  ;;  %v5418_v29 = vpop.f32.mrb[227].mxu0 }
 0x822   :  { %v5570_v23 = vadd.f32 %v9790_v44, %v5535_v27 }
 0x823   :  { %v5421_v8 = vpop.f32.mrb[228].mxu0 }
 0x824   :  { %5598 = vst.msk [vmem:[%s9969_s9 + $0x28] sm:$0xff] %vm119_vm0, %v5570_v23  ;;  %v5536_v14 = vadd.f32 %v5421_v8, %v9725_v5  ;;  %v5423_v32 = vpop.f32.mrb[229].mxu0 }
 0x826   :  { %v5571_v12 = vadd.f32 %v9790_v44, %v5536_v14 }
 0x827   :  { %v5426_v38 = vpop.f32.mrb[230].mxu0 }
 0x828   :  { %5599 = vst.msk [vmem:[%s9969_s9 + $0x30] sm:$0xff] %vm119_vm0, %v5571_v12  ;;  %v5537_v59 = vadd.f32 %v5426_v38, %v9728_v39  ;;  %v5428_v40 = vpop.f32.mrb[231].mxu0 }
 0x82a   :  { %v5572_v26 = vadd.f32 %v9790_v44, %v5537_v59 }
 0x82b   :  { %v5431_v34 = vpop.f32.mrb[232].mxu0 }
 0x82c   :  { %5600 = vst.msk [vmem:[%s9969_s9 + $0x38] sm:$0xff] %vm119_vm0, %v5572_v26  ;;  %v5538_v5 = vadd.f32 %v5431_v34, %v9731_v47  ;;  %v5433_v35 = vpop.f32.mrb[233].mxu0 }
 0x82e   :  { %v5573_v62 = vadd.f32 %v9790_v44, %v5538_v5 }
 0x82f   :  { %v5436_v37 = vpop.f32.mrb[234].mxu0 }
 0x830   :  { %5601 = vst.msk [vmem:[%s9969_s9 + $0x40] sm:$0xff] %vm119_vm0, %v5573_v62  ;;  %v5539_v39 = vadd.f32 %v5436_v37, %v9734_v49  ;;  %v5438_v31 = vpop.f32.mrb[235].mxu0 }
 0x832   :  { %v5574_v22 = vadd.f32 %v9790_v44, %v5539_v39 }
 0x833   :  { %v5441_v9 = vpop.f32.mrb[236].mxu0 }
 0x834   :  { %5602 = vst.msk [vmem:[%s9969_s9 + $0x48] sm:$0xff] %vm119_vm0, %v5574_v22  ;;  %v5540_v47 = vadd.f32 %v5441_v9, %v9737_v0  ;;  %v5443_v18 = vpop.f32.mrb[237].mxu0 }
 0x836   :  { %v5575_v6 = vadd.f32 %v9790_v44, %v5540_v47 }
 0x837   :  { %v5446_v53 = vpop.f32.mrb[238].mxu0 }
 0x838   :  { %5603 = vst.msk [vmem:[%s9969_s9 + $0x50] sm:$0xff] %vm119_vm0, %v5575_v6  ;;  %v5541_v49 = vadd.f32 %v5446_v53, %v9740_v25  ;;  %v5448_v21 = vpop.f32.mrb[239].mxu0 }
 0x83a   :  { %v5576_v51 = vadd.f32 %v9790_v44, %v5541_v49 }
 0x83b   :  { %v5451_v58 = vpop.f32.mrb[240].mxu0 }
 0x83c   :  { %5604 = vst.msk [vmem:[%s9969_s9 + $0x58] sm:$0xff] %vm119_vm0, %v5576_v51  ;;  %v5542_v0 = vadd.f32 %v5451_v58, %v9743_v46  ;;  %v5453_v45 = vpop.f32.mrb[241].mxu0 }
 0x83e   :  { %v5577_v48 = vadd.f32 %v9790_v44, %v5542_v0 }
 0x83f   :  { %v5456_v16 = vpop.f32.mrb[242].mxu0 }
 0x840   :  { %5605 = vst.msk [vmem:[%s9969_s9 + $0x60] sm:$0xff] %vm119_vm0, %v5577_v48  ;;  %v5543_v25 = vadd.f32 %v5456_v16, %v9746_v3  ;;  %v5458_v19 = vpop.f32.mrb[243].mxu0 }
 0x842   :  { %v5578_v28 = vadd.f32 %v9790_v44, %v5543_v25 }
 0x843   :  { %v5461_v13 = vpop.f32.mrb[244].mxu0 }
 0x844   :  { %5606 = vst.msk [vmem:[%s9969_s9 + $0x68] sm:$0xff] %vm119_vm0, %v5578_v28  ;;  %v5544_v46 = vadd.f32 %v5461_v13, %v9749_v33  ;;  %v5463_v42 = vpop.f32.mrb[245].mxu0 }
 0x846   :  { %v5579_v30 = vadd.f32 %v9790_v44, %v5544_v46 }
 0x847   :  { %v5466_v52 = vpop.f32.mrb[246].mxu0 }
 0x848   :  { %5607 = vst.msk [vmem:[%s9969_s9 + $0x70] sm:$0xff] %vm119_vm0, %v5579_v30  ;;  %v5545_v3 = vadd.f32 %v5466_v52, %v9752_v15  ;;  %v5468_v43 = vpop.f32.mrb[247].mxu0 }
 0x84a   :  { %v5580_v10 = vadd.f32 %v9790_v44, %v5545_v3 }
 0x84b   :  { %v5471_v50 = vpop.f32.mrb[248].mxu0 }
 0x84c   :  { %5608 = vst.msk [vmem:[%s9969_s9 + $0x78] sm:$0xff] %vm119_vm0, %v5580_v10  ;;  %v5546_v33 = vadd.f32 %v5471_v50, %v9755_v1  ;;  %v5473_v17 = vpop.f32.mrb[249].mxu0 }
 0x84e   :  { %v5581_v7 = vadd.f32 %v9790_v44, %v5546_v33 }
 0x84f   :  { %v5476_v11 = vpop.f32.mrb[250].mxu0 }
 0x850   :  { %5609 = vst.msk [vmem:[%s9969_s9 + $0x80] sm:$0xff] %vm119_vm0, %v5581_v7  ;;  %v5547_v15 = vadd.f32 %v5476_v11, %v9758_v60  ;;  %v5478_v55 = vpop.f32.mrb[251].mxu0 }
 0x852   :  { %v5582_v2 = vadd.f32 %v9790_v44, %v5547_v15 }
 0x853   :  { %v5481_v27 = vpop.f32.mrb[252].mxu0 }
 0x854   :  { %5610 = vst.msk [vmem:[%s9969_s9 + $0x88] sm:$0xff] %vm119_vm0, %v5582_v2  ;;  %v5548_v1 = vadd.f32 %v5481_v27, %v9761_v36  ;;  %v5483_v29 = vpop.f32.mrb[253].mxu0 }
 0x856   :  { %v5583_v23 = vadd.f32 %v9790_v44, %v5548_v1 }
 0x857   :  { %v5486_v8 = vpop.f32.mrb[254].mxu0 }
 0x858   :  { %5611 = vst.msk [vmem:[%s9969_s9 + $0x90] sm:$0xff] %vm119_vm0, %v5583_v23  ;;  %v5549_v60 = vadd.f32 %v5486_v8, %v9764_v63  ;;  %v5488_v14 = vpop.f32.mrb[255].mxu0 }
 0x85a   :  { %v5584_v32 = vadd.f32 %v9790_v44, %v5549_v60 }
 0x85b   :  { %v5491_v12 = vpop.f32.mrb[0].mxu0 }
 0x85c   :  { %5612 = vst.msk [vmem:[%s9969_s9 + $0x98] sm:$0xff] %vm119_vm0, %v5584_v32  ;;  %v5550_v36 = vadd.f32 %v5491_v12, %v9767_v57  ;;  %v5493_v38 = vpop.f32.mrb[1].mxu0 }
 0x85e   :  { %v5585_v59 = vadd.f32 %v9790_v44, %v5550_v36 }
 0x85f   :  { %v5496_v40 = vpop.f32.mrb[2].mxu0 }
 0x860   :  { %5613 = vst.msk [vmem:[%s9969_s9 + $0xa0] sm:$0xff] %vm119_vm0, %v5585_v59  ;;  %v5551_v63 = vadd.f32 %v5496_v40, %v9770_v24  ;;  %v5498_v26 = vpop.f32.mrb[3].mxu0 }
 0x862   :  { %v5586_v34 = vadd.f32 %v9790_v44, %v5551_v63 }
 0x863   :  { %v5501_v5 = vpop.f32.mrb[4].mxu0 }
 0x864   :  { %5614 = vst.msk [vmem:[%s9969_s9 + $0xa8] sm:$0xff] %vm119_vm0, %v5586_v34  ;;  %v5552_v57 = vadd.f32 %v5501_v5, %v9773_v54  ;;  %v5503_v35 = vpop.f32.mrb[5].mxu0 }
 0x866   :  { %v5587_v62 = vadd.f32 %v9790_v44, %v5552_v57 }
 0x867   :  { %v5506_v37 = vpop.f32.mrb[6].mxu0 }
 0x868   :  { %5615 = vst.msk [vmem:[%s9969_s9 + $0xb0] sm:$0xff] %vm119_vm0, %v5587_v62  ;;  %v5553_v24 = vadd.f32 %v5506_v37, %v9776_v20  ;;  %v5508_v39 = vpop.f32.mrb[7].mxu0 }
 0x86a   :  { %v5588_v31 = vadd.f32 %v9790_v44, %v5553_v24 }
 0x86b   :  { %v5511_v22 = vpop.f32.mrb[8].mxu0 }
 0x86c   :  { %5616 = vst.msk [vmem:[%s9969_s9 + $0xb8] sm:$0xff] %vm119_vm0, %v5588_v31  ;;  %v5554_v54 = vadd.f32 %v5511_v22, %v9779_v41  ;;  %v5513_v9 = vpop.f32.mrb[9].mxu0 }
 0x86e   :  { %v5589_v47 = vadd.f32 %v9790_v44, %v5554_v54 }
 0x86f   :  { %v5516_v18 = vpop.f32.mrb[10].mxu0 }
 0x870   :  { %5617 = vst.msk [vmem:[%s9969_s9 + $0xc0] sm:$0xff] %vm119_vm0, %v5589_v47  ;;  %v5555_v20 = vadd.f32 %v5516_v18, %v9782_v61  ;;  %v5518_v6 = vpop.f32.mrb[11].mxu0 }
 0x872   :  { %v5590_v53 = vadd.f32 %v9790_v44, %v5555_v20 }
 0x873   :  { %v5521_v49 = vpop.f32.mrb[12].mxu0 }
 0x874   :  { %5618 = vst.msk [vmem:[%s9969_s9 + $0xc8] sm:$0xff] %vm119_vm0, %v5590_v53  ;;  %v5556_v41 = vadd.f32 %v5521_v49, %v9785_v56  ;;  %v5523_v21 = vpop.f32.mrb[13].mxu0 }
 0x876   :  { %v5591_v51 = vadd.f32 %v9790_v44, %v5556_v41 }
 0x877   :  { %v5526_v58 = vpop.f32.mrb[14].mxu0 }
 0x878   :  { %5619 = vst.msk [vmem:[%s9969_s9 + $0xd0] sm:$0xff] %vm119_vm0, %v5591_v51  ;;  %v5557_v61 = vadd.f32 %v5526_v58, %v9788_v4  ;;  %v5528_v0 = vpop.f32.mrb[15].mxu0 }
 0x87a   :  { %v5592_v45 = vadd.f32 %v9790_v44, %v5557_v61 }
 0x87c   :  { %5620 = vst.msk [vmem:[%s9969_s9 + $0xd8] sm:$0xff] %vm119_vm0, %v5592_v45 }
 0x87d   :  { %5625 = vsyncpa [#allocation6], 1 }
 0x87e   :  { %5626 = vsyncpa [#allocation8], 1 }
 0x87f   :  { %5627 = vsyncpa [#allocation11], 1 }
 0x880   :  { %5628 = vsyncpa [#allocation14], 1 }

</bundles_post_ra>
